<compile_context>
chip_gen: v6e
topology: v6e:2x2x1
jax: 0.10.0
libtpu: 0.0.40
codegen_flags: <defaults>
</compile_context>

<pallas_src>
import numpy as np
import jax
import jax.numpy as jnp
from jax import lax
from jax.experimental import pallas as pl
from jax.experimental.pallas import tpu as pltpu

J = 17                                                  # num_joints
SUBSETS = [[0, 5, 6, 11, 12], [7, 8, 13, 14], [9, 10, 15, 16]]
NUM_LEVELS = len(SUBSETS)
HID = 64                                                # hidden_dims = (64, 64, 64)
EDGE = 64                                               # edge_hidden
OUT = 128                                               # out_dim
BLK = 256                                               # lanes per active joint (3*64 + pad)
EPS = 1e-6
ONES_LANE = 3 * J + 1                                   # lane 52: constant 1.0 (bias fold)

ACT = [j for sub in SUBSETS for j in sub]               # 13 joints that touch the graph
ACT_IDX = {j: a for a, j in enumerate(ACT)}
LEVEL_ACT = []
_o = 0
for _sub in SUBSETS:
    LEVEL_ACT.append(list(range(_o, _o + len(_sub))))
    _o += len(_sub)
N_ACT = len(ACT)
WIDTH = N_ACT * BLK                                     # 3328


def _round_up(x, m):
    return ((x + m - 1) // m) * m


def build_graph(num_joints=J):
    """Adjacency / mask buffers exactly as in _precompute_adjacencies."""
    phys, comb, masks = [], [], []
    for i, sub in enumerate(SUBSETS):
        m = np.zeros((num_joints,), np.bool_)
        m[sub] = True
        masks.append(m)
        p = np.zeros((num_joints, num_joints), np.float32)
        for u in sub:
            for v in sub:
                if u != v:
                    p[u, v] = 1.0
        c = np.zeros((num_joints, num_joints), np.float32)
        if i > 0:
            for u in sub:
                for v in SUBSETS[i - 1]:
                    c[u, v] = 1.0
                    c[v, u] = 1.0
        if i < len(SUBSETS) - 1:
            for u in sub:
                for v in SUBSETS[i + 1]:
                    c[u, v] = 1.0
                    c[v, u] = 1.0
        phys.append(p)
        comb.append(p + c)
    return {"phys": phys, "comb": comb, "mask": masks}


def make_encoder(params, *, tile_n=256, out_dtype=jnp.float32):
    """Packs parameters / graph constants once (hoisted out of the per-call path) and
    returns a jitted forward(kpts, scores, valid) -> [N, out_dim]."""
    assert tile_n % 8 == 0
    graph = build_graph()

    lvl_w = [np.asarray(w, np.float32) for w in params["lvl_w"]]    # [3, HID] each
    lvl_b = [np.asarray(b, np.float32) for b in params["lvl_b"]]    # [HID]
    edge_w = np.asarray(params["edge_w"], np.float32)               # [2*HID, EDGE]
    edge_b = np.asarray(params["edge_b"], np.float32)               # [EDGE]
    proj_w = np.asarray(params["proj_w"], np.float32)               # [3*(HID+EDGE), OUT]
    proj_b = np.asarray(params["proj_b"], np.float32)               # [OUT]
    out_dim = proj_w.shape[1]

    # -- stage-1 block weight: level MLPs for every (active joint, level) lane block.
    #    The level-MLP bias rides the constant-1 input lane (ONES_LANE).
    w1_big = np.zeros((64, WIDTH), np.float32)
    for a, j in enumerate(ACT):
        for i in range(NUM_LEVELS):
            c0 = a * BLK + i * HID
            w1_big[j, c0:c0 + HID] = lvl_w[i][0]           # x row
            w1_big[J + j, c0:c0 + HID] = lvl_w[i][1]       # y row
            w1_big[2 * J + j, c0:c0 + HID] = lvl_w[i][2]   # score row
            w1_big[ONES_LANE, c0:c0 + HID] = lvl_b[i]      # bias (folded)

    # -- linearized (shared) edge MLP:  edge(cat[s, t-s]) = s@(Wsrc-Wtgt) + t@Wtgt + b
    w_src, w_tgt = edge_w[:HID], edge_w[HID:]
    w_ab = np.zeros((BLK, NUM_LEVELS * 2 * EDGE), np.float32)       # [256, 384]
    for i in range(NUM_LEVELS):
        w_ab[i * HID:(i + 1) * HID, i * 2 * EDGE:i * 2 * EDGE + EDGE] = w_src - w_tgt
        w_ab[i * HID:(i + 1) * HID, i * 2 * EDGE + EDGE:(i + 1) * 2 * EDGE] = w_tgt

    # -- graph constants baked into the kernel: pooling weights & neighbor lists
    pool_w, neighbors, inv_cnt = [], [], []
    for i, sub in enumerate(SUBSETS):
        cnt = float(len(sub))
        inv_cnt.append(1.0 / cnt)
        mask = graph["mask"][i]
        pw, nb = {}, {}
        for a in LEVEL_ACT[i]:
            v = ACT[a]
            pw[a] = float(graph["phys"][i][mask, v].sum() / cnt)
            nb[a] = [ACT_IDX[int(u)] for u in np.nonzero(graph["comb"][i][v] > 0.0)[0]]
            # relu/max linearization requires every pooled joint to have >=1 neighbor.
            assert len(nb[a]) > 0, "isolated pooled joint: linearized edge conv invalid"
        pool_w.append(pw)
        neighbors.append(nb)

    # device copies: matmul weights in bf16 (f32 accumulation), biases in f32
    w1_d = jnp.asarray(w1_big, jnp.bfloat16)
    wab_d = jnp.asarray(w_ab, jnp.bfloat16)
    wp_d = jnp.asarray(proj_w, jnp.bfloat16)
    be_d = jnp.asarray(edge_b.reshape(1, EDGE), jnp.float32)
    bp_d = jnp.asarray(proj_b.reshape(1, out_dim), jnp.float32)

    def kernel(pk_ref, w1_ref, wab_ref, be_ref, wp_ref, bp_ref, out_ref):
        pk = pk_ref[...]                                            # [T, 64] f32

        # per-detection min/max normalization of x / y (f32 VPU; reciprocal on EUP)
        lane = lax.broadcasted_iota(jnp.int32, (1, 64), 1)
        is_x = lane < J
        is_y = (lane >= J) & (lane < 2 * J)
        min_x = jnp.min(jnp.where(is_x, pk, 1e30), axis=1, keepdims=True)
        max_x = jnp.max(jnp.where(is_x, pk, -1e30), axis=1, keepdims=True)
        min_y = jnp.min(jnp.where(is_y, pk, 1e30), axis=1, keepdims=True)
        max_y = jnp.max(jnp.where(is_y, pk, -1e30), axis=1, keepdims=True)
        inv_x = pl.reciprocal(max_x - min_x + EPS, approx=True)     # [T, 1]
        inv_y = pl.reciprocal(max_y - min_y + EPS, approx=True)

        fx = is_x.astype(jnp.float32)
        fy = is_y.astype(jnp.float32)
        shift = fx * min_x + fy * min_y                             # [T, 64]
        scale = fx * inv_x + fy * inv_y + (1.0 - fx - fy)
        pn = ((pk - shift) * scale).astype(jnp.bfloat16)            # normalized packed P
        # (ONES_LANE is neither x nor y -> stays exactly 1.0 and carries the bias row)

        # stage 1: level MLPs for all 13 active joints x 3 levels in one MXU matmul
        # (bias folded into w1 via the ones lane; single full-width f32 intermediate)
        h = jnp.maximum(
            jnp.dot(pn, w1_ref[...], preferred_element_type=jnp.float32), 0.0)  # [T, WIDTH]

        # stage 2: linearized edge projections per active joint.
        # f32 scores come straight from pk; since score is [T,1] it commutes with the
        # contraction:  (score * h_a) @ Wab == score * (h_a @ Wab).
        wab = wab_ref[...]
        sc, ab = [], []
        for a in range(N_ACT):
            j = ACT[a]
            s = pk[:, 2 * J + j:2 * J + j + 1]                      # [T, 1] f32 score
            sc.append(s)
            ha = h[:, a * BLK:(a + 1) * BLK].astype(jnp.bfloat16)   # [T, 256]
            ab.append(jnp.dot(ha, wab, preferred_element_type=jnp.float32) * s)

        be = be_ref[...]                                            # [1, EDGE]
        hp_list, zp_list = [], []
        for i in range(NUM_LEVELS):
            hp = None
            zp = None
            for a in LEVEL_ACT[i]:
                # masked mean of phys_adj @ (H*score): level-i slice of joint a's block
                h_blk = h[:, a * BLK + i * HID:a * BLK + (i + 1) * HID]
                t = h_blk * (sc[a] * pool_w[i][a])
                hp = t if hp is None else hp + t
                # edge conv:  max_v relu(A_u + B_v + b) = relu(A_u + b + max_v B_v)
                a_blk = ab[a][:, i * 2 * EDGE:i * 2 * EDGE + EDGE]
                mb = None
                for v in neighbors[i][a]:
                    b_blk = ab[v][:, i * 2 * EDGE + EDGE:(i + 1) * 2 * EDGE]
                    mb = b_blk if mb is None else jnp.maximum(mb, b_blk)
                z = jnp.maximum(a_blk + be + mb, 0.0)
                zp = z if zp is None else zp + z
            hp_list.append(hp)
            zp_list.append(zp * inv_cnt[i])

        # fused final projection: cat([Hp0..2, Zp0..2]) -> one [T,384]@[384,OUT] matmul
        pooled = jnp.concatenate(hp_list + zp_list, axis=1).astype(jnp.bfloat16)
        acc = jnp.dot(pooled, wp_ref[...], preferred_element_type=jnp.float32) + bp_ref[...]

        valid = pk[:, 3 * J:3 * J + 1]                              # [T, 1]
        out_ref[...] = (acc * valid).astype(out_ref.dtype)

    const = lambda i: (0, 0)
    row = lambda i: (i, 0)

    def forward(kpts, scores, valid):
        kpts = jnp.asarray(kpts, jnp.float32)
        scores = jnp.asarray(scores, jnp.float32)
        valid = jnp.asarray(valid, jnp.float32)
        n = kpts.shape[0]

        # Adaptive tile: >=2 grid steps whenever possible (v7x megacore sharding),
        # capped at tile_n so large batches amortize per-step overhead (v5e/v6e).
        tile = min(tile_n, max(8, _round_up((n + 1) // 2, 8)))
        n_pad = _round_up(n, tile)

        # single lane-dense packed input: [x(17) | y(17) | score(17) | valid | 1 | pad]
        packed = jnp.zeros((n_pad, 64), jnp.float32)
        packed = packed.at[:n, 0:J].set(kpts[:, :, 0])
        packed = packed.at[:n, J:2 * J].set(kpts[:, :, 1])
        packed = packed.at[:n, 2 * J:3 * J].set(scores)
        packed = packed.at[:n, 3 * J].set(valid)
        packed = packed.at[:, ONES_LANE].set(1.0)                   # bias lane

        flops_row = 2 * (64 * WIDTH
                         + N_ACT * BLK * NUM_LEVELS * 2 * EDGE
                         + NUM_LEVELS * (HID + EDGE) * out_dim)
        weight_bytes = 2 * (w1_d.size + wab_d.size + wp_d.size) + 4 * (be_d.size + bp_d.size)
        cost = pl.CostEstimate(
            flops=int(n_pad * flops_row),
            transcendentals=int(n_pad * 2),
            bytes_accessed=int(n_pad * (64 + out_dim) * 4 + weight_bytes))

        out = pl.pallas_call(
            kernel,
            out_shape=jax.ShapeDtypeStruct((n_pad, out_dim), out_dtype),
            grid=(n_pad // tile,),
            in_specs=[
                pl.BlockSpec((tile, 64), row),                            # packed inputs
                pl.BlockSpec((64, WIDTH), const),                         # w1_big  (resident)
                pl.BlockSpec((BLK, NUM_LEVELS * 2 * EDGE), const),        # w_ab
                pl.BlockSpec((1, EDGE), const),                           # b_edge
                pl.BlockSpec((NUM_LEVELS * (HID + EDGE), out_dim), const),  # w_proj
                pl.BlockSpec((1, out_dim), const),                        # b_proj
            ],
            out_specs=pl.BlockSpec((tile, out_dim), row),
            compiler_params=pltpu.CompilerParams(
                dimension_semantics=("parallel",),
                vmem_limit_bytes=48 * 1024 * 1024,
            ),
            cost_estimate=cost,
        )(packed, w1_d, wab_d, be_d, wp_d, bp_d)
        return out[:n]

    return jax.jit(forward)


def reference_forward(kpts, scores, valid, params, graph):
    """Pure-JAX mirror of the PyTorch forward (dense / masked formulation)."""
    mn = jnp.min(kpts, axis=1, keepdims=True)
    mx = jnp.max(kpts, axis=1, keepdims=True)
    kn = (kpts - mn) / (mx - mn + EPS)
    s3 = scores[..., None]
    P = jnp.concatenate([kn, s3], axis=-1)                          # [N, 17, 3]
    n, nj = P.shape[0], P.shape[1]

    we = jnp.asarray(params["edge_w"], jnp.float32)
    be = jnp.asarray(params["edge_b"], jnp.float32)
    h_pool, z_pool = [], []
    for i in range(NUM_LEVELS):
        w = jnp.asarray(params["lvl_w"][i], jnp.float32)
        b = jnp.asarray(params["lvl_b"][i], jnp.float32)
        H = jax.nn.relu(P @ w + b)                                  # [N, 17, HID]
        Hw = H * s3
        H_phys = jnp.einsum('uv,nvd->nud', jnp.asarray(graph["phys"][i]), Hw)
        src = jnp.broadcast_to(Hw[:, :, None, :], (n, nj, nj, HID))
        tgt = jnp.broadcast_to(Hw[:, None, :, :], (n, nj, nj, HID))
        e_in = jnp.concatenate([src, tgt - src], axis=-1)           # [N, 17, 17, 2*HID]
        E = jax.nn.relu(e_in @ we + be)                             # [N, 17, 17, EDGE]
        adj = jnp.asarray(graph["comb"][i])[None, :, :, None]
        E = E * adj
        E = jnp.where(adj > 0, E, -jnp.inf)
        Z = jnp.max(E, axis=2)
        Z = jnp.where(jnp.isneginf(Z), 0.0, Z)
        m = jnp.asarray(graph["mask"][i], jnp.float32)[None, :, None]
        cnt = jnp.sum(jnp.asarray(graph["mask"][i], jnp.float32))
        h_pool.append(jnp.sum(H_phys * m, axis=1) / cnt)
        z_pool.append(jnp.sum(Z * m, axis=1) / cnt)
    allp = jnp.concatenate(h_pool + z_pool, axis=-1)
    out = allp @ jnp.asarray(params["proj_w"], jnp.float32) \
        + jnp.asarray(params["proj_b"], jnp.float32)
    return out * valid[:, None]


if __name__ == "__main__":
    N = 16
    key = jax.random.PRNGKey(0)
    ks = jax.random.split(key, 12)
    params = {
        "lvl_w": [0.05 * jax.random.normal(ks[i], (3, HID), jnp.float32) for i in range(3)],
        "lvl_b": [0.05 * jax.random.normal(ks[3 + i], (HID,), jnp.float32) for i in range(3)],
        "edge_w": 0.05 * jax.random.normal(ks[6], (2 * HID, EDGE), jnp.float32),
        "edge_b": 0.05 * jax.random.normal(ks[7], (EDGE,), jnp.float32),
        "proj_w": 0.05 * jax.random.normal(ks[8], (NUM_LEVELS * (HID + EDGE), OUT), jnp.float32),
        "proj_b": 0.05 * jax.random.normal(ks[9], (OUT,), jnp.float32),
    }

    kpts = 200.0 * jax.random.uniform(ks[10], (N, J, 2), jnp.float32)
    scores = jax.random.uniform(ks[11], (N, J), jnp.float32)
    valid = jnp.ones((N,), jnp.float32).at[3].set(0.0).at[7].set(0.0)   # two `None` detections
    kpts = kpts * valid[:, None, None]
    scores = scores * valid[:, None]

    encoder = make_encoder(params, tile_n=256)
    out = jax.block_until_ready(encoder(kpts, scores, valid))

    ref = reference_forward(kpts, scores, valid, params, build_graph())
    assert out.shape == (N, OUT)
    assert jnp.allclose(out, ref, atol=2e-2, rtol=2e-2), "mismatch vs reference"
    assert bool(jnp.all(out[3] == 0.0)) and bool(jnp.all(out[7] == 0.0))
    print("KERNEL_OK")
</pallas_src>

<mosaic_0001>
module attributes {stable_mosaic.version = 11 : i64} {
  func.func @kernel(%arg0: i32, %arg1: memref<8x64xf32, #tpu.memory_space<vmem>>, %arg2: memref<64x3328xbf16, #tpu.memory_space<vmem>>, %arg3: memref<256x384xbf16, #tpu.memory_space<vmem>>, %arg4: memref<1x64xf32, #tpu.memory_space<vmem>>, %arg5: memref<384x128xbf16, #tpu.memory_space<vmem>>, %arg6: memref<1x128xf32, #tpu.memory_space<vmem>>, %arg7: memref<8x128xf32, #tpu.memory_space<vmem>>) attributes {dimension_semantics = [#tpu.dimension_semantics<parallel>], iteration_bounds = array<i64: 2>, scalar_prefetch = 0 : i64, scratch_operands = 0 : i64, tpu.core_type = #tpu.core_type<tc>, window_params = [{transform_indices = @transform_0, window_bounds = array<i64: 8, 64>}, {pipeline_mode = #tpu.pipeline_mode<synchronous>, transform_indices = @transform_1, window_bounds = array<i64: 64, 3328>}, {pipeline_mode = #tpu.pipeline_mode<synchronous>, transform_indices = @transform_2, window_bounds = array<i64: 256, 384>}, {pipeline_mode = #tpu.pipeline_mode<synchronous>, transform_indices = @transform_3, window_bounds = array<i64: 1, 64>}, {pipeline_mode = #tpu.pipeline_mode<synchronous>, transform_indices = @transform_4, window_bounds = array<i64: 384, 128>}, {pipeline_mode = #tpu.pipeline_mode<synchronous>, transform_indices = @transform_5, window_bounds = array<i64: 1, 128>}, {transform_indices = @transform_6, window_bounds = array<i64: 8, 128>}]} {
    %c0 = arith.constant 0 : index
    %c0_0 = arith.constant 0 : index
    %0 = vector.load %arg1[%c0, %c0_0] : memref<8x64xf32, #tpu.memory_space<vmem>>, vector<8x64xf32>
    %1 = tpu.iota {dimensions = array<i32: 1>} : vector<1x64xi32>
    %c17_i32 = arith.constant 17 : i32
    %2 = vector.broadcast %c17_i32 : i32 to vector<1x64xi32>
    %3 = arith.cmpi slt, %1, %2 : vector<1x64xi32>
    %c17_i32_1 = arith.constant 17 : i32
    %4 = vector.broadcast %c17_i32_1 : i32 to vector<1x64xi32>
    %5 = arith.cmpi sge, %1, %4 : vector<1x64xi32>
    %c34_i32 = arith.constant 34 : i32
    %6 = vector.broadcast %c34_i32 : i32 to vector<1x64xi32>
    %7 = arith.cmpi slt, %1, %6 : vector<1x64xi32>
    %8 = arith.andi %5, %7 : vector<1x64xi1>
    %cst = arith.constant 1.000000e+30 : f32
    %9 = vector.shape_cast %3 : vector<1x64xi1> to vector<1x64xi1>
    %10 = vector.broadcast %9 : vector<1x64xi1> to vector<8x64xi1>
    %11 = vector.broadcast %cst : f32 to vector<8x64xf32>
    %12 = arith.select %10, %0, %11 : vector<8x64xi1>, vector<8x64xf32>
    %cst_2 = arith.constant dense<0x7F800000> : vector<8xf32>
    %13 = vector.multi_reduction <minimumf>, %12, %cst_2 [1] : vector<8x64xf32> to vector<8xf32>
    %14 = vector.shape_cast %13 : vector<8xf32> to vector<8x1xf32>
    %cst_3 = arith.constant -1.000000e+30 : f32
    %15 = vector.shape_cast %3 : vector<1x64xi1> to vector<1x64xi1>
    %16 = vector.broadcast %15 : vector<1x64xi1> to vector<8x64xi1>
    %17 = vector.broadcast %cst_3 : f32 to vector<8x64xf32>
    %18 = arith.select %16, %0, %17 : vector<8x64xi1>, vector<8x64xf32>
    %cst_4 = arith.constant dense<0xFF800000> : vector<8xf32>
    %19 = vector.multi_reduction <maximumf>, %18, %cst_4 [1] : vector<8x64xf32> to vector<8xf32>
    %20 = vector.shape_cast %19 : vector<8xf32> to vector<8x1xf32>
    %cst_5 = arith.constant 1.000000e+30 : f32
    %21 = vector.shape_cast %8 : vector<1x64xi1> to vector<1x64xi1>
    %22 = vector.broadcast %21 : vector<1x64xi1> to vector<8x64xi1>
    %23 = vector.broadcast %cst_5 : f32 to vector<8x64xf32>
    %24 = arith.select %22, %0, %23 : vector<8x64xi1>, vector<8x64xf32>
    %cst_6 = arith.constant dense<0x7F800000> : vector<8xf32>
    %25 = vector.multi_reduction <minimumf>, %24, %cst_6 [1] : vector<8x64xf32> to vector<8xf32>
    %26 = vector.shape_cast %25 : vector<8xf32> to vector<8x1xf32>
    %cst_7 = arith.constant -1.000000e+30 : f32
    %27 = vector.shape_cast %8 : vector<1x64xi1> to vector<1x64xi1>
    %28 = vector.broadcast %27 : vector<1x64xi1> to vector<8x64xi1>
    %29 = vector.broadcast %cst_7 : f32 to vector<8x64xf32>
    %30 = arith.select %28, %0, %29 : vector<8x64xi1>, vector<8x64xf32>
    %cst_8 = arith.constant dense<0xFF800000> : vector<8xf32>
    %31 = vector.multi_reduction <maximumf>, %30, %cst_8 [1] : vector<8x64xf32> to vector<8xf32>
    %32 = vector.shape_cast %31 : vector<8xf32> to vector<8x1xf32>
    %33 = arith.subf %20, %14 : vector<8x1xf32>
    %cst_9 = arith.constant 9.99999997E-7 : f32
    %34 = vector.broadcast %cst_9 : f32 to vector<8x1xf32>
    %35 = arith.addf %33, %34 : vector<8x1xf32>
    %36 = tpu.reciprocal %35 {approx = true} : vector<8x1xf32> -> vector<8x1xf32>
    %37 = arith.subf %32, %26 : vector<8x1xf32>
    %cst_10 = arith.constant 9.99999997E-7 : f32
    %38 = vector.broadcast %cst_10 : f32 to vector<8x1xf32>
    %39 = arith.addf %37, %38 : vector<8x1xf32>
    %40 = tpu.reciprocal %39 {approx = true} : vector<8x1xf32> -> vector<8x1xf32>
    %41 = arith.extui %3 : vector<1x64xi1> to vector<1x64xi32>
    %42 = arith.sitofp %41 : vector<1x64xi32> to vector<1x64xf32>
    %43 = arith.extui %8 : vector<1x64xi1> to vector<1x64xi32>
    %44 = arith.sitofp %43 : vector<1x64xi32> to vector<1x64xf32>
    %45 = vector.broadcast %42 : vector<1x64xf32> to vector<8x64xf32>
    %46 = vector.broadcast %14 : vector<8x1xf32> to vector<8x64xf32>
    %47 = arith.mulf %45, %46 : vector<8x64xf32>
    %48 = vector.broadcast %44 : vector<1x64xf32> to vector<8x64xf32>
    %49 = vector.broadcast %26 : vector<8x1xf32> to vector<8x64xf32>
    %50 = arith.mulf %48, %49 : vector<8x64xf32>
    %51 = arith.addf %47, %50 : vector<8x64xf32>
    %52 = vector.broadcast %42 : vector<1x64xf32> to vector<8x64xf32>
    %53 = vector.broadcast %36 : vector<8x1xf32> to vector<8x64xf32>
    %54 = arith.mulf %52, %53 : vector<8x64xf32>
    %55 = vector.broadcast %44 : vector<1x64xf32> to vector<8x64xf32>
    %56 = vector.broadcast %40 : vector<8x1xf32> to vector<8x64xf32>
    %57 = arith.mulf %55, %56 : vector<8x64xf32>
    %58 = arith.addf %54, %57 : vector<8x64xf32>
    %cst_11 = arith.constant 1.000000e+00 : f32
    %59 = vector.broadcast %cst_11 : f32 to vector<1x64xf32>
    %60 = arith.subf %59, %42 : vector<1x64xf32>
    %61 = arith.subf %60, %44 : vector<1x64xf32>
    %62 = vector.broadcast %61 : vector<1x64xf32> to vector<8x64xf32>
    %63 = arith.addf %58, %62 : vector<8x64xf32>
    %64 = arith.subf %0, %51 : vector<8x64xf32>
    %65 = arith.mulf %64, %63 : vector<8x64xf32>
    %66 = arith.truncf %65 : vector<8x64xf32> to vector<8x64xbf16>
    %c0_12 = arith.constant 0 : index
    %c0_13 = arith.constant 0 : index
    %67 = vector.load %arg2[%c0_12, %c0_13] : memref<64x3328xbf16, #tpu.memory_space<vmem>>, vector<64x3328xbf16>
    %cst_14 = arith.constant dense<0.000000e+00> : vector<8x3328xf32>
    %68 = tpu.matmul %66, %67, %cst_14 {dimension_numbers = #tpu.dot_dimension_numbers<[1], [0], [0], [1], [0, 0, 1, 1], [], []>} : vector<8x64xbf16>, vector<64x3328xbf16>, vector<8x3328xf32> -> vector<8x3328xf32>
    %cst_15 = arith.constant 0.000000e+00 : f32
    %69 = vector.broadcast %cst_15 : f32 to vector<8x3328xf32>
    %70 = arith.maximumf %68, %69 : vector<8x3328xf32>
    %c0_16 = arith.constant 0 : index
    %c0_17 = arith.constant 0 : index
    %71 = vector.load %arg3[%c0_16, %c0_17] : memref<256x384xbf16, #tpu.memory_space<vmem>>, vector<256x384xbf16>
    %72 = vector.extract_strided_slice %0 {offsets = [0, 34], sizes = [8, 1], strides = [1, 1]} : vector<8x64xf32> to vector<8x1xf32>
    %73 = vector.extract_strided_slice %70 {offsets = [0, 0], sizes = [8, 256], strides = [1, 1]} : vector<8x3328xf32> to vector<8x256xf32>
    %74 = arith.truncf %73 : vector<8x256xf32> to vector<8x256xbf16>
    %cst_18 = arith.constant dense<0.000000e+00> : vector<8x384xf32>
    %75 = tpu.matmul %74, %71, %cst_18 {dimension_numbers = #tpu.dot_dimension_numbers<[1], [0], [0], [1], [0, 0, 1, 1], [], []>} : vector<8x256xbf16>, vector<256x384xbf16>, vector<8x384xf32> -> vector<8x384xf32>
    %76 = vector.broadcast %72 : vector<8x1xf32> to vector<8x384xf32>
    %77 = arith.mulf %75, %76 : vector<8x384xf32>
    %78 = vector.extract_strided_slice %0 {offsets = [0, 39], sizes = [8, 1], strides = [1, 1]} : vector<8x64xf32> to vector<8x1xf32>
    %79 = vector.extract_strided_slice %70 {offsets = [0, 256], sizes = [8, 256], strides = [1, 1]} : vector<8x3328xf32> to vector<8x256xf32>
    %80 = arith.truncf %79 : vector<8x256xf32> to vector<8x256xbf16>
    %cst_19 = arith.constant dense<0.000000e+00> : vector<8x384xf32>
    %81 = tpu.matmul %80, %71, %cst_19 {dimension_numbers = #tpu.dot_dimension_numbers<[1], [0], [0], [1], [0, 0, 1, 1], [], []>} : vector<8x256xbf16>, vector<256x384xbf16>, vector<8x384xf32> -> vector<8x384xf32>
    %82 = vector.broadcast %78 : vector<8x1xf32> to vector<8x384xf32>
    %83 = arith.mulf %81, %82 : vector<8x384xf32>
    %84 = vector.extract_strided_slice %0 {offsets = [0, 40], sizes = [8, 1], strides = [1, 1]} : vector<8x64xf32> to vector<8x1xf32>
    %85 = vector.extract_strided_slice %70 {offsets = [0, 512], sizes = [8, 256], strides = [1, 1]} : vector<8x3328xf32> to vector<8x256xf32>
    %86 = arith.truncf %85 : vector<8x256xf32> to vector<8x256xbf16>
    %cst_20 = arith.constant dense<0.000000e+00> : vector<8x384xf32>
    %87 = tpu.matmul %86, %71, %cst_20 {dimension_numbers = #tpu.dot_dimension_numbers<[1], [0], [0], [1], [0, 0, 1, 1], [], []>} : vector<8x256xbf16>, vector<256x384xbf16>, vector<8x384xf32> -> vector<8x384xf32>
    %88 = vector.broadcast %84 : vector<8x1xf32> to vector<8x384xf32>
    %89 = arith.mulf %87, %88 : vector<8x384xf32>
    %90 = vector.extract_strided_slice %0 {offsets = [0, 45], sizes = [8, 1], strides = [1, 1]} : vector<8x64xf32> to vector<8x1xf32>
    %91 = vector.extract_strided_slice %70 {offsets = [0, 768], sizes = [8, 256], strides = [1, 1]} : vector<8x3328xf32> to vector<8x256xf32>
    %92 = arith.truncf %91 : vector<8x256xf32> to vector<8x256xbf16>
    %cst_21 = arith.constant dense<0.000000e+00> : vector<8x384xf32>
    %93 = tpu.matmul %92, %71, %cst_21 {dimension_numbers = #tpu.dot_dimension_numbers<[1], [0], [0], [1], [0, 0, 1, 1], [], []>} : vector<8x256xbf16>, vector<256x384xbf16>, vector<8x384xf32> -> vector<8x384xf32>
    %94 = vector.broadcast %90 : vector<8x1xf32> to vector<8x384xf32>
    %95 = arith.mulf %93, %94 : vector<8x384xf32>
    %96 = vector.extract_strided_slice %0 {offsets = [0, 46], sizes = [8, 1], strides = [1, 1]} : vector<8x64xf32> to vector<8x1xf32>
    %97 = vector.extract_strided_slice %70 {offsets = [0, 1024], sizes = [8, 256], strides = [1, 1]} : vector<8x3328xf32> to vector<8x256xf32>
    %98 = arith.truncf %97 : vector<8x256xf32> to vector<8x256xbf16>
    %cst_22 = arith.constant dense<0.000000e+00> : vector<8x384xf32>
    %99 = tpu.matmul %98, %71, %cst_22 {dimension_numbers = #tpu.dot_dimension_numbers<[1], [0], [0], [1], [0, 0, 1, 1], [], []>} : vector<8x256xbf16>, vector<256x384xbf16>, vector<8x384xf32> -> vector<8x384xf32>
    %100 = vector.broadcast %96 : vector<8x1xf32> to vector<8x384xf32>
    %101 = arith.mulf %99, %100 : vector<8x384xf32>
    %102 = vector.extract_strided_slice %0 {offsets = [0, 41], sizes = [8, 1], strides = [1, 1]} : vector<8x64xf32> to vector<8x1xf32>
    %103 = vector.extract_strided_slice %70 {offsets = [0, 1280], sizes = [8, 256], strides = [1, 1]} : vector<8x3328xf32> to vector<8x256xf32>
    %104 = arith.truncf %103 : vector<8x256xf32> to vector<8x256xbf16>
    %cst_23 = arith.constant dense<0.000000e+00> : vector<8x384xf32>
    %105 = tpu.matmul %104, %71, %cst_23 {dimension_numbers = #tpu.dot_dimension_numbers<[1], [0], [0], [1], [0, 0, 1, 1], [], []>} : vector<8x256xbf16>, vector<256x384xbf16>, vector<8x384xf32> -> vector<8x384xf32>
    %106 = vector.broadcast %102 : vector<8x1xf32> to vector<8x384xf32>
    %107 = arith.mulf %105, %106 : vector<8x384xf32>
    %108 = vector.extract_strided_slice %0 {offsets = [0, 42], sizes = [8, 1], strides = [1, 1]} : vector<8x64xf32> to vector<8x1xf32>
    %109 = vector.extract_strided_slice %70 {offsets = [0, 1536], sizes = [8, 256], strides = [1, 1]} : vector<8x3328xf32> to vector<8x256xf32>
    %110 = arith.truncf %109 : vector<8x256xf32> to vector<8x256xbf16>
    %cst_24 = arith.constant dense<0.000000e+00> : vector<8x384xf32>
    %111 = tpu.matmul %110, %71, %cst_24 {dimension_numbers = #tpu.dot_dimension_numbers<[1], [0], [0], [1], [0, 0, 1, 1], [], []>} : vector<8x256xbf16>, vector<256x384xbf16>, vector<8x384xf32> -> vector<8x384xf32>
    %112 = vector.broadcast %108 : vector<8x1xf32> to vector<8x384xf32>
    %113 = arith.mulf %111, %112 : vector<8x384xf32>
    %114 = vector.extract_strided_slice %0 {offsets = [0, 47], sizes = [8, 1], strides = [1, 1]} : vector<8x64xf32> to vector<8x1xf32>
    %115 = vector.extract_strided_slice %70 {offsets = [0, 1792], sizes = [8, 256], strides = [1, 1]} : vector<8x3328xf32> to vector<8x256xf32>
    %116 = arith.truncf %115 : vector<8x256xf32> to vector<8x256xbf16>
    %cst_25 = arith.constant dense<0.000000e+00> : vector<8x384xf32>
    %117 = tpu.matmul %116, %71, %cst_25 {dimension_numbers = #tpu.dot_dimension_numbers<[1], [0], [0], [1], [0, 0, 1, 1], [], []>} : vector<8x256xbf16>, vector<256x384xbf16>, vector<8x384xf32> -> vector<8x384xf32>
    %118 = vector.broadcast %114 : vector<8x1xf32> to vector<8x384xf32>
    %119 = arith.mulf %117, %118 : vector<8x384xf32>
    %120 = vector.extract_strided_slice %0 {offsets = [0, 48], sizes = [8, 1], strides = [1, 1]} : vector<8x64xf32> to vector<8x1xf32>
    %121 = vector.extract_strided_slice %70 {offsets = [0, 2048], sizes = [8, 256], strides = [1, 1]} : vector<8x3328xf32> to vector<8x256xf32>
    %122 = arith.truncf %121 : vector<8x256xf32> to vector<8x256xbf16>
    %cst_26 = arith.constant dense<0.000000e+00> : vector<8x384xf32>
    %123 = tpu.matmul %122, %71, %cst_26 {dimension_numbers = #tpu.dot_dimension_numbers<[1], [0], [0], [1], [0, 0, 1, 1], [], []>} : vector<8x256xbf16>, vector<256x384xbf16>, vector<8x384xf32> -> vector<8x384xf32>
    %124 = vector.broadcast %120 : vector<8x1xf32> to vector<8x384xf32>
    %125 = arith.mulf %123, %124 : vector<8x384xf32>
    %126 = vector.extract_strided_slice %0 {offsets = [0, 43], sizes = [8, 1], strides = [1, 1]} : vector<8x64xf32> to vector<8x1xf32>
    %127 = vector.extract_strided_slice %70 {offsets = [0, 2304], sizes = [8, 256], strides = [1, 1]} : vector<8x3328xf32> to vector<8x256xf32>
    %128 = arith.truncf %127 : vector<8x256xf32> to vector<8x256xbf16>
    %cst_27 = arith.constant dense<0.000000e+00> : vector<8x384xf32>
    %129 = tpu.matmul %128, %71, %cst_27 {dimension_numbers = #tpu.dot_dimension_numbers<[1], [0], [0], [1], [0, 0, 1, 1], [], []>} : vector<8x256xbf16>, vector<256x384xbf16>, vector<8x384xf32> -> vector<8x384xf32>
    %130 = vector.broadcast %126 : vector<8x1xf32> to vector<8x384xf32>
    %131 = arith.mulf %129, %130 : vector<8x384xf32>
    %132 = vector.extract_strided_slice %0 {offsets = [0, 44], sizes = [8, 1], strides = [1, 1]} : vector<8x64xf32> to vector<8x1xf32>
    %133 = vector.extract_strided_slice %70 {offsets = [0, 2560], sizes = [8, 256], strides = [1, 1]} : vector<8x3328xf32> to vector<8x256xf32>
    %134 = arith.truncf %133 : vector<8x256xf32> to vector<8x256xbf16>
    %cst_28 = arith.constant dense<0.000000e+00> : vector<8x384xf32>
    %135 = tpu.matmul %134, %71, %cst_28 {dimension_numbers = #tpu.dot_dimension_numbers<[1], [0], [0], [1], [0, 0, 1, 1], [], []>} : vector<8x256xbf16>, vector<256x384xbf16>, vector<8x384xf32> -> vector<8x384xf32>
    %136 = vector.broadcast %132 : vector<8x1xf32> to vector<8x384xf32>
    %137 = arith.mulf %135, %136 : vector<8x384xf32>
    %138 = vector.extract_strided_slice %0 {offsets = [0, 49], sizes = [8, 1], strides = [1, 1]} : vector<8x64xf32> to vector<8x1xf32>
    %139 = vector.extract_strided_slice %70 {offsets = [0, 2816], sizes = [8, 256], strides = [1, 1]} : vector<8x3328xf32> to vector<8x256xf32>
    %140 = arith.truncf %139 : vector<8x256xf32> to vector<8x256xbf16>
    %cst_29 = arith.constant dense<0.000000e+00> : vector<8x384xf32>
    %141 = tpu.matmul %140, %71, %cst_29 {dimension_numbers = #tpu.dot_dimension_numbers<[1], [0], [0], [1], [0, 0, 1, 1], [], []>} : vector<8x256xbf16>, vector<256x384xbf16>, vector<8x384xf32> -> vector<8x384xf32>
    %142 = vector.broadcast %138 : vector<8x1xf32> to vector<8x384xf32>
    %143 = arith.mulf %141, %142 : vector<8x384xf32>
    %144 = vector.extract_strided_slice %0 {offsets = [0, 50], sizes = [8, 1], strides = [1, 1]} : vector<8x64xf32> to vector<8x1xf32>
    %145 = vector.extract_strided_slice %70 {offsets = [0, 3072], sizes = [8, 256], strides = [1, 1]} : vector<8x3328xf32> to vector<8x256xf32>
    %146 = arith.truncf %145 : vector<8x256xf32> to vector<8x256xbf16>
    %cst_30 = arith.constant dense<0.000000e+00> : vector<8x384xf32>
    %147 = tpu.matmul %146, %71, %cst_30 {dimension_numbers = #tpu.dot_dimension_numbers<[1], [0], [0], [1], [0, 0, 1, 1], [], []>} : vector<8x256xbf16>, vector<256x384xbf16>, vector<8x384xf32> -> vector<8x384xf32>
    %148 = vector.broadcast %144 : vector<8x1xf32> to vector<8x384xf32>
    %149 = arith.mulf %147, %148 : vector<8x384xf32>
    %c0_31 = arith.constant 0 : index
    %c0_32 = arith.constant 0 : index
    %150 = vector.load %arg4[%c0_31, %c0_32] : memref<1x64xf32, #tpu.memory_space<vmem>>, vector<1x64xf32>
    %151 = vector.extract_strided_slice %70 {offsets = [0, 0], sizes = [8, 64], strides = [1, 1]} : vector<8x3328xf32> to vector<8x64xf32>
    %cst_33 = arith.constant 8.000000e-01 : f32
    %152 = vector.broadcast %cst_33 : f32 to vector<8x1xf32>
    %153 = arith.mulf %72, %152 : vector<8x1xf32>
    %154 = vector.broadcast %153 : vector<8x1xf32> to vector<8x64xf32>
    %155 = arith.mulf %151, %154 : vector<8x64xf32>
    %156 = vector.extract_strided_slice %77 {offsets = [0, 0], sizes = [8, 64], strides = [1, 1]} : vector<8x384xf32> to vector<8x64xf32>
    %157 = vector.extract_strided_slice %83 {offsets = [0, 64], sizes = [8, 64], strides = [1, 1]} : vector<8x384xf32> to vector<8x64xf32>
    %158 = vector.extract_strided_slice %89 {offsets = [0, 64], sizes = [8, 64], strides = [1, 1]} : vector<8x384xf32> to vector<8x64xf32>
    %159 = arith.maximumf %157, %158 : vector<8x64xf32>
    %160 = vector.extract_strided_slice %107 {offsets = [0, 64], sizes = [8, 64], strides = [1, 1]} : vector<8x384xf32> to vector<8x64xf32>
    %161 = arith.maximumf %159, %160 : vector<8x64xf32>
    %162 = vector.extract_strided_slice %113 {offsets = [0, 64], sizes = [8, 64], strides = [1, 1]} : vector<8x384xf32> to vector<8x64xf32>
    %163 = arith.maximumf %161, %162 : vector<8x64xf32>
    %164 = vector.extract_strided_slice %95 {offsets = [0, 64], sizes = [8, 64], strides = [1, 1]} : vector<8x384xf32> to vector<8x64xf32>
    %165 = arith.maximumf %163, %164 : vector<8x64xf32>
    %166 = vector.extract_strided_slice %101 {offsets = [0, 64], sizes = [8, 64], strides = [1, 1]} : vector<8x384xf32> to vector<8x64xf32>
    %167 = arith.maximumf %165, %166 : vector<8x64xf32>
    %168 = vector.extract_strided_slice %119 {offsets = [0, 64], sizes = [8, 64], strides = [1, 1]} : vector<8x384xf32> to vector<8x64xf32>
    %169 = arith.maximumf %167, %168 : vector<8x64xf32>
    %170 = vector.extract_strided_slice %125 {offsets = [0, 64], sizes = [8, 64], strides = [1, 1]} : vector<8x384xf32> to vector<8x64xf32>
    %171 = arith.maximumf %169, %170 : vector<8x64xf32>
    %172 = vector.broadcast %150 : vector<1x64xf32> to vector<8x64xf32>
    %173 = arith.addf %156, %172 : vector<8x64xf32>
    %174 = arith.addf %173, %171 : vector<8x64xf32>
    %cst_34 = arith.constant 0.000000e+00 : f32
    %175 = vector.broadcast %cst_34 : f32 to vector<8x64xf32>
    %176 = arith.maximumf %174, %175 : vector<8x64xf32>
    %177 = vector.extract_strided_slice %70 {offsets = [0, 256], sizes = [8, 64], strides = [1, 1]} : vector<8x3328xf32> to vector<8x64xf32>
    %cst_35 = arith.constant 8.000000e-01 : f32
    %178 = vector.broadcast %cst_35 : f32 to vector<8x1xf32>
    %179 = arith.mulf %78, %178 : vector<8x1xf32>
    %180 = vector.broadcast %179 : vector<8x1xf32> to vector<8x64xf32>
    %181 = arith.mulf %177, %180 : vector<8x64xf32>
    %182 = arith.addf %155, %181 : vector<8x64xf32>
    %183 = vector.extract_strided_slice %83 {offsets = [0, 0], sizes = [8, 64], strides = [1, 1]} : vector<8x384xf32> to vector<8x64xf32>
    %184 = vector.extract_strided_slice %77 {offsets = [0, 64], sizes = [8, 64], strides = [1, 1]} : vector<8x384xf32> to vector<8x64xf32>
    %185 = vector.extract_strided_slice %89 {offsets = [0, 64], sizes = [8, 64], strides = [1, 1]} : vector<8x384xf32> to vector<8x64xf32>
    %186 = arith.maximumf %184, %185 : vector<8x64xf32>
    %187 = vector.extract_strided_slice %107 {offsets = [0, 64], sizes = [8, 64], strides = [1, 1]} : vector<8x384xf32> to vector<8x64xf32>
    %188 = arith.maximumf %186, %187 : vector<8x64xf32>
    %189 = vector.extract_strided_slice %113 {offsets = [0, 64], sizes = [8, 64], strides = [1, 1]} : vector<8x384xf32> to vector<8x64xf32>
    %190 = arith.maximumf %188, %189 : vector<8x64xf32>
    %191 = vector.extract_strided_slice %95 {offsets = [0, 64], sizes = [8, 64], strides = [1, 1]} : vector<8x384xf32> to vector<8x64xf32>
    %192 = arith.maximumf %190, %191 : vector<8x64xf32>
    %193 = vector.extract_strided_slice %101 {offsets = [0, 64], sizes = [8, 64], strides = [1, 1]} : vector<8x384xf32> to vector<8x64xf32>
    %194 = arith.maximumf %192, %193 : vector<8x64xf32>
    %195 = vector.extract_strided_slice %119 {offsets = [0, 64], sizes = [8, 64], strides = [1, 1]} : vector<8x384xf32> to vector<8x64xf32>
    %196 = arith.maximumf %194, %195 : vector<8x64xf32>
    %197 = vector.extract_strided_slice %125 {offsets = [0, 64], sizes = [8, 64], strides = [1, 1]} : vector<8x384xf32> to vector<8x64xf32>
    %198 = arith.maximumf %196, %197 : vector<8x64xf32>
    %199 = vector.broadcast %150 : vector<1x64xf32> to vector<8x64xf32>
    %200 = arith.addf %183, %199 : vector<8x64xf32>
    %201 = arith.addf %200, %198 : vector<8x64xf32>
    %cst_36 = arith.constant 0.000000e+00 : f32
    %202 = vector.broadcast %cst_36 : f32 to vector<8x64xf32>
    %203 = arith.maximumf %201, %202 : vector<8x64xf32>
    %204 = arith.addf %176, %203 : vector<8x64xf32>
    %205 = vector.extract_strided_slice %70 {offsets = [0, 512], sizes = [8, 64], strides = [1, 1]} : vector<8x3328xf32> to vector<8x64xf32>
    %cst_37 = arith.constant 8.000000e-01 : f32
    %206 = vector.broadcast %cst_37 : f32 to vector<8x1xf32>
    %207 = arith.mulf %84, %206 : vector<8x1xf32>
    %208 = vector.broadcast %207 : vector<8x1xf32> to vector<8x64xf32>
    %209 = arith.mulf %205, %208 : vector<8x64xf32>
    %210 = arith.addf %182, %209 : vector<8x64xf32>
    %211 = vector.extract_strided_slice %89 {offsets = [0, 0], sizes = [8, 64], strides = [1, 1]} : vector<8x384xf32> to vector<8x64xf32>
    %212 = vector.extract_strided_slice %77 {offsets = [0, 64], sizes = [8, 64], strides = [1, 1]} : vector<8x384xf32> to vector<8x64xf32>
    %213 = vector.extract_strided_slice %83 {offsets = [0, 64], sizes = [8, 64], strides = [1, 1]} : vector<8x384xf32> to vector<8x64xf32>
    %214 = arith.maximumf %212, %213 : vector<8x64xf32>
    %215 = vector.extract_strided_slice %107 {offsets = [0, 64], sizes = [8, 64], strides = [1, 1]} : vector<8x384xf32> to vector<8x64xf32>
    %216 = arith.maximumf %214, %215 : vector<8x64xf32>
    %217 = vector.extract_strided_slice %113 {offsets = [0, 64], sizes = [8, 64], strides = [1, 1]} : vector<8x384xf32> to vector<8x64xf32>
    %218 = arith.maximumf %216, %217 : vector<8x64xf32>
    %219 = vector.extract_strided_slice %95 {offsets = [0, 64], sizes = [8, 64], strides = [1, 1]} : vector<8x384xf32> to vector<8x64xf32>
    %220 = arith.maximumf %218, %219 : vector<8x64xf32>
    %221 = vector.extract_strided_slice %101 {offsets = [0, 64], sizes = [8, 64], strides = [1, 1]} : vector<8x384xf32> to vector<8x64xf32>
    %222 = arith.maximumf %220, %221 : vector<8x64xf32>
    %223 = vector.extract_strided_slice %119 {offsets = [0, 64], sizes = [8, 64], strides = [1, 1]} : vector<8x384xf32> to vector<8x64xf32>
    %224 = arith.maximumf %222, %223 : vector<8x64xf32>
    %225 = vector.extract_strided_slice %125 {offsets = [0, 64], sizes = [8, 64], strides = [1, 1]} : vector<8x384xf32> to vector<8x64xf32>
    %226 = arith.maximumf %224, %225 : vector<8x64xf32>
    %227 = vector.broadcast %150 : vector<1x64xf32> to vector<8x64xf32>
    %228 = arith.addf %211, %227 : vector<8x64xf32>
    %229 = arith.addf %228, %226 : vector<8x64xf32>
    %cst_38 = arith.constant 0.000000e+00 : f32
    %230 = vector.broadcast %cst_38 : f32 to vector<8x64xf32>
    %231 = arith.maximumf %229, %230 : vector<8x64xf32>
    %232 = arith.addf %204, %231 : vector<8x64xf32>
    %233 = vector.extract_strided_slice %70 {offsets = [0, 768], sizes = [8, 64], strides = [1, 1]} : vector<8x3328xf32> to vector<8x64xf32>
    %cst_39 = arith.constant 8.000000e-01 : f32
    %234 = vector.broadcast %cst_39 : f32 to vector<8x1xf32>
    %235 = arith.mulf %90, %234 : vector<8x1xf32>
    %236 = vector.broadcast %235 : vector<8x1xf32> to vector<8x64xf32>
    %237 = arith.mulf %233, %236 : vector<8x64xf32>
    %238 = arith.addf %210, %237 : vector<8x64xf32>
    %239 = vector.extract_strided_slice %95 {offsets = [0, 0], sizes = [8, 64], strides = [1, 1]} : vector<8x384xf32> to vector<8x64xf32>
    %240 = vector.extract_strided_slice %77 {offsets = [0, 64], sizes = [8, 64], strides = [1, 1]} : vector<8x384xf32> to vector<8x64xf32>
    %241 = vector.extract_strided_slice %83 {offsets = [0, 64], sizes = [8, 64], strides = [1, 1]} : vector<8x384xf32> to vector<8x64xf32>
    %242 = arith.maximumf %240, %241 : vector<8x64xf32>
    %243 = vector.extract_strided_slice %89 {offsets = [0, 64], sizes = [8, 64], strides = [1, 1]} : vector<8x384xf32> to vector<8x64xf32>
    %244 = arith.maximumf %242, %243 : vector<8x64xf32>
    %245 = vector.extract_strided_slice %107 {offsets = [0, 64], sizes = [8, 64], strides = [1, 1]} : vector<8x384xf32> to vector<8x64xf32>
    %246 = arith.maximumf %244, %245 : vector<8x64xf32>
    %247 = vector.extract_strided_slice %113 {offsets = [0, 64], sizes = [8, 64], strides = [1, 1]} : vector<8x384xf32> to vector<8x64xf32>
    %248 = arith.maximumf %246, %247 : vector<8x64xf32>
    %249 = vector.extract_strided_slice %101 {offsets = [0, 64], sizes = [8, 64], strides = [1, 1]} : vector<8x384xf32> to vector<8x64xf32>
    %250 = arith.maximumf %248, %249 : vector<8x64xf32>
    %251 = vector.extract_strided_slice %119 {offsets = [0, 64], sizes = [8, 64], strides = [1, 1]} : vector<8x384xf32> to vector<8x64xf32>
    %252 = arith.maximumf %250, %251 : vector<8x64xf32>
    %253 = vector.extract_strided_slice %125 {offsets = [0, 64], sizes = [8, 64], strides = [1, 1]} : vector<8x384xf32> to vector<8x64xf32>
    %254 = arith.maximumf %252, %253 : vector<8x64xf32>
    %255 = vector.broadcast %150 : vector<1x64xf32> to vector<8x64xf32>
    %256 = arith.addf %239, %255 : vector<8x64xf32>
    %257 = arith.addf %256, %254 : vector<8x64xf32>
    %cst_40 = arith.constant 0.000000e+00 : f32
    %258 = vector.broadcast %cst_40 : f32 to vector<8x64xf32>
    %259 = arith.maximumf %257, %258 : vector<8x64xf32>
    %260 = arith.addf %232, %259 : vector<8x64xf32>
    %261 = vector.extract_strided_slice %70 {offsets = [0, 1024], sizes = [8, 64], strides = [1, 1]} : vector<8x3328xf32> to vector<8x64xf32>
    %cst_41 = arith.constant 8.000000e-01 : f32
    %262 = vector.broadcast %cst_41 : f32 to vector<8x1xf32>
    %263 = arith.mulf %96, %262 : vector<8x1xf32>
    %264 = vector.broadcast %263 : vector<8x1xf32> to vector<8x64xf32>
    %265 = arith.mulf %261, %264 : vector<8x64xf32>
    %266 = arith.addf %238, %265 : vector<8x64xf32>
    %267 = vector.extract_strided_slice %101 {offsets = [0, 0], sizes = [8, 64], strides = [1, 1]} : vector<8x384xf32> to vector<8x64xf32>
    %268 = vector.extract_strided_slice %77 {offsets = [0, 64], sizes = [8, 64], strides = [1, 1]} : vector<8x384xf32> to vector<8x64xf32>
    %269 = vector.extract_strided_slice %83 {offsets = [0, 64], sizes = [8, 64], strides = [1, 1]} : vector<8x384xf32> to vector<8x64xf32>
    %270 = arith.maximumf %268, %269 : vector<8x64xf32>
    %271 = vector.extract_strided_slice %89 {offsets = [0, 64], sizes = [8, 64], strides = [1, 1]} : vector<8x384xf32> to vector<8x64xf32>
    %272 = arith.maximumf %270, %271 : vector<8x64xf32>
    %273 = vector.extract_strided_slice %107 {offsets = [0, 64], sizes = [8, 64], strides = [1, 1]} : vector<8x384xf32> to vector<8x64xf32>
    %274 = arith.maximumf %272, %273 : vector<8x64xf32>
    %275 = vector.extract_strided_slice %113 {offsets = [0, 64], sizes = [8, 64], strides = [1, 1]} : vector<8x384xf32> to vector<8x64xf32>
    %276 = arith.maximumf %274, %275 : vector<8x64xf32>
    %277 = vector.extract_strided_slice %95 {offsets = [0, 64], sizes = [8, 64], strides = [1, 1]} : vector<8x384xf32> to vector<8x64xf32>
    %278 = arith.maximumf %276, %277 : vector<8x64xf32>
    %279 = vector.extract_strided_slice %119 {offsets = [0, 64], sizes = [8, 64], strides = [1, 1]} : vector<8x384xf32> to vector<8x64xf32>
    %280 = arith.maximumf %278, %279 : vector<8x64xf32>
    %281 = vector.extract_strided_slice %125 {offsets = [0, 64], sizes = [8, 64], strides = [1, 1]} : vector<8x384xf32> to vector<8x64xf32>
    %282 = arith.maximumf %280, %281 : vector<8x64xf32>
    %283 = vector.broadcast %150 : vector<1x64xf32> to vector<8x64xf32>
    %284 = arith.addf %267, %283 : vector<8x64xf32>
    %285 = arith.addf %284, %282 : vector<8x64xf32>
    %cst_42 = arith.constant 0.000000e+00 : f32
    %286 = vector.broadcast %cst_42 : f32 to vector<8x64xf32>
    %287 = arith.maximumf %285, %286 : vector<8x64xf32>
    %288 = arith.addf %260, %287 : vector<8x64xf32>
    %cst_43 = arith.constant 2.000000e-01 : f32
    %289 = vector.broadcast %cst_43 : f32 to vector<8x64xf32>
    %290 = arith.mulf %288, %289 : vector<8x64xf32>
    %291 = vector.extract_strided_slice %70 {offsets = [0, 1344], sizes = [8, 64], strides = [1, 1]} : vector<8x3328xf32> to vector<8x64xf32>
    %cst_44 = arith.constant 7.500000e-01 : f32
    %292 = vector.broadcast %cst_44 : f32 to vector<8x1xf32>
    %293 = arith.mulf %102, %292 : vector<8x1xf32>
    %294 = vector.broadcast %293 : vector<8x1xf32> to vector<8x64xf32>
    %295 = arith.mulf %291, %294 : vector<8x64xf32>
    %296 = vector.extract_strided_slice %107 {offsets = [0, 128], sizes = [8, 64], strides = [1, 1]} : vector<8x384xf32> to vector<8x64xf32>
    %297 = vector.extract_strided_slice %77 {offsets = [0, 192], sizes = [8, 64], strides = [1, 1]} : vector<8x384xf32> to vector<8x64xf32>
    %298 = vector.extract_strided_slice %83 {offsets = [0, 192], sizes = [8, 64], strides = [1, 1]} : vector<8x384xf32> to vector<8x64xf32>
    %299 = arith.maximumf %297, %298 : vector<8x64xf32>
    %300 = vector.extract_strided_slice %89 {offsets = [0, 192], sizes = [8, 64], strides = [1, 1]} : vector<8x384xf32> to vector<8x64xf32>
    %301 = arith.maximumf %299, %300 : vector<8x64xf32>
    %302 = vector.extract_strided_slice %113 {offsets = [0, 192], sizes = [8, 64], strides = [1, 1]} : vector<8x384xf32> to vector<8x64xf32>
    %303 = arith.maximumf %301, %302 : vector<8x64xf32>
    %304 = vector.extract_strided_slice %131 {offsets = [0, 192], sizes = [8, 64], strides = [1, 1]} : vector<8x384xf32> to vector<8x64xf32>
    %305 = arith.maximumf %303, %304 : vector<8x64xf32>
    %306 = vector.extract_strided_slice %137 {offsets = [0, 192], sizes = [8, 64], strides = [1, 1]} : vector<8x384xf32> to vector<8x64xf32>
    %307 = arith.maximumf %305, %306 : vector<8x64xf32>
    %308 = vector.extract_strided_slice %95 {offsets = [0, 192], sizes = [8, 64], strides = [1, 1]} : vector<8x384xf32> to vector<8x64xf32>
    %309 = arith.maximumf %307, %308 : vector<8x64xf32>
    %310 = vector.extract_strided_slice %101 {offsets = [0, 192], sizes = [8, 64], strides = [1, 1]} : vector<8x384xf32> to vector<8x64xf32>
    %311 = arith.maximumf %309, %310 : vector<8x64xf32>
    %312 = vector.extract_strided_slice %119 {offsets = [0, 192], sizes = [8, 64], strides = [1, 1]} : vector<8x384xf32> to vector<8x64xf32>
    %313 = arith.maximumf %311, %312 : vector<8x64xf32>
    %314 = vector.extract_strided_slice %125 {offsets = [0, 192], sizes = [8, 64], strides = [1, 1]} : vector<8x384xf32> to vector<8x64xf32>
    %315 = arith.maximumf %313, %314 : vector<8x64xf32>
    %316 = vector.extract_strided_slice %143 {offsets = [0, 192], sizes = [8, 64], strides = [1, 1]} : vector<8x384xf32> to vector<8x64xf32>
    %317 = arith.maximumf %315, %316 : vector<8x64xf32>
    %318 = vector.extract_strided_slice %149 {offsets = [0, 192], sizes = [8, 64], strides = [1, 1]} : vector<8x384xf32> to vector<8x64xf32>
    %319 = arith.maximumf %317, %318 : vector<8x64xf32>
    %320 = vector.broadcast %150 : vector<1x64xf32> to vector<8x64xf32>
    %321 = arith.addf %296, %320 : vector<8x64xf32>
    %322 = arith.addf %321, %319 : vector<8x64xf32>
    %cst_45 = arith.constant 0.000000e+00 : f32
    %323 = vector.broadcast %cst_45 : f32 to vector<8x64xf32>
    %324 = arith.maximumf %322, %323 : vector<8x64xf32>
    %325 = vector.extract_strided_slice %70 {offsets = [0, 1600], sizes = [8, 64], strides = [1, 1]} : vector<8x3328xf32> to vector<8x64xf32>
    %cst_46 = arith.constant 7.500000e-01 : f32
    %326 = vector.broadcast %cst_46 : f32 to vector<8x1xf32>
    %327 = arith.mulf %108, %326 : vector<8x1xf32>
    %328 = vector.broadcast %327 : vector<8x1xf32> to vector<8x64xf32>
    %329 = arith.mulf %325, %328 : vector<8x64xf32>
    %330 = arith.addf %295, %329 : vector<8x64xf32>
    %331 = vector.extract_strided_slice %113 {offsets = [0, 128], sizes = [8, 64], strides = [1, 1]} : vector<8x384xf32> to vector<8x64xf32>
    %332 = vector.extract_strided_slice %77 {offsets = [0, 192], sizes = [8, 64], strides = [1, 1]} : vector<8x384xf32> to vector<8x64xf32>
    %333 = vector.extract_strided_slice %83 {offsets = [0, 192], sizes = [8, 64], strides = [1, 1]} : vector<8x384xf32> to vector<8x64xf32>
    %334 = arith.maximumf %332, %333 : vector<8x64xf32>
    %335 = vector.extract_strided_slice %89 {offsets = [0, 192], sizes = [8, 64], strides = [1, 1]} : vector<8x384xf32> to vector<8x64xf32>
    %336 = arith.maximumf %334, %335 : vector<8x64xf32>
    %337 = vector.extract_strided_slice %107 {offsets = [0, 192], sizes = [8, 64], strides = [1, 1]} : vector<8x384xf32> to vector<8x64xf32>
    %338 = arith.maximumf %336, %337 : vector<8x64xf32>
    %339 = vector.extract_strided_slice %131 {offsets = [0, 192], sizes = [8, 64], strides = [1, 1]} : vector<8x384xf32> to vector<8x64xf32>
    %340 = arith.maximumf %338, %339 : vector<8x64xf32>
    %341 = vector.extract_strided_slice %137 {offsets = [0, 192], sizes = [8, 64], strides = [1, 1]} : vector<8x384xf32> to vector<8x64xf32>
    %342 = arith.maximumf %340, %341 : vector<8x64xf32>
    %343 = vector.extract_strided_slice %95 {offsets = [0, 192], sizes = [8, 64], strides = [1, 1]} : vector<8x384xf32> to vector<8x64xf32>
    %344 = arith.maximumf %342, %343 : vector<8x64xf32>
    %345 = vector.extract_strided_slice %101 {offsets = [0, 192], sizes = [8, 64], strides = [1, 1]} : vector<8x384xf32> to vector<8x64xf32>
    %346 = arith.maximumf %344, %345 : vector<8x64xf32>
    %347 = vector.extract_strided_slice %119 {offsets = [0, 192], sizes = [8, 64], strides = [1, 1]} : vector<8x384xf32> to vector<8x64xf32>
    %348 = arith.maximumf %346, %347 : vector<8x64xf32>
    %349 = vector.extract_strided_slice %125 {offsets = [0, 192], sizes = [8, 64], strides = [1, 1]} : vector<8x384xf32> to vector<8x64xf32>
    %350 = arith.maximumf %348, %349 : vector<8x64xf32>
    %351 = vector.extract_strided_slice %143 {offsets = [0, 192], sizes = [8, 64], strides = [1, 1]} : vector<8x384xf32> to vector<8x64xf32>
    %352 = arith.maximumf %350, %351 : vector<8x64xf32>
    %353 = vector.extract_strided_slice %149 {offsets = [0, 192], sizes = [8, 64], strides = [1, 1]} : vector<8x384xf32> to vector<8x64xf32>
    %354 = arith.maximumf %352, %353 : vector<8x64xf32>
    %355 = vector.broadcast %150 : vector<1x64xf32> to vector<8x64xf32>
    %356 = arith.addf %331, %355 : vector<8x64xf32>
    %357 = arith.addf %356, %354 : vector<8x64xf32>
    %cst_47 = arith.constant 0.000000e+00 : f32
    %358 = vector.broadcast %cst_47 : f32 to vector<8x64xf32>
    %359 = arith.maximumf %357, %358 : vector<8x64xf32>
    %360 = arith.addf %324, %359 : vector<8x64xf32>
    %361 = vector.extract_strided_slice %70 {offsets = [0, 1856], sizes = [8, 64], strides = [1, 1]} : vector<8x3328xf32> to vector<8x64xf32>
    %cst_48 = arith.constant 7.500000e-01 : f32
    %362 = vector.broadcast %cst_48 : f32 to vector<8x1xf32>
    %363 = arith.mulf %114, %362 : vector<8x1xf32>
    %364 = vector.broadcast %363 : vector<8x1xf32> to vector<8x64xf32>
    %365 = arith.mulf %361, %364 : vector<8x64xf32>
    %366 = arith.addf %330, %365 : vector<8x64xf32>
    %367 = vector.extract_strided_slice %119 {offsets = [0, 128], sizes = [8, 64], strides = [1, 1]} : vector<8x384xf32> to vector<8x64xf32>
    %368 = vector.extract_strided_slice %77 {offsets = [0, 192], sizes = [8, 64], strides = [1, 1]} : vector<8x384xf32> to vector<8x64xf32>
    %369 = vector.extract_strided_slice %83 {offsets = [0, 192], sizes = [8, 64], strides = [1, 1]} : vector<8x384xf32> to vector<8x64xf32>
    %370 = arith.maximumf %368, %369 : vector<8x64xf32>
    %371 = vector.extract_strided_slice %89 {offsets = [0, 192], sizes = [8, 64], strides = [1, 1]} : vector<8x384xf32> to vector<8x64xf32>
    %372 = arith.maximumf %370, %371 : vector<8x64xf32>
    %373 = vector.extract_strided_slice %107 {offsets = [0, 192], sizes = [8, 64], strides = [1, 1]} : vector<8x384xf32> to vector<8x64xf32>
    %374 = arith.maximumf %372, %373 : vector<8x64xf32>
    %375 = vector.extract_strided_slice %113 {offsets = [0, 192], sizes = [8, 64], strides = [1, 1]} : vector<8x384xf32> to vector<8x64xf32>
    %376 = arith.maximumf %374, %375 : vector<8x64xf32>
    %377 = vector.extract_strided_slice %131 {offsets = [0, 192], sizes = [8, 64], strides = [1, 1]} : vector<8x384xf32> to vector<8x64xf32>
    %378 = arith.maximumf %376, %377 : vector<8x64xf32>
    %379 = vector.extract_strided_slice %137 {offsets = [0, 192], sizes = [8, 64], strides = [1, 1]} : vector<8x384xf32> to vector<8x64xf32>
    %380 = arith.maximumf %378, %379 : vector<8x64xf32>
    %381 = vector.extract_strided_slice %95 {offsets = [0, 192], sizes = [8, 64], strides = [1, 1]} : vector<8x384xf32> to vector<8x64xf32>
    %382 = arith.maximumf %380, %381 : vector<8x64xf32>
    %383 = vector.extract_strided_slice %101 {offsets = [0, 192], sizes = [8, 64], strides = [1, 1]} : vector<8x384xf32> to vector<8x64xf32>
    %384 = arith.maximumf %382, %383 : vector<8x64xf32>
    %385 = vector.extract_strided_slice %125 {offsets = [0, 192], sizes = [8, 64], strides = [1, 1]} : vector<8x384xf32> to vector<8x64xf32>
    %386 = arith.maximumf %384, %385 : vector<8x64xf32>
    %387 = vector.extract_strided_slice %143 {offsets = [0, 192], sizes = [8, 64], strides = [1, 1]} : vector<8x384xf32> to vector<8x64xf32>
    %388 = arith.maximumf %386, %387 : vector<8x64xf32>
    %389 = vector.extract_strided_slice %149 {offsets = [0, 192], sizes = [8, 64], strides = [1, 1]} : vector<8x384xf32> to vector<8x64xf32>
    %390 = arith.maximumf %388, %389 : vector<8x64xf32>
    %391 = vector.broadcast %150 : vector<1x64xf32> to vector<8x64xf32>
    %392 = arith.addf %367, %391 : vector<8x64xf32>
    %393 = arith.addf %392, %390 : vector<8x64xf32>
    %cst_49 = arith.constant 0.000000e+00 : f32
    %394 = vector.broadcast %cst_49 : f32 to vector<8x64xf32>
    %395 = arith.maximumf %393, %394 : vector<8x64xf32>
    %396 = arith.addf %360, %395 : vector<8x64xf32>
    %397 = vector.extract_strided_slice %70 {offsets = [0, 2112], sizes = [8, 64], strides = [1, 1]} : vector<8x3328xf32> to vector<8x64xf32>
    %cst_50 = arith.constant 7.500000e-01 : f32
    %398 = vector.broadcast %cst_50 : f32 to vector<8x1xf32>
    %399 = arith.mulf %120, %398 : vector<8x1xf32>
    %400 = vector.broadcast %399 : vector<8x1xf32> to vector<8x64xf32>
    %401 = arith.mulf %397, %400 : vector<8x64xf32>
    %402 = arith.addf %366, %401 : vector<8x64xf32>
    %403 = vector.extract_strided_slice %125 {offsets = [0, 128], sizes = [8, 64], strides = [1, 1]} : vector<8x384xf32> to vector<8x64xf32>
    %404 = vector.extract_strided_slice %77 {offsets = [0, 192], sizes = [8, 64], strides = [1, 1]} : vector<8x384xf32> to vector<8x64xf32>
    %405 = vector.extract_strided_slice %83 {offsets = [0, 192], sizes = [8, 64], strides = [1, 1]} : vector<8x384xf32> to vector<8x64xf32>
    %406 = arith.maximumf %404, %405 : vector<8x64xf32>
    %407 = vector.extract_strided_slice %89 {offsets = [0, 192], sizes = [8, 64], strides = [1, 1]} : vector<8x384xf32> to vector<8x64xf32>
    %408 = arith.maximumf %406, %407 : vector<8x64xf32>
    %409 = vector.extract_strided_slice %107 {offsets = [0, 192], sizes = [8, 64], strides = [1, 1]} : vector<8x384xf32> to vector<8x64xf32>
    %410 = arith.maximumf %408, %409 : vector<8x64xf32>
    %411 = vector.extract_strided_slice %113 {offsets = [0, 192], sizes = [8, 64], strides = [1, 1]} : vector<8x384xf32> to vector<8x64xf32>
    %412 = arith.maximumf %410, %411 : vector<8x64xf32>
    %413 = vector.extract_strided_slice %131 {offsets = [0, 192], sizes = [8, 64], strides = [1, 1]} : vector<8x384xf32> to vector<8x64xf32>
    %414 = arith.maximumf %412, %413 : vector<8x64xf32>
    %415 = vector.extract_strided_slice %137 {offsets = [0, 192], sizes = [8, 64], strides = [1, 1]} : vector<8x384xf32> to vector<8x64xf32>
    %416 = arith.maximumf %414, %415 : vector<8x64xf32>
    %417 = vector.extract_strided_slice %95 {offsets = [0, 192], sizes = [8, 64], strides = [1, 1]} : vector<8x384xf32> to vector<8x64xf32>
    %418 = arith.maximumf %416, %417 : vector<8x64xf32>
    %419 = vector.extract_strided_slice %101 {offsets = [0, 192], sizes = [8, 64], strides = [1, 1]} : vector<8x384xf32> to vector<8x64xf32>
    %420 = arith.maximumf %418, %419 : vector<8x64xf32>
    %421 = vector.extract_strided_slice %119 {offsets = [0, 192], sizes = [8, 64], strides = [1, 1]} : vector<8x384xf32> to vector<8x64xf32>
    %422 = arith.maximumf %420, %421 : vector<8x64xf32>
    %423 = vector.extract_strided_slice %143 {offsets = [0, 192], sizes = [8, 64], strides = [1, 1]} : vector<8x384xf32> to vector<8x64xf32>
    %424 = arith.maximumf %422, %423 : vector<8x64xf32>
    %425 = vector.extract_strided_slice %149 {offsets = [0, 192], sizes = [8, 64], strides = [1, 1]} : vector<8x384xf32> to vector<8x64xf32>
    %426 = arith.maximumf %424, %425 : vector<8x64xf32>
    %427 = vector.broadcast %150 : vector<1x64xf32> to vector<8x64xf32>
    %428 = arith.addf %403, %427 : vector<8x64xf32>
    %429 = arith.addf %428, %426 : vector<8x64xf32>
    %cst_51 = arith.constant 0.000000e+00 : f32
    %430 = vector.broadcast %cst_51 : f32 to vector<8x64xf32>
    %431 = arith.maximumf %429, %430 : vector<8x64xf32>
    %432 = arith.addf %396, %431 : vector<8x64xf32>
    %cst_52 = arith.constant 2.500000e-01 : f32
    %433 = vector.broadcast %cst_52 : f32 to vector<8x64xf32>
    %434 = arith.mulf %432, %433 : vector<8x64xf32>
    %435 = vector.extract_strided_slice %70 {offsets = [0, 2432], sizes = [8, 64], strides = [1, 1]} : vector<8x3328xf32> to vector<8x64xf32>
    %cst_53 = arith.constant 7.500000e-01 : f32
    %436 = vector.broadcast %cst_53 : f32 to vector<8x1xf32>
    %437 = arith.mulf %126, %436 : vector<8x1xf32>
    %438 = vector.broadcast %437 : vector<8x1xf32> to vector<8x64xf32>
    %439 = arith.mulf %435, %438 : vector<8x64xf32>
    %440 = vector.extract_strided_slice %131 {offsets = [0, 256], sizes = [8, 64], strides = [1, 1]} : vector<8x384xf32> to vector<8x64xf32>
    %441 = vector.extract_strided_slice %107 {offsets = [0, 320], sizes = [8, 64], strides = [1, 1]} : vector<8x384xf32> to vector<8x64xf32>
    %442 = vector.extract_strided_slice %113 {offsets = [0, 320], sizes = [8, 64], strides = [1, 1]} : vector<8x384xf32> to vector<8x64xf32>
    %443 = arith.maximumf %441, %442 : vector<8x64xf32>
    %444 = vector.extract_strided_slice %137 {offsets = [0, 320], sizes = [8, 64], strides = [1, 1]} : vector<8x384xf32> to vector<8x64xf32>
    %445 = arith.maximumf %443, %444 : vector<8x64xf32>
    %446 = vector.extract_strided_slice %119 {offsets = [0, 320], sizes = [8, 64], strides = [1, 1]} : vector<8x384xf32> to vector<8x64xf32>
    %447 = arith.maximumf %445, %446 : vector<8x64xf32>
    %448 = vector.extract_strided_slice %125 {offsets = [0, 320], sizes = [8, 64], strides = [1, 1]} : vector<8x384xf32> to vector<8x64xf32>
    %449 = arith.maximumf %447, %448 : vector<8x64xf32>
    %450 = vector.extract_strided_slice %143 {offsets = [0, 320], sizes = [8, 64], strides = [1, 1]} : vector<8x384xf32> to vector<8x64xf32>
    %451 = arith.maximumf %449, %450 : vector<8x64xf32>
    %452 = vector.extract_strided_slice %149 {offsets = [0, 320], sizes = [8, 64], strides = [1, 1]} : vector<8x384xf32> to vector<8x64xf32>
    %453 = arith.maximumf %451, %452 : vector<8x64xf32>
    %454 = vector.broadcast %150 : vector<1x64xf32> to vector<8x64xf32>
    %455 = arith.addf %440, %454 : vector<8x64xf32>
    %456 = arith.addf %455, %453 : vector<8x64xf32>
    %cst_54 = arith.constant 0.000000e+00 : f32
    %457 = vector.broadcast %cst_54 : f32 to vector<8x64xf32>
    %458 = arith.maximumf %456, %457 : vector<8x64xf32>
    %459 = vector.extract_strided_slice %70 {offsets = [0, 2688], sizes = [8, 64], strides = [1, 1]} : vector<8x3328xf32> to vector<8x64xf32>
    %cst_55 = arith.constant 7.500000e-01 : f32
    %460 = vector.broadcast %cst_55 : f32 to vector<8x1xf32>
    %461 = arith.mulf %132, %460 : vector<8x1xf32>
    %462 = vector.broadcast %461 : vector<8x1xf32> to vector<8x64xf32>
    %463 = arith.mulf %459, %462 : vector<8x64xf32>
    %464 = arith.addf %439, %463 : vector<8x64xf32>
    %465 = vector.extract_strided_slice %137 {offsets = [0, 256], sizes = [8, 64], strides = [1, 1]} : vector<8x384xf32> to vector<8x64xf32>
    %466 = vector.extract_strided_slice %107 {offsets = [0, 320], sizes = [8, 64], strides = [1, 1]} : vector<8x384xf32> to vector<8x64xf32>
    %467 = vector.extract_strided_slice %113 {offsets = [0, 320], sizes = [8, 64], strides = [1, 1]} : vector<8x384xf32> to vector<8x64xf32>
    %468 = arith.maximumf %466, %467 : vector<8x64xf32>
    %469 = vector.extract_strided_slice %131 {offsets = [0, 320], sizes = [8, 64], strides = [1, 1]} : vector<8x384xf32> to vector<8x64xf32>
    %470 = arith.maximumf %468, %469 : vector<8x64xf32>
    %471 = vector.extract_strided_slice %119 {offsets = [0, 320], sizes = [8, 64], strides = [1, 1]} : vector<8x384xf32> to vector<8x64xf32>
    %472 = arith.maximumf %470, %471 : vector<8x64xf32>
    %473 = vector.extract_strided_slice %125 {offsets = [0, 320], sizes = [8, 64], strides = [1, 1]} : vector<8x384xf32> to vector<8x64xf32>
    %474 = arith.maximumf %472, %473 : vector<8x64xf32>
    %475 = vector.extract_strided_slice %143 {offsets = [0, 320], sizes = [8, 64], strides = [1, 1]} : vector<8x384xf32> to vector<8x64xf32>
    %476 = arith.maximumf %474, %475 : vector<8x64xf32>
    %477 = vector.extract_strided_slice %149 {offsets = [0, 320], sizes = [8, 64], strides = [1, 1]} : vector<8x384xf32> to vector<8x64xf32>
    %478 = arith.maximumf %476, %477 : vector<8x64xf32>
    %479 = vector.broadcast %150 : vector<1x64xf32> to vector<8x64xf32>
    %480 = arith.addf %465, %479 : vector<8x64xf32>
    %481 = arith.addf %480, %478 : vector<8x64xf32>
    %cst_56 = arith.constant 0.000000e+00 : f32
    %482 = vector.broadcast %cst_56 : f32 to vector<8x64xf32>
    %483 = arith.maximumf %481, %482 : vector<8x64xf32>
    %484 = arith.addf %458, %483 : vector<8x64xf32>
    %485 = vector.extract_strided_slice %70 {offsets = [0, 2944], sizes = [8, 64], strides = [1, 1]} : vector<8x3328xf32> to vector<8x64xf32>
    %cst_57 = arith.constant 7.500000e-01 : f32
    %486 = vector.broadcast %cst_57 : f32 to vector<8x1xf32>
    %487 = arith.mulf %138, %486 : vector<8x1xf32>
    %488 = vector.broadcast %487 : vector<8x1xf32> to vector<8x64xf32>
    %489 = arith.mulf %485, %488 : vector<8x64xf32>
    %490 = arith.addf %464, %489 : vector<8x64xf32>
    %491 = vector.extract_strided_slice %143 {offsets = [0, 256], sizes = [8, 64], strides = [1, 1]} : vector<8x384xf32> to vector<8x64xf32>
    %492 = vector.extract_strided_slice %107 {offsets = [0, 320], sizes = [8, 64], strides = [1, 1]} : vector<8x384xf32> to vector<8x64xf32>
    %493 = vector.extract_strided_slice %113 {offsets = [0, 320], sizes = [8, 64], strides = [1, 1]} : vector<8x384xf32> to vector<8x64xf32>
    %494 = arith.maximumf %492, %493 : vector<8x64xf32>
    %495 = vector.extract_strided_slice %131 {offsets = [0, 320], sizes = [8, 64], strides = [1, 1]} : vector<8x384xf32> to vector<8x64xf32>
    %496 = arith.maximumf %494, %495 : vector<8x64xf32>
    %497 = vector.extract_strided_slice %137 {offsets = [0, 320], sizes = [8, 64], strides = [1, 1]} : vector<8x384xf32> to vector<8x64xf32>
    %498 = arith.maximumf %496, %497 : vector<8x64xf32>
    %499 = vector.extract_strided_slice %119 {offsets = [0, 320], sizes = [8, 64], strides = [1, 1]} : vector<8x384xf32> to vector<8x64xf32>
    %500 = arith.maximumf %498, %499 : vector<8x64xf32>
    %501 = vector.extract_strided_slice %125 {offsets = [0, 320], sizes = [8, 64], strides = [1, 1]} : vector<8x384xf32> to vector<8x64xf32>
    %502 = arith.maximumf %500, %501 : vector<8x64xf32>
    %503 = vector.extract_strided_slice %149 {offsets = [0, 320], sizes = [8, 64], strides = [1, 1]} : vector<8x384xf32> to vector<8x64xf32>
    %504 = arith.maximumf %502, %503 : vector<8x64xf32>
    %505 = vector.broadcast %150 : vector<1x64xf32> to vector<8x64xf32>
    %506 = arith.addf %491, %505 : vector<8x64xf32>
    %507 = arith.addf %506, %504 : vector<8x64xf32>
    %cst_58 = arith.constant 0.000000e+00 : f32
    %508 = vector.broadcast %cst_58 : f32 to vector<8x64xf32>
    %509 = arith.maximumf %507, %508 : vector<8x64xf32>
    %510 = arith.addf %484, %509 : vector<8x64xf32>
    %511 = vector.extract_strided_slice %70 {offsets = [0, 3200], sizes = [8, 64], strides = [1, 1]} : vector<8x3328xf32> to vector<8x64xf32>
    %cst_59 = arith.constant 7.500000e-01 : f32
    %512 = vector.broadcast %cst_59 : f32 to vector<8x1xf32>
    %513 = arith.mulf %144, %512 : vector<8x1xf32>
    %514 = vector.broadcast %513 : vector<8x1xf32> to vector<8x64xf32>
    %515 = arith.mulf %511, %514 : vector<8x64xf32>
    %516 = arith.addf %490, %515 : vector<8x64xf32>
    %517 = vector.extract_strided_slice %149 {offsets = [0, 256], sizes = [8, 64], strides = [1, 1]} : vector<8x384xf32> to vector<8x64xf32>
    %518 = vector.extract_strided_slice %107 {offsets = [0, 320], sizes = [8, 64], strides = [1, 1]} : vector<8x384xf32> to vector<8x64xf32>
    %519 = vector.extract_strided_slice %113 {offsets = [0, 320], sizes = [8, 64], strides = [1, 1]} : vector<8x384xf32> to vector<8x64xf32>
    %520 = arith.maximumf %518, %519 : vector<8x64xf32>
    %521 = vector.extract_strided_slice %131 {offsets = [0, 320], sizes = [8, 64], strides = [1, 1]} : vector<8x384xf32> to vector<8x64xf32>
    %522 = arith.maximumf %520, %521 : vector<8x64xf32>
    %523 = vector.extract_strided_slice %137 {offsets = [0, 320], sizes = [8, 64], strides = [1, 1]} : vector<8x384xf32> to vector<8x64xf32>
    %524 = arith.maximumf %522, %523 : vector<8x64xf32>
    %525 = vector.extract_strided_slice %119 {offsets = [0, 320], sizes = [8, 64], strides = [1, 1]} : vector<8x384xf32> to vector<8x64xf32>
    %526 = arith.maximumf %524, %525 : vector<8x64xf32>
    %527 = vector.extract_strided_slice %125 {offsets = [0, 320], sizes = [8, 64], strides = [1, 1]} : vector<8x384xf32> to vector<8x64xf32>
    %528 = arith.maximumf %526, %527 : vector<8x64xf32>
    %529 = vector.extract_strided_slice %143 {offsets = [0, 320], sizes = [8, 64], strides = [1, 1]} : vector<8x384xf32> to vector<8x64xf32>
    %530 = arith.maximumf %528, %529 : vector<8x64xf32>
    %531 = vector.broadcast %150 : vector<1x64xf32> to vector<8x64xf32>
    %532 = arith.addf %517, %531 : vector<8x64xf32>
    %533 = arith.addf %532, %530 : vector<8x64xf32>
    %cst_60 = arith.constant 0.000000e+00 : f32
    %534 = vector.broadcast %cst_60 : f32 to vector<8x64xf32>
    %535 = arith.maximumf %533, %534 : vector<8x64xf32>
    %536 = arith.addf %510, %535 : vector<8x64xf32>
    %cst_61 = arith.constant 2.500000e-01 : f32
    %537 = vector.broadcast %cst_61 : f32 to vector<8x64xf32>
    %538 = arith.mulf %536, %537 : vector<8x64xf32>
    %539 = tpu.concatenate %266, %402, %516, %290, %434, %538 in 1 : vector<8x64xf32>, vector<8x64xf32>, vector<8x64xf32>, vector<8x64xf32>, vector<8x64xf32>, vector<8x64xf32> -> vector<8x384xf32>
    %540 = arith.truncf %539 : vector<8x384xf32> to vector<8x384xbf16>
    %c0_62 = arith.constant 0 : index
    %c0_63 = arith.constant 0 : index
    %541 = vector.load %arg5[%c0_62, %c0_63] : memref<384x128xbf16, #tpu.memory_space<vmem>>, vector<384x128xbf16>
    %cst_64 = arith.constant dense<0.000000e+00> : vector<8x128xf32>
    %542 = tpu.matmul %540, %541, %cst_64 {dimension_numbers = #tpu.dot_dimension_numbers<[1], [0], [0], [1], [0, 0, 1, 1], [], []>} : vector<8x384xbf16>, vector<384x128xbf16>, vector<8x128xf32> -> vector<8x128xf32>
    %c0_65 = arith.constant 0 : index
    %c0_66 = arith.constant 0 : index
    %543 = vector.load %arg6[%c0_65, %c0_66] : memref<1x128xf32, #tpu.memory_space<vmem>>, vector<1x128xf32>
    %544 = vector.broadcast %543 : vector<1x128xf32> to vector<8x128xf32>
    %545 = arith.addf %542, %544 : vector<8x128xf32>
    %546 = vector.extract_strided_slice %0 {offsets = [0, 51], sizes = [8, 1], strides = [1, 1]} : vector<8x64xf32> to vector<8x1xf32>
    %547 = vector.broadcast %546 : vector<8x1xf32> to vector<8x128xf32>
    %548 = arith.mulf %545, %547 : vector<8x128xf32>
    %c0_67 = arith.constant 0 : index
    %c0_68 = arith.constant 0 : index
    %549 = vector.load %arg7[%c0_67, %c0_68] : memref<8x128xf32, #tpu.memory_space<vmem>>, vector<8x128xf32>
    tpu.vector_store %arg7[%c0_67, %c0_68], %548 {strides = array<i32>} : memref<8x128xf32, #tpu.memory_space<vmem>>, vector<8x128xf32>,
    return
  }
  func.func @transform_0(%arg0: i32) -> (i32, i32) {
    %c0_i32 = arith.constant 0 : i32
    %c0_i32_0 = arith.constant 0 : i32
    return %arg0, %c0_i32 : i32, i32
  }
  func.func @transform_1(%arg0: i32) -> (i32, i32) {
    %c0_i32 = arith.constant 0 : i32
    %c0_i32_0 = arith.constant 0 : i32
    %c0_i32_1 = arith.constant 0 : i32
    return %c0_i32, %c0_i32_0 : i32, i32
  }
  func.func @transform_2(%arg0: i32) -> (i32, i32) {
    %c0_i32 = arith.constant 0 : i32
    %c0_i32_0 = arith.constant 0 : i32
    %c0_i32_1 = arith.constant 0 : i32
    return %c0_i32, %c0_i32_0 : i32, i32
  }
  func.func @transform_3(%arg0: i32) -> (i32, i32) {
    %c0_i32 = arith.constant 0 : i32
    %c0_i32_0 = arith.constant 0 : i32
    %c0_i32_1 = arith.constant 0 : i32
    return %c0_i32, %c0_i32_0 : i32, i32
  }
  func.func @transform_4(%arg0: i32) -> (i32, i32) {
    %c0_i32 = arith.constant 0 : i32
    %c0_i32_0 = arith.constant 0 : i32
    %c0_i32_1 = arith.constant 0 : i32
    return %c0_i32, %c0_i32_0 : i32, i32
  }
  func.func @transform_5(%arg0: i32) -> (i32, i32) {
    %c0_i32 = arith.constant 0 : i32
    %c0_i32_0 = arith.constant 0 : i32
    %c0_i32_1 = arith.constant 0 : i32
    return %c0_i32, %c0_i32_0 : i32, i32
  }
  func.func @transform_6(%arg0: i32) -> (i32, i32) {
    %c0_i32 = arith.constant 0 : i32
    %c0_i32_0 = arith.constant 0 : i32
    return %arg0, %c0_i32 : i32, i32
  }
}

</mosaic_0001>

<bundles_post_ra>
// kernel: forward.1
= control target key start
LH: loop header
LB: loop body
LE: loop exit
PB: predicated region body
PF: predicated region fallthrough
CT: control target
= control target key end

     0   :  { %11 = vsyncpa [#allocation3], 0  ;;  %s6098_s0 = inlined_call_operand.vmem [shape: f32[16,64], index: 0, kind: input, shape index: {}]   ;;  %s6099_s1 = inlined_call_operand.hbm [shape: bf16[64,3328], index: 1, kind: input, shape index: {}]   ;;  %s6100_s2 = inlined_call_operand.vmem [shape: bf16[256,384], index: 2, kind: input, shape index: {}]   ;;  %s6101_s3 = inlined_call_operand.vmem [shape: f32[1,64], index: 3, kind: input, shape index: {}]   ;;  %s6102_s4 = inlined_call_operand.hbm [shape: bf16[384,128], index: 4, kind: input, shape index: {}]   ;;  %s6103_s5 = inlined_call_operand.vmem [shape: f32[1,128], index: 5, kind: input, shape index: {}]   ;;  %s6104_s6 = inlined_call_operand.hbm [shape: f32[16,128], index: 6, kind: output, shape index: {}]  }
   0x1   :  { %12 = vsyncpa [#allocation6], 0 }
   0x2   :  { %13 = vsyncpa [#allocation4], 0 }
   0x3   :  { %15 = vsyncpa [#allocation4 + $0x1], 0  ;;  %s4458_s21 = smov 0   ;;  %s4460_s22 = smov 0  }
   0x4   :  { %s4462_s23 = smov 0   ;;  %s4464_s24 = smov 0  }
   0x5 LB: > { %s4479_s25 = sadd.s32 4294967295, %s4396_s24   ;;  %s3451_s26 = sadd.s32 4294967294, %s4396_s24   ;;  %s4396_s24 = sphi %s4464_s24, %s6258_s24   ;;  %s4392_s23 = sphi %s4462_s23, %s6257_s23   ;;  %s4388_s22 = sphi %s4460_s22, %s6256_s22   ;;  %s4384_s21 = sphi %s4458_s21, %s6255_s21  }
   0x6   : > { %s4483_s27 = sadd.s32 1, %s4396_s24   ;;  %s159_s28 = sadd.s32 1, %s4392_s23 }
   0x7   : > { %s156_s29 = ssub.s32 %s4396_s24, %s4483_s27  ;;  %p169_p0 = scmp.ne.s32.totalorder %s4392_s23, %s4388_s22 }
   0x8   : > { %p157_p1 = scmp.eq.s32.totalorder %s156_s29, 0  ;;  %p170_p2 = scmp.eq.s32.totalorder %s4479_s25, 1 }
   0x9   : > { %p175_p3 = scmp.ne.s32.totalorder %s4388_s22, %s4384_s21  ;;  %p176_p4 = scmp.eq.s32.totalorder %s3451_s26, 1 }
   0xa   : > { %s4494_s30 = scalar_select %p157_p1, %s4392_s23, %s159_s28  }
   0xb   : > { %p4496_p5 = por %p170_p2, %p169_p0  ;;  %p4500_p6 = por %p176_p4, %p175_p3 }
   0xc   : > { %p3452_p7 = scmp.ge.s32.totalorder %s4396_s24, 1  ;;  %p183_p8 = scmp.lt.s32.totalorder %s4396_s24, 3 }
   0xd   : > { %s6153_s8 = scalar_select %p4500_p6, 1, 0 }
   0xe   : > { %p6105_p9 = scmp.eq.s32.totalorder %s4479_s25, 0  ;;  %p4507_p10 = pnand %p3452_p7, %p183_p8 }
   0xf   : > { %s4398_s10 = smov [#allocation2]   ;;  %s4399_s13 = smov [#allocation5]  }
  0x10   : > { %s195_s11 = sshll.u32 %s4398_s10, 4  ;;  %p3895_p11 = pneg %p4507_p10  ;;  %s196_s11 = int_to_ptr.vmem [resolvable:$true] %s195_s11 }
  0x11   : > { %s214_s14 = sshll.u32 %s4399_s13, 4  ;;  %s4287_s15 = scalar_lea.vmem %s196_s11, 13312  ;;  %s215_s14 = int_to_ptr.vmem [resolvable:$true] %s214_s14 }
  0x12   : > { %p4515_p12 = pnand %p6105_p9, %p3895_p11  ;;  %p4288_p0 = scmp.ne.s32.totalorder %s196_s11, %s4287_s15 }
  0x13   : > { %p4295_p3 = scmp.lt.s32.totalorder %s196_s11, %s196_s11  ;;  %p4296_p4 = scmp.lt.s32.totalorder %s4287_s15, %s4287_s15 }
  0x14   : > { %p4278_p13 = pneg %p4515_p12 }
  0x15   : > { %p4297_p7 = por %p4296_p4, %p4295_p3 }
  0x16   : > { %p4290_p1 = pnand %p4288_p0, %p4278_p13 }
  0x18   : > { %p4291_p2 = pneg %p4290_p1 }
  0x1a   : > { %p4298_p8 = pnand %p4297_p7, %p4291_p2 }
  0x1c   : > { %4301 = shalt.err (!%p4298_p8)
}
  0x1d   : > { %s4400_s16 = smov 1664   ;;  %s4401_s17 = smov 104  }
  0x1e   : > { %3898 = dma.hbm_to_vmem [thread:$0]  (!%p4515_p12), %s6099_s1, 13312, %s196_s11, [#allocation3], %s4400_s16, %s4400_s16, %s4401_s17  }
  0x1f   : > { %s4313_s20 = scalar_lea.vmem %s215_s14, 3072  ;;  %p4321_p9 = scmp.lt.s32.totalorder %s215_s14, %s215_s14 }
  0x20   : > { %p4314_p11 = scmp.ne.s32.totalorder %s215_s14, %s4313_s20  ;;  %p4322_p6 = scmp.lt.s32.totalorder %s4313_s20, %s4313_s20 }
  0x22   : > { %p4316_p0 = pnand %p4314_p11, %p4278_p13  ;;  %p4323_p3 = por %p4322_p6, %p4321_p9 }
  0x24   : > { %p4317_p1 = pneg %p4316_p0 }
  0x26   : > { %p4324_p2 = pnand %p4323_p3, %p4317_p1 }
  0x28   : > { %4327 = shalt.err (!%p4324_p2)
}
  0x29   : > { %s4402_s26 = smov 64   ;;  %s4403_s28 = smov 4  }
  0x2a   : > { %3901 = dma.hbm_to_vmem [thread:$0]  (!%p4515_p12), %s6102_s4, 3072, %s215_s14, [#allocation6], %s4402_s26, %s4402_s26, %s4403_s28  }
  0x2b   : > { %240 = sbr.rel (%p4507_p10) target bundleno = 1573 (0x625), region = 44 }
  0x30   : > { %p6156_p4 = scmp.eq.s32.totalorder %s4479_s25, 0 }
  0x32   : > { %4371 = dma.done.wait (%p6156_p4), [#allocation3], 13312   ;;  %p6157_p13 = pmov %p6156_p4 }
  0x33   : > { %p6158_p6 = pmov %p6156_p4 }
  0x34   : > { %4373 = vsyncadd (%p6157_p13), [#allocation3], 4294953984 }
  0x35   : > { %4375 = dma.done.wait (%p6158_p6), [#allocation6], 3072   ;;  %p6159_p9 = pmov %p6156_p4 }
  0x36   : > { %p273_p7 = scmp.lt.s32.totalorder %s4479_s25, 1  ;;  %v279_v0 = vlaneseq  ;;  %vm288_vm4 = vcmask 523264   ;;  %v6111_v12 = vmov 0.0   ;;  %v3994_v17 = vld [vmem:[#allocation2 + $0x274] ss:$104 sps:$4 sm:$0xff]   ;;  %v4405_v35 = vmov 0  }
  0x37   : > { %4377 = vsyncadd (%p6159_p9), [#allocation6], 4294964224  ;;  %v3996_v18 = vld [vmem:[#allocation2 + $0x27c] ss:$104 sps:$4 sm:$0xff]   ;;  %v3998_v19 = vld [vmem:[#allocation2 + $0x270] ss:$104 sps:$4 sm:$0xff]   ;;  %961 = vmatprep.subr.bf16.mxu0 %v3994_v17  ;;  %985 = vmatprep.mubr.bf16.mxu0 %v4405_v35 }
  0x38   : > { %s274_s11 = scalar_select %p273_p7, %s4479_s25, 1  ;;  %v280_v1 = vand.u32 127, %v279_v0  ;;  %v3999_v20 = vld [vmem:[#allocation2 + $0x278] ss:$104 sps:$4 sm:$0xff]   ;;  %1002 = vmatprep.subr.bf16.mxu1 %v3996_v18  ;;  %962 = vmatpush1.bf16.msra.mxu0 %v3998_v19  ;;  %v4000_v21 = vld [vmem:[#allocation2 + $0x1a4] ss:$104 sps:$4 sm:$0xff]  }
  0x39   : > { %1003 = vmatpush1.bf16.msra.mxu1 %v3999_v20  ;;  %v4002_v22 = vld [vmem:[#allocation2 + $0x1ac] ss:$104 sps:$4 sm:$0xff]   ;;  %v4004_v23 = vld [vmem:[#allocation2 + $0x1a0] ss:$104 sps:$4 sm:$0xff]   ;;  %963 = vmatprep.subr.bf16.mxu0 %v4000_v21  ;;  %v4008_v26 = vld [vmem:[#allocation2 + $0xdc] ss:$104 sps:$4 sm:$0xff]  }
  0x3a   : > { %s3460_s9 = sshll.u32 %s274_s11, 3  ;;  %vm282_vm0 = vcmp.ge.s32.totalorder %v280_v1, 17  ;;  %vm283_vm1 = vcmp.lt.s32.totalorder %v280_v1, 34  ;;  %vm281_vm3 = vcmp.lt.s32.totalorder %v280_v1, 17  ;;  %v4005_v24 = vld [vmem:[#allocation2 + $0x1a8] ss:$104 sps:$4 sm:$0xff]   ;;  %1004 = vmatprep.subr.bf16.mxu1 %v4002_v22  ;;  %1026 = vmatprep.mubr.bf16.mxu1 %v4405_v35 }
  0x3b   : > { %s4552_s14 = scalar_lea.vmem %s6098_s0, %s3460_s9  ;;  %vm4554_vm2 = vmand %vm282_vm0, %vm283_vm1  ;;  %v3461_v13 = vsel %vm281_vm3, 1.0, %v6111_v12  ;;  %v4006_v25 = vld [vmem:[#allocation2 + $0xd4] ss:$104 sps:$4 sm:$0xff]   ;;  %v4010_v27 = vld [vmem:[#allocation2 + $0xd0] ss:$104 sps:$4 sm:$0xff]   ;;  %s4419_s19 = smov 64  }
  0x3c   : > { %v4559_v3 = vld [vmem:[%s4552_s14] sm:$0xff]  ;;  %v320_v14 = vsub.f32 1.0, %v3461_v13  ;;  %v3462_v15 = vsel %vm4554_vm2, 1.0, %v6111_v12  ;;  %964 = vmatpush1.bf16.msra.mxu0 %v4004_v23  ;;  %v4014_v30 = vld [vmem:[#allocation2 + $0xc] ss:$104 sps:$4 sm:$0xff]   ;;  %vm4420_vm5 = vmmov 0  }
  0x3d   : > { %v298_v4 = vsel %vm4554_vm2, %v4559_v3, 1e+30  ;;  %v287_v5 = vsel %vm281_vm3, %v4559_v3, 1e+30  ;;  %v302_v6 = vsel %vm4554_vm2, %v4559_v3, -1e+30  ;;  %1005 = vmatpush1.bf16.msra.mxu1 %v4005_v24  ;;  %965 = vmatprep.subr.bf16.mxu0 %v4006_v25 }
  0x3e   : > { %v299_v7 = vsel %vm288_vm4, %v298_v4, inf  ;;  %v289_v8 = vsel %vm288_vm4, %v287_v5, inf  ;;  %v292_v9 = vsel %vm281_vm3, %v4559_v3, -1e+30  ;;  %v303_v10 = vsel %vm288_vm4, %v302_v6, -inf  ;;  %1006 = vmatprep.subr.bf16.mxu1 %v4008_v26  ;;  %s270_s28 = sand.u32 1, %s4388_s22  }
  0x3f   : > { %300 = vmin.xlane.f32.xlu1 %v299_v7  ;;  %290 = vmin.xlane.f32.xlu0 %v289_v8  ;;  %v293_v11 = vsel %vm288_vm4, %v292_v9, -inf  ;;  %v321_v16 = vsub.f32 %v320_v14, %v3462_v15  ;;  %v4011_v28 = vld [vmem:[#allocation2 + $0xd8] ss:$104 sps:$4 sm:$0xff]   ;;  %v4012_v29 = vld [vmem:[#allocation2 + $0x4] ss:$104 sps:$4 sm:$0xff]   ;;  %s3459_s29 = sshll.u32 %s270_s28, 3 }
  0x40   : > { %966 = vmatpush1.bf16.msra.mxu0 %v4010_v27  ;;  %v4016_v31 = vld [vmem:[#allocation2] ss:$104 sps:$4 sm:$0xff]   ;;  %v4020_v33 = vld [vmem:[#allocation2 + $0x284] ss:$104 sps:$4 sm:$0xff]   ;;  %v4026_v58 = vld [vmem:[#allocation2 + $0x1b4] ss:$104 sps:$4 sm:$0xff]  }
  0x41   : > { %1007 = vmatpush1.bf16.msra.mxu1 %v4011_v28  ;;  %v4017_v32 = vld [vmem:[#allocation2 + $0x8] ss:$104 sps:$4 sm:$0xff]   ;;  %967 = vmatprep.subr.bf16.mxu0 %v4012_v29  ;;  %v4023_v34 = vld [vmem:[#allocation2 + $0x28c] ss:$104 sps:$4 sm:$0xff]   ;;  %v4029_v59 = vld [vmem:[#allocation2 + $0x1bc] ss:$104 sps:$4 sm:$0xff]  }
  0x42   : > { %1008 = vmatprep.subr.bf16.mxu1 %v4014_v30  ;;  %v4018_v55 = vld [vmem:[#allocation2 + $0x280] ss:$104 sps:$4 sm:$0xff]   ;;  %v4024_v60 = vld [vmem:[#allocation2 + $0x1b0] ss:$104 sps:$4 sm:$0xff]   ;;  %v4032_v62 = vld [vmem:[#allocation2 + $0xe4] ss:$104 sps:$4 sm:$0xff]  }
  0x43   : > { %304 = vmax.xlane.f32.xlu1 %v303_v10  ;;  %294 = vmax.xlane.f32.xlu0 %v293_v11  ;;  %v4021_v56 = vld [vmem:[#allocation2 + $0x288] ss:$104 sps:$4 sm:$0xff]   ;;  %v4027_v61 = vld [vmem:[#allocation2 + $0x1b8] ss:$104 sps:$4 sm:$0xff]   ;;  %v4035_v63 = vld [vmem:[#allocation2 + $0xec] ss:$104 sps:$4 sm:$0xff]  }
  0x44   : > { %968 = vmatpush1.bf16.msra.mxu0 %v4016_v31  ;;  %v4030_v0 = vld [vmem:[#allocation2 + $0xe0] ss:$104 sps:$4 sm:$0xff]   ;;  %v4038_v2 = vld [vmem:[#allocation2 + $0x14] ss:$104 sps:$4 sm:$0xff]   ;;  %v4036_v4 = vld [vmem:[#allocation2 + $0x10] ss:$104 sps:$4 sm:$0xff]  }
  0x45   : > { %1009 = vmatpush1.bf16.msra.mxu1 %v4017_v32  ;;  %1043 = vmatprep.subr.bf16.mxu0 %v4020_v33  ;;  %v4033_v1 = vld [vmem:[#allocation2 + $0xe8] ss:$104 sps:$4 sm:$0xff]   ;;  %v4039_v5 = vld [vmem:[#allocation2 + $0x18] ss:$104 sps:$4 sm:$0xff]   ;;  %v4044_v6 = vld [vmem:[#allocation2 + $0x294] ss:$104 sps:$4 sm:$0xff]  }
  0x46   : > { %1084 = vmatprep.subr.bf16.mxu1 %v4023_v34  ;;  %v4047_v7 = vld [vmem:[#allocation2 + $0x29c] ss:$104 sps:$4 sm:$0xff]   ;;  %v4042_v8 = vld [vmem:[#allocation2 + $0x290] ss:$104 sps:$4 sm:$0xff]   ;;  %v4053_v11 = vld [vmem:[#allocation2 + $0x1cc] ss:$104 sps:$4 sm:$0xff]  }
  0x47   : > { %v4045_v9 = vld [vmem:[#allocation2 + $0x298] ss:$104 sps:$4 sm:$0xff]   ;;  %v4050_v10 = vld [vmem:[#allocation2 + $0x1c4] ss:$104 sps:$4 sm:$0xff]   ;;  %v4051_v14 = vld [vmem:[#allocation2 + $0x1c8] ss:$104 sps:$4 sm:$0xff]  }
  0x48   : > { %v4054_v17 = vld [vmem:[#allocation2 + $0xf0] ss:$104 sps:$4 sm:$0xff]   ;;  %v4062_v19 = vld [vmem:[#allocation2 + $0x24] ss:$104 sps:$4 sm:$0xff]   ;;  %v4060_v21 = vld [vmem:[#allocation2 + $0x20] ss:$104 sps:$4 sm:$0xff]  }
  0x49   : > { %v4057_v18 = vld [vmem:[#allocation2 + $0xf8] ss:$104 sps:$4 sm:$0xff]   ;;  %v4065_v20 = vld [vmem:[#allocation2 + $0x2c] ss:$104 sps:$4 sm:$0xff]   ;;  %v4063_v22 = vld [vmem:[#allocation2 + $0x28] ss:$104 sps:$4 sm:$0xff]  }
  0x4a   : > { %v4068_v23 = vld [vmem:[#allocation2 + $0x2a4] ss:$104 sps:$4 sm:$0xff]   ;;  %v4066_v25 = vld [vmem:[#allocation2 + $0x2a0] ss:$104 sps:$4 sm:$0xff]   ;;  %v4074_v27 = vld [vmem:[#allocation2 + $0x1d4] ss:$104 sps:$4 sm:$0xff]  }
  0x4b   : > { %v4071_v24 = vld [vmem:[#allocation2 + $0x2ac] ss:$104 sps:$4 sm:$0xff]   ;;  %v4069_v26 = vld [vmem:[#allocation2 + $0x2a8] ss:$104 sps:$4 sm:$0xff]   ;;  %v4077_v28 = vld [vmem:[#allocation2 + $0x1dc] ss:$104 sps:$4 sm:$0xff]  }
  0x4c   : > { %v4072_v29 = vld [vmem:[#allocation2 + $0x1d0] ss:$104 sps:$4 sm:$0xff]   ;;  %v4080_v31 = vld [vmem:[#allocation2 + $0x104] ss:$104 sps:$4 sm:$0xff]   ;;  %v4078_v33 = vld [vmem:[#allocation2 + $0x100] ss:$104 sps:$4 sm:$0xff]  }
  0x4d   : > { %v4075_v30 = vld [vmem:[#allocation2 + $0x1d8] ss:$104 sps:$4 sm:$0xff]   ;;  %v4083_v32 = vld [vmem:[#allocation2 + $0x10c] ss:$104 sps:$4 sm:$0xff]   ;;  %v4081_v34 = vld [vmem:[#allocation2 + $0x108] ss:$104 sps:$4 sm:$0xff]  }
  0x4e   : > { %v5093_v12 = vld [vmem:[%s6100_s2 + $0x140] ss:$12 sps:$4 sm:$0xff]   ;;  %s3655_s9 = sshll.u32 %s4479_s25, 7  ;;  %s272_s12 = scalar_lea.vmem [#allocation7], %s3459_s29 }
  0x4f   : > { %s3370_s13 = sshll.u32 %s272_s12, 4  ;;  %s3357_s17 = scalar_lea.sflag [#allocation4], %s270_s28  ;;  %s6059_s13 = int_to_ptr.vmem [resolvable:$true] %s3370_s13 }
  0x50   : > { %s4328_s25 = scalar_lea.vmem %s6059_s13, 128  ;;  %s4422_s18 = smov [#allocation7]  }
  0x51   : > { %p4329_p10 = scmp.ne.s32.totalorder %s6059_s13, %s4328_s25 }
  0x53   : > { %p4330_p12 = pnand %p4329_p10, %p4496_p5 }
  0x55   : > { %p4331_p8 = pneg %p4330_p12 }
  0xc8   : > { %v301_v36 = vpop.xlane.xlu1 %300  ;;  %v291_v37 = vpop.xlane.xlu0 %290 }
  0xc9   : > { %v315_v38 = vmul.f32 %v3462_v15, %v301_v36  ;;  %v314_v39 = vmul.f32 %v3461_v13, %v291_v37 }
  0xcb   : > { %v316_v40 = vadd.f32 %v315_v38, %v314_v39  ;;  %v4084_v38 = vld [vmem:[#allocation2 + $0x30] ss:$104 sps:$4 sm:$0xff]  }
  0xcc   : > { %v305_v41 = vpop.xlane.xlu1 %304  ;;  %v295_v42 = vpop.xlane.xlu0 %294  ;;  %v4087_v39 = vld [vmem:[#allocation2 + $0x38] ss:$104 sps:$4 sm:$0xff]  }
  0xcd   : > { %v309_v43 = vsub.f32 %v305_v41, %v301_v36  ;;  %v306_v44 = vsub.f32 %v295_v42, %v291_v37  ;;  %v323_v52 = vsub.f32 %v4559_v3, %v316_v40  ;;  %v4041_v3 = vld [vmem:[#allocation2 + $0x1c] ss:$104 sps:$4 sm:$0xff]   ;;  %v4090_v42 = vld [vmem:[#allocation2 + $0x2b0] ss:$104 sps:$4 sm:$0xff]  }
  0xce   : > { %v4086_v36 = vld [vmem:[#allocation2 + $0x34] ss:$104 sps:$4 sm:$0xff]  }
  0xcf   : > { %v310_v45 = vadd.f32 1e-06, %v309_v43  ;;  %v307_v46 = vadd.f32 1e-06, %v306_v44  ;;  %v4089_v37 = vld [vmem:[#allocation2 + $0x3c] ss:$104 sps:$4 sm:$0xff]  }
  0xd0   : > { %v4092_v40 = vld [vmem:[#allocation2 + $0x2b4] ss:$104 sps:$4 sm:$0xff]   ;;  %v4093_v43 = vld [vmem:[#allocation2 + $0x2b8] ss:$104 sps:$4 sm:$0xff]   ;;  %v4098_v44 = vld [vmem:[#allocation2 + $0x1e4] ss:$104 sps:$4 sm:$0xff]  }
  0xd1   : > { %4238 = vrcp.f32 %v310_v45  ;;  %v4095_v41 = vld [vmem:[#allocation2 + $0x2bc] ss:$104 sps:$4 sm:$0xff]   ;;  %v4101_v45 = vld [vmem:[#allocation2 + $0x1ec] ss:$104 sps:$4 sm:$0xff]  }
  0xd2   : > { %4240 = vrcp.f32 %v307_v46  ;;  %v4096_v46 = vld [vmem:[#allocation2 + $0x1e0] ss:$104 sps:$4 sm:$0xff]  }
  0xde   : > { %v4239_v47 = vpop.eup %4238 }
  0xdf   : > { %v4241_v48 = vpop.eup %4240  ;;  %v318_v49 = vmul.f32 %v4239_v47, %v3462_v15  ;;  %v4056_v15 = vld [vmem:[#allocation2 + $0xf4] ss:$104 sps:$4 sm:$0xff]   ;;  %v4099_v47 = vld [vmem:[#allocation2 + $0x1e8] ss:$104 sps:$4 sm:$0xff]  }
  0xe0   : > { %v317_v50 = vmul.f32 %v4241_v48, %v3461_v13  ;;  %v4048_v13 = vld [vmem:[#allocation2 + $0x1c0] ss:$104 sps:$4 sm:$0xff]   ;;  %v4104_v48 = vld [vmem:[#allocation2 + $0x114] ss:$104 sps:$4 sm:$0xff]  }
  0xe2   : > { %v319_v51 = vadd.f32 %v318_v49, %v317_v50  ;;  %v4107_v49 = vld [vmem:[#allocation2 + $0x11c] ss:$104 sps:$4 sm:$0xff]   ;;  %v4102_v50 = vld [vmem:[#allocation2 + $0x110] ss:$104 sps:$4 sm:$0xff]  }
  0xe4   : > { %v322_v53 = vadd.f32 %v321_v16, %v319_v51  ;;  %v4059_v16 = vld [vmem:[#allocation2 + $0xfc] ss:$104 sps:$4 sm:$0xff]   ;;  %v4105_v51 = vld [vmem:[#allocation2 + $0x118] ss:$104 sps:$4 sm:$0xff]  }
  0xe6   : > { %v324_v54 = vmul.f32 %v323_v52, %v322_v53  ;;  %v4110_v52 = vld [vmem:[#allocation2 + $0x44] ss:$104 sps:$4 sm:$0xff]  }
  0xe7   : > { %v4113_v53 = vld [vmem:[#allocation2 + $0x4c] ss:$104 sps:$4 sm:$0xff]  }
  0xe8   : > { %v4583_v57 = vpack.c.bf16 %v324_v54, %v324_v54  ;;  %v4108_v54 = vld [vmem:[#allocation2 + $0x40] ss:$104 sps:$4 sm:$0xff]  }
  0xea   : > { %3567 = vmatmul.mubr.msk.bf16.vlgmr.msra.gmra.mxu0 %vm288_vm4, %v4583_v57  ;;  %3568 = vmatmul.mubr.msk.bf16.vlgmr.msra.gmra.mxu1 %vm288_vm4, %v4583_v57 }
  0xeb   : > { %1044 = vmatpush1.bf16.msra.mxu0 %v4018_v55  ;;  %1085 = vmatpush1.bf16.msra.mxu1 %v4021_v56  ;;  %v4111_v55 = vld [vmem:[#allocation2 + $0x48] ss:$104 sps:$4 sm:$0xff]   ;;  %v4116_v56 = vld [vmem:[#allocation2 + $0x2c4] ss:$104 sps:$4 sm:$0xff]  }
  0xec   : > { %1045 = vmatprep.subr.bf16.mxu0 %v4026_v58  ;;  %1086 = vmatprep.subr.bf16.mxu1 %v4029_v59  ;;  %v4119_v58 = vld [vmem:[#allocation2 + $0x2cc] ss:$104 sps:$4 sm:$0xff]   ;;  %v4114_v59 = vld [vmem:[#allocation2 + $0x2c0] ss:$104 sps:$4 sm:$0xff]  }
  0xed   : > { %1067 = vmatprep.mubr.bf16.mxu0 %v4405_v35  ;;  %1108 = vmatprep.mubr.bf16.mxu1 %v4405_v35 }
  0xef   : > { %1046 = vmatpush1.bf16.msra.mxu0 %v4024_v60  ;;  %1087 = vmatpush1.bf16.msra.mxu1 %v4027_v61  ;;  %v4117_v60 = vld [vmem:[#allocation2 + $0x2c8] ss:$104 sps:$4 sm:$0xff]   ;;  %v4122_v61 = vld [vmem:[#allocation2 + $0x1f4] ss:$104 sps:$4 sm:$0xff]  }
  0xf0   : > { %1047 = vmatprep.subr.bf16.mxu0 %v4032_v62  ;;  %1088 = vmatprep.subr.bf16.mxu1 %v4035_v63  ;;  %v4125_v62 = vld [vmem:[#allocation2 + $0x1fc] ss:$104 sps:$4 sm:$0xff]   ;;  %v4120_v63 = vld [vmem:[#allocation2 + $0x1f0] ss:$104 sps:$4 sm:$0xff]  }
  0xf3   : > { %1048 = vmatpush1.bf16.msra.mxu0 %v4030_v0  ;;  %1089 = vmatpush1.bf16.msra.mxu1 %v4033_v1  ;;  %v4123_v0 = vld [vmem:[#allocation2 + $0x1f8] ss:$104 sps:$4 sm:$0xff]   ;;  %v4128_v1 = vld [vmem:[#allocation2 + $0x124] ss:$104 sps:$4 sm:$0xff]  }
  0xf4   : > { %1049 = vmatprep.subr.bf16.mxu0 %v4038_v2  ;;  %1090 = vmatprep.subr.bf16.mxu1 %v4041_v3  ;;  %v4131_v2 = vld [vmem:[#allocation2 + $0x12c] ss:$104 sps:$4 sm:$0xff]   ;;  %v4126_v3 = vld [vmem:[#allocation2 + $0x120] ss:$104 sps:$4 sm:$0xff]  }
  0xf7   : > { %1050 = vmatpush1.bf16.msra.mxu0 %v4036_v4  ;;  %1091 = vmatpush1.bf16.msra.mxu1 %v4039_v5  ;;  %v4129_v4 = vld [vmem:[#allocation2 + $0x128] ss:$104 sps:$4 sm:$0xff]   ;;  %v4134_v5 = vld [vmem:[#allocation2 + $0x54] ss:$104 sps:$4 sm:$0xff]  }
  0xf8   : > { %1125 = vmatprep.subr.bf16.mxu0 %v4044_v6  ;;  %1166 = vmatprep.subr.bf16.mxu1 %v4047_v7  ;;  %v4137_v6 = vld [vmem:[#allocation2 + $0x5c] ss:$104 sps:$4 sm:$0xff]   ;;  %v4132_v7 = vld [vmem:[#allocation2 + $0x50] ss:$104 sps:$4 sm:$0xff]  }
  0xfa   : > { %3569 = vmatmul.mubr.msk.bf16.vlgmr.msra.gmra.mxu0 %vm288_vm4, %v4583_v57  ;;  %3570 = vmatmul.mubr.msk.bf16.vlgmr.msra.gmra.mxu1 %vm288_vm4, %v4583_v57 }
  0xfb   : > { %1126 = vmatpush1.bf16.msra.mxu0 %v4042_v8  ;;  %1167 = vmatpush1.bf16.msra.mxu1 %v4045_v9  ;;  %v4135_v8 = vld [vmem:[#allocation2 + $0x58] ss:$104 sps:$4 sm:$0xff]   ;;  %v4140_v9 = vld [vmem:[#allocation2 + $0x2d4] ss:$104 sps:$4 sm:$0xff]  }
  0xfc   : > { %1127 = vmatprep.subr.bf16.mxu0 %v4050_v10  ;;  %1168 = vmatprep.subr.bf16.mxu1 %v4053_v11  ;;  %v4618_v10 = vld [vmem:[%s6100_s2 + $0xac] ss:$12 sps:$4 sm:$0xff]  }
  0xfd   : > { %1149 = vmatprep.mubr.bf16.mxu0 %v4405_v35  ;;  %1190 = vmatprep.mubr.bf16.mxu1 %v4405_v35  ;;  %v4138_v11 = vld [vmem:[#allocation2 + $0x2d0] ss:$104 sps:$4 sm:$0xff]  }
  0xff   : > { %1128 = vmatpush1.bf16.msra.mxu0 %v4048_v13  ;;  %1169 = vmatpush1.bf16.msra.mxu1 %v4051_v14  ;;  %v4143_v13 = vld [vmem:[#allocation2 + $0x204] ss:$104 sps:$4 sm:$0xff]   ;;  %v4624_v14 = vld [vmem:[%s6100_s2 + $0xa8] ss:$12 sps:$4 sm:$0xff]  }
 0x100   : > { %1129 = vmatprep.subr.bf16.mxu0 %v4056_v15  ;;  %1170 = vmatprep.subr.bf16.mxu1 %v4059_v16  ;;  %v4629_v15 = vld [vmem:[%s6100_s2 + $0x94] ss:$12 sps:$4 sm:$0xff]  }
 0x101   : > { %v4141_v16 = vld [vmem:[#allocation2 + $0x200] ss:$104 sps:$4 sm:$0xff]  }
 0x103   : > { %1130 = vmatpush1.bf16.msra.mxu0 %v4054_v17  ;;  %1171 = vmatpush1.bf16.msra.mxu1 %v4057_v18  ;;  %v4146_v17 = vld [vmem:[#allocation2 + $0x134] ss:$104 sps:$4 sm:$0xff]  }
 0x104   : > { %1131 = vmatprep.subr.bf16.mxu0 %v4062_v19  ;;  %1172 = vmatprep.subr.bf16.mxu1 %v4065_v20  ;;  %v4640_v18 = vld [vmem:[%s6100_s2 + $0x90] ss:$12 sps:$4 sm:$0xff]  }
 0x105   : > { %v4646_v19 = vld [vmem:[%s6100_s2 + $0x7c] ss:$12 sps:$4 sm:$0xff]   ;;  %v4144_v20 = vld [vmem:[#allocation2 + $0x130] ss:$104 sps:$4 sm:$0xff]  }
 0x107   : > { %1132 = vmatpush1.bf16.msra.mxu0 %v4060_v21  ;;  %1173 = vmatpush1.bf16.msra.mxu1 %v4063_v22  ;;  %v4652_v21 = vld [vmem:[%s6100_s2 + $0x78] ss:$12 sps:$4 sm:$0xff]  }
 0x108   : > { %1207 = vmatprep.subr.bf16.mxu0 %v4068_v23  ;;  %1248 = vmatprep.subr.bf16.mxu1 %v4071_v24  ;;  %v4658_v22 = vld [vmem:[%s6100_s2 + $0x64] ss:$12 sps:$4 sm:$0xff]   ;;  %v4147_v23 = vld [vmem:[#allocation2 + $0x60] ss:$104 sps:$4 sm:$0xff]  }
 0x109   : > { %v4664_v24 = vld [vmem:[%s6100_s2 + $0x60] ss:$12 sps:$4 sm:$0xff]  }
 0x10a   : > { %3571 = vmatmul.mubr.msk.bf16.vlgmr.msra.gmra.mxu0 %vm288_vm4, %v4583_v57  ;;  %3572 = vmatmul.mubr.msk.bf16.vlgmr.msra.gmra.mxu1 %vm288_vm4, %v4583_v57 }
 0x10b   : > { %1208 = vmatpush1.bf16.msra.mxu0 %v4066_v25  ;;  %1249 = vmatpush1.bf16.msra.mxu1 %v4069_v26  ;;  %v4670_v25 = vld [vmem:[%s6100_s2 + $0x4c] ss:$12 sps:$4 sm:$0xff]   ;;  %v4677_v26 = vld [vmem:[%s6100_s2 + $0x48] ss:$12 sps:$4 sm:$0xff]  }
 0x10c   : > { %1209 = vmatprep.subr.bf16.mxu0 %v4074_v27  ;;  %1250 = vmatprep.subr.bf16.mxu1 %v4077_v28  ;;  %v4683_v27 = vld [vmem:[%s6100_s2 + $0x34] ss:$12 sps:$4 sm:$0xff]   ;;  %v4693_v28 = vld [vmem:[%s6100_s2 + $0x30] ss:$12 sps:$4 sm:$0xff]  }
 0x10d   : > { %1231 = vmatprep.mubr.bf16.mxu0 %v4405_v35  ;;  %1272 = vmatprep.mubr.bf16.mxu1 %v4405_v35 }
 0x10f   : > { %1210 = vmatpush1.bf16.msra.mxu0 %v4072_v29  ;;  %1251 = vmatpush1.bf16.msra.mxu1 %v4075_v30  ;;  %v4699_v29 = vld [vmem:[%s6100_s2 + $0x1c] ss:$12 sps:$4 sm:$0xff]   ;;  %v4713_v30 = vld [vmem:[%s6100_s2 + $0x4] ss:$12 sps:$4 sm:$0xff]  }
 0x110   : > { %1211 = vmatprep.subr.bf16.mxu0 %v4080_v31  ;;  %1252 = vmatprep.subr.bf16.mxu1 %v4083_v32  ;;  %v4721_v31 = vld [vmem:[%s6100_s2] ss:$12 sps:$4 sm:$0xff]  }
 0x111   : > { %v4727_v32 = vld [vmem:[%s6100_s2 + $0x16c] ss:$12 sps:$4 sm:$0xff]  }
 0x113   : > { %1212 = vmatpush1.bf16.msra.mxu0 %v4078_v33  ;;  %1253 = vmatpush1.bf16.msra.mxu1 %v4081_v34  ;;  %v4735_v33 = vld [vmem:[%s6100_s2 + $0x168] ss:$12 sps:$4 sm:$0xff]  }
 0x114   : > { %1213 = vmatprep.subr.bf16.mxu0 %v4086_v36  ;;  %1254 = vmatprep.subr.bf16.mxu1 %v4089_v37  ;;  %v4741_v34 = vld [vmem:[%s6100_s2 + $0x154] ss:$12 sps:$4 sm:$0xff]   ;;  %v4749_v36 = vld [vmem:[%s6100_s2 + $0x150] ss:$12 sps:$4 sm:$0xff]  }
 0x115   : > { %v4755_v37 = vld [vmem:[%s6100_s2 + $0x13c] ss:$12 sps:$4 sm:$0xff]  }
 0x117   : > { %1214 = vmatpush1.bf16.msra.mxu0 %v4084_v38  ;;  %1255 = vmatpush1.bf16.msra.mxu1 %v4087_v39  ;;  %v4763_v38 = vld [vmem:[%s6100_s2 + $0x138] ss:$12 sps:$4 sm:$0xff]  }
 0x118   : > { %1289 = vmatprep.subr.bf16.mxu0 %v4092_v40  ;;  %1330 = vmatprep.subr.bf16.mxu1 %v4095_v41  ;;  %v4769_v39 = vld [vmem:[%s6100_s2 + $0x124] ss:$12 sps:$4 sm:$0xff]   ;;  %v4777_v40 = vld [vmem:[%s6100_s2 + $0x120] ss:$12 sps:$4 sm:$0xff]  }
 0x119   : > { %v4783_v41 = vld [vmem:[%s6100_s2 + $0x10c] ss:$12 sps:$4 sm:$0xff]  }
 0x11a   : > { %3573 = vmatmul.mubr.msk.bf16.vlgmr.msra.gmra.mxu0 %vm288_vm4, %v4583_v57  ;;  %3574 = vmatmul.mubr.msk.bf16.vlgmr.msra.gmra.mxu1 %vm288_vm4, %v4583_v57 }
 0x11b   : > { %1290 = vmatpush1.bf16.msra.mxu0 %v4090_v42  ;;  %1331 = vmatpush1.bf16.msra.mxu1 %v4093_v43  ;;  %v4791_v42 = vld [vmem:[%s6100_s2 + $0x108] ss:$12 sps:$4 sm:$0xff]  }
 0x11c   : > { %1291 = vmatprep.subr.bf16.mxu0 %v4098_v44  ;;  %1332 = vmatprep.subr.bf16.mxu1 %v4101_v45  ;;  %v4797_v43 = vld [vmem:[%s6100_s2 + $0xf4] ss:$12 sps:$4 sm:$0xff]   ;;  %v4805_v44 = vld [vmem:[%s6100_s2 + $0xf0] ss:$12 sps:$4 sm:$0xff]  }
 0x11d   : > { %1313 = vmatprep.mubr.bf16.mxu0 %v4405_v35  ;;  %1354 = vmatprep.mubr.bf16.mxu1 %v4405_v35  ;;  %v4811_v45 = vld [vmem:[%s6100_s2 + $0xdc] ss:$12 sps:$4 sm:$0xff]  }
 0x11f   : > { %1292 = vmatpush1.bf16.msra.mxu0 %v4096_v46  ;;  %1333 = vmatpush1.bf16.msra.mxu1 %v4099_v47  ;;  %v4819_v46 = vld [vmem:[%s6100_s2 + $0xd8] ss:$12 sps:$4 sm:$0xff]  }
 0x120   : > { %1293 = vmatprep.subr.bf16.mxu0 %v4104_v48  ;;  %1334 = vmatprep.subr.bf16.mxu1 %v4107_v49  ;;  %v4825_v47 = vld [vmem:[%s6100_s2 + $0xc4] ss:$12 sps:$4 sm:$0xff]   ;;  %v4833_v48 = vld [vmem:[%s6100_s2 + $0xc0] ss:$12 sps:$4 sm:$0xff]   ;;  %v6113_v49 = vmov 39  }
 0x121   : > { %3968 = vset.pattern.permute.xlu1 %v6113_v49  ;;  %v5122_v49 = vld [vmem:[%s6100_s2 + $0x110] ss:$12 sps:$4 sm:$0xff]  }
 0x123   : > { %1294 = vmatpush1.bf16.msra.mxu0 %v4102_v50  ;;  %1335 = vmatpush1.bf16.msra.mxu1 %v4105_v51  ;;  %v6114_v50 = vmov 34   ;;  %v4840_v51 = vld [vmem:[%s4552_s14] sm:$0xff] }
 0x124   : > { %1295 = vmatprep.subr.bf16.mxu0 %v4110_v52  ;;  %1336 = vmatprep.subr.bf16.mxu1 %v4113_v53  ;;  %v6110_v52 = vmov 40  }
 0x125   : > { %3967 = vset.pattern.permute.xlu0 %v6114_v50  ;;  %1830 = vperm.xlu1 %3968, %v4840_v51   ;;  %v5129_v50 = vld [vmem:[%s6100_s2 + $0x50] ss:$12 sps:$4 sm:$0xff]  }
 0x126   : > { %1781 = vperm.xlu0 %3967, %v4840_v51  }
 0x127   : > { %1296 = vmatpush1.bf16.msra.mxu0 %v4108_v54  ;;  %1337 = vmatpush1.bf16.msra.mxu1 %v4111_v55 }
 0x128   : > { %1371 = vmatprep.subr.bf16.mxu0 %v4116_v56  ;;  %1412 = vmatprep.subr.bf16.mxu1 %v4119_v58 }
 0x129   : > { %3969 = vset.pattern.permute.xlu1 %v6110_v52  ;;  %v5086_v52 = vld [vmem:[%s6100_s2 + $0x98] ss:$12 sps:$4 sm:$0xff]  }
 0x12a   : > { %3575 = vmatmul.mubr.msk.bf16.vlgmr.msra.gmra.mxu0 %vm288_vm4, %v4583_v57  ;;  %3576 = vmatmul.mubr.msk.bf16.vlgmr.msra.gmra.mxu1 %vm288_vm4, %v4583_v57 }
 0x12b   : > { %1372 = vmatpush1.bf16.msra.mxu0 %v4114_v59  ;;  %1413 = vmatpush1.bf16.msra.mxu1 %v4117_v60 }
 0x12c   : > { %1373 = vmatprep.subr.bf16.mxu0 %v4122_v61  ;;  %1414 = vmatprep.subr.bf16.mxu1 %v4125_v62  ;;  %v6109_v62 = vmov 41  }
 0x12d   : > { %1395 = vmatprep.mubr.bf16.mxu0 %v4405_v35  ;;  %1436 = vmatprep.mubr.bf16.mxu1 %v4405_v35 }
 0x12e   : > { %1879 = vperm.xlu1 %3969, %v4840_v51  }
 0x12f   : > { %1374 = vmatpush1.bf16.msra.mxu0 %v4120_v63  ;;  %1415 = vmatpush1.bf16.msra.mxu1 %v4123_v0 }
 0x130   : > { %1375 = vmatprep.subr.bf16.mxu0 %v4128_v1  ;;  %1416 = vmatprep.subr.bf16.mxu1 %v4131_v2 }
 0x132   : > { %3970 = vset.pattern.permute.xlu1 %v6109_v62 }
 0x133   : > { %1376 = vmatpush1.bf16.msra.mxu0 %v4126_v3  ;;  %1417 = vmatpush1.bf16.msra.mxu1 %v4129_v4 }
 0x134   : > { %1377 = vmatprep.subr.bf16.mxu0 %v4134_v5  ;;  %1418 = vmatprep.subr.bf16.mxu1 %v4137_v6 }
 0x135   : > { %2162 = vperm.xlu1 %3970, %v4840_v51  }
 0x137   : > { %1378 = vmatpush1.bf16.msra.mxu0 %v4132_v7  ;;  %1419 = vmatpush1.bf16.msra.mxu1 %v4135_v8  ;;  %v6108_v7 = vmov 42  }
 0x138   : > { %1453 = vmatprep.subr.bf16.mxu0 %v4140_v9  ;;  %1738 = vmatprep.subr.bf16.mxu1 %v4618_v10 }
 0x139   : > { %3971 = vset.pattern.permute.xlu1 %v6108_v7 }
 0x13a   : > { %3577 = vmatmul.mubr.msk.bf16.vlgmr.msra.gmra.mxu0 %vm288_vm4, %v4583_v57  ;;  %3578 = vmatmul.mubr.msk.bf16.vlgmr.msra.gmra.mxu1 %vm288_vm4, %v4583_v57 }
 0x13b   : > { %1454 = vmatpush1.bf16.msra.mxu0 %v4138_v11  ;;  %1477 = vmatprep.mubr.bf16.mxu0 %v4405_v35  ;;  %v4149_v35 = vld [vmem:[#allocation2 + $0x64] ss:$104 sps:$4 sm:$0xff]   ;;  %v6107_v11 = vmov 45  }
 0x13c   : > { %1455 = vmatprep.subr.bf16.mxu0 %v4143_v13  ;;  %1739 = vmatpush1.bf16.msra.mxu1 %v4624_v14 }
 0x13d   : > { %1740 = vmatprep.subr.bf16.mxu1 %v4629_v15  ;;  %2252 = vperm.xlu1 %3971, %v4840_v51  }
 0x13f   : > { %1456 = vmatpush1.bf16.msra.mxu0 %v4141_v16 }
 0x140   : > { %1457 = vmatprep.subr.bf16.mxu0 %v4146_v17  ;;  %1741 = vmatpush1.bf16.msra.mxu1 %v4640_v18 }
 0x141   : > { %1742 = vmatprep.subr.bf16.mxu1 %v4646_v19  ;;  %3972 = vset.pattern.permute.xlu1 %v6107_v11 }
 0x142   : > { %1928 = vperm.xlu1 %3972, %v4840_v51  }
 0x143   : > { %1458 = vmatpush1.bf16.msra.mxu0 %v4144_v20 }
 0x144   : > { %1459 = vmatprep.subr.bf16.mxu0 %v4149_v35  ;;  %1743 = vmatpush1.bf16.msra.mxu1 %v4652_v21 }
 0x145   : > { %1744 = vmatprep.subr.bf16.mxu1 %v4658_v22 }
 0x147   : > { %1460 = vmatpush1.bf16.msra.mxu0 %v4147_v23 }
 0x148   : > { %1788 = vmatprep.subr.bf16.mxu0 %v4618_v10  ;;  %1745 = vmatpush1.bf16.msra.mxu1 %v4664_v24 }
 0x149   : > { %1746 = vmatprep.subr.bf16.mxu1 %v4670_v25 }
 0x14a   : > { %3579 = vmatmul.mubr.msk.bf16.vlgmr.msra.gmra.mxu0 %vm288_vm4, %v4583_v57  ;;  %v4707_v57 = vld [vmem:[%s6100_s2 + $0x18] ss:$12 sps:$4 sm:$0xff]  }
 0x14b   : > { %1789 = vmatpush1.bf16.msra.mxu0 %v4624_v14 }
 0x14c   : > { %1790 = vmatprep.subr.bf16.mxu0 %v4629_v15  ;;  %1747 = vmatpush1.bf16.msra.mxu1 %v4677_v26 }
 0x14d   : > { %1748 = vmatprep.subr.bf16.mxu1 %v4683_v27 }
 0x14f   : > { %1791 = vmatpush1.bf16.msra.mxu0 %v4640_v18 }
 0x150   : > { %1792 = vmatprep.subr.bf16.mxu0 %v4646_v19  ;;  %1749 = vmatpush1.bf16.msra.mxu1 %v4693_v28 }
 0x151   : > { %1750 = vmatprep.subr.bf16.mxu1 %v4699_v29 }
 0x153   : > { %1793 = vmatpush1.bf16.msra.mxu0 %v4652_v21 }
 0x154   : > { %1794 = vmatprep.subr.bf16.mxu0 %v4658_v22  ;;  %1751 = vmatpush1.bf16.msra.mxu1 %v4707_v57 }
 0x155   : > { %1752 = vmatprep.subr.bf16.mxu1 %v4713_v30 }
 0x157   : > { %1795 = vmatpush1.bf16.msra.mxu0 %v4664_v24 }
 0x158   : > { %1796 = vmatprep.subr.bf16.mxu0 %v4670_v25  ;;  %1753 = vmatpush1.bf16.msra.mxu1 %v4721_v31 }
 0x159   : > { %1754 = vmatprep.subr.bf16.mxu1 %v4727_v32 }
 0x15b   : > { %1797 = vmatpush1.bf16.msra.mxu0 %v4677_v26 }
 0x15c   : > { %1798 = vmatprep.subr.bf16.mxu0 %v4683_v27  ;;  %1755 = vmatpush2.bf16.msra.mxu1 %v4735_v33 }
 0x15d   : > { %1756 = vmatprep.subr.bf16.mxu1 %v4741_v34 }
 0x15f   : > { %1799 = vmatpush1.bf16.msra.mxu0 %v4693_v28 }
 0x160   : > { %1800 = vmatprep.subr.bf16.mxu0 %v4699_v29  ;;  %1757 = vmatpush2.bf16.msra.mxu1 %v4749_v36 }
 0x161   : > { %1758 = vmatprep.subr.bf16.mxu1 %v4755_v37 }
 0x163   : > { %1801 = vmatpush1.bf16.msra.mxu0 %v4707_v57 }
 0x164   : > { %1802 = vmatprep.subr.bf16.mxu0 %v4713_v30  ;;  %1759 = vmatpush2.bf16.msra.mxu1 %v4763_v38 }
 0x165   : > { %1760 = vmatprep.subr.bf16.mxu1 %v4769_v39 }
 0x167   : > { %1803 = vmatpush1.bf16.msra.mxu0 %v4721_v31 }
 0x168   : > { %1804 = vmatprep.subr.bf16.mxu0 %v4727_v32  ;;  %1761 = vmatpush2.bf16.msra.mxu1 %v4777_v40 }
 0x169   : > { %1762 = vmatprep.subr.bf16.mxu1 %v4783_v41 }
 0x16b   : > { %1805 = vmatpush2.bf16.msra.mxu0 %v4735_v33 }
 0x16c   : > { %1806 = vmatprep.subr.bf16.mxu0 %v4741_v34  ;;  %1763 = vmatpush2.bf16.msra.mxu1 %v4791_v42 }
 0x16d   : > { %1764 = vmatprep.subr.bf16.mxu1 %v4797_v43 }
 0x16f   : > { %1807 = vmatpush2.bf16.msra.mxu0 %v4749_v36 }
 0x170   : > { %1808 = vmatprep.subr.bf16.mxu0 %v4755_v37  ;;  %1765 = vmatpush2.bf16.msra.mxu1 %v4805_v44 }
 0x171   : > { %1766 = vmatprep.subr.bf16.mxu1 %v4811_v45 }
 0x173   : > { %1809 = vmatpush2.bf16.msra.mxu0 %v4763_v38 }
 0x174   : > { %1810 = vmatprep.subr.bf16.mxu0 %v4769_v39  ;;  %1767 = vmatpush2.bf16.msra.mxu1 %v4819_v46 }
 0x175   : > { %1768 = vmatprep.subr.bf16.mxu1 %v4825_v47 }
 0x177   : > { %1811 = vmatpush2.bf16.msra.mxu0 %v4777_v40 }
 0x178   : > { %1812 = vmatprep.subr.bf16.mxu0 %v4783_v41  ;;  %1769 = vmatpush2.bf16.msra.mxu1 %v4833_v48 }
 0x179   : > { %1837 = vmatprep.subr.bf16.mxu1 %v4618_v10 }
 0x17b   : > { %1813 = vmatpush2.bf16.msra.mxu0 %v4791_v42 }
 0x17c   : > { %1814 = vmatprep.subr.bf16.mxu0 %v4797_v43 }
 0x17f   : > { %1815 = vmatpush2.bf16.msra.mxu0 %v4805_v44 }
 0x180   : > { %1816 = vmatprep.subr.bf16.mxu0 %v4811_v45 }
 0x183   : > { %1817 = vmatpush2.bf16.msra.mxu0 %v4819_v46 }
 0x184   : > { %1818 = vmatprep.subr.bf16.mxu0 %v4825_v47 }
 0x187   : > { %1819 = vmatpush2.bf16.msra.mxu0 %v4833_v48 }
 0x188   : > { %1886 = vmatprep.subr.bf16.mxu0 %v4618_v10 }
 0x1aa   : > { %v987_v53 = vpop.f32.mrf.mxu0  ;;  %v1028_v54 = vpop.f32.mrf.mxu1 }
 0x1ab   : > { %v4857_v55 = vmax.f32 %v987_v53, 0.0  ;;  %v4859_v56 = vmax.f32 %v1028_v54, 0.0 }
 0x1ac   : > { %v989_v58 = vpop.f32.mrf.mxu0  ;;  %v1030_v59 = vpop.f32.mrf.mxu1 }
 0x1ad   : > { %6162 = vst [vmem:[#allocation11_spill] sm:$0xff] %v4857_v55  ;;  %6163 = vst [vmem:[#allocation12_spill] sm:$0xff] %v4859_v56  ;;  %v1487_v60 = vmax.f32 %v989_v58, 0.0  ;;  %v1489_v61 = vmax.f32 %v1030_v59, 0.0  ;;  %v1576_v3 = vpack.c.bf16 %v4857_v55, %v4857_v55  ;;  %v1786_v4 = vpack.c.bf16 %v4859_v56, %v4859_v56  ;;  %v5164_v56 = vld [vmem:[%s6100_s2 + $0xc8] ss:$12 sps:$4 sm:$0xff]  }
 0x1ae   : > { %v991_v63 = vpop.f32.mrf.mxu0  ;;  %v1032_v0 = vpop.f32.mrf.mxu1  ;;  %v5171_v55 = vld [vmem:[%s6100_s2 + $0x8] ss:$12 sps:$4 sm:$0xff]  }
 0x1af   : > { %v1577_v1 = vpack.c.bf16 %v1487_v60, %v1487_v60  ;;  %v1787_v2 = vpack.c.bf16 %v1489_v61, %v1489_v61 }
 0x1b0   : > { %v992_v5 = vpop.f32.mrf.mxu0  ;;  %v1033_v6 = vpop.f32.mrf.mxu1 }
 0x1b1   : > { %1770 = vmatprep.mubr.bf16.mxu1 %v1577_v1  ;;  %1820 = vmatprep.mubr.bf16.mxu0 %v1787_v2 }
 0x1b2   : > { %1771 = vmatmul.mubr.bf16.vlgmr.msra.gmra.mxu1 %v1576_v3  ;;  %1821 = vmatmul.mubr.bf16.vlgmr.msra.gmra.mxu0 %v1786_v4 }
 0x1b3   : > { %1838 = vmatpush1.bf16.msra.mxu1 %v4624_v14  ;;  %1887 = vmatpush1.bf16.msra.mxu0 %v4624_v14 }
 0x1b4   : > { %1839 = vmatprep.subr.bf16.mxu1 %v4629_v15  ;;  %1888 = vmatprep.subr.bf16.mxu0 %v4629_v15 }
 0x1b7   : > { %1840 = vmatpush1.bf16.msra.mxu1 %v4640_v18  ;;  %1889 = vmatpush1.bf16.msra.mxu0 %v4640_v18 }
 0x1b8   : > { %1841 = vmatprep.subr.bf16.mxu1 %v4646_v19  ;;  %1890 = vmatprep.subr.bf16.mxu0 %v4646_v19 }
 0x1ba   : > { %v4877_v8 = vpop.f32.mrf.mxu0  ;;  %v4879_v9 = vpop.f32.mrf.mxu1 }
 0x1bb   : > { %1842 = vmatpush1.bf16.msra.mxu1 %v4652_v21  ;;  %1891 = vmatpush1.bf16.msra.mxu0 %v4652_v21 }
 0x1bc   : > { %v1071_v13 = vpop.f32.mrf.mxu0  ;;  %v1112_v16 = vpop.f32.mrf.mxu1  ;;  %1843 = vmatprep.subr.bf16.mxu1 %v4658_v22  ;;  %1892 = vmatprep.subr.bf16.mxu0 %v4658_v22 }
 0x1bd   : > { %v1491_v17 = vmax.f32 %v1071_v13, 0.0  ;;  %v1493_v20 = vmax.f32 %v1112_v16, 0.0 }
 0x1be   : > { %v1073_v35 = vpop.f32.mrf.mxu0  ;;  %v1114_v23 = vpop.f32.mrf.mxu1 }
 0x1bf   : > { %v1836_v53 = vpack.c.bf16 %v1491_v17, %v1491_v17  ;;  %v1885_v54 = vpack.c.bf16 %v1493_v20, %v1493_v20  ;;  %1844 = vmatpush1.bf16.msra.mxu1 %v4664_v24  ;;  %1893 = vmatpush1.bf16.msra.mxu0 %v4664_v24 }
 0x1c0   : > { %v1074_v58 = vpop.f32.mrf.mxu0  ;;  %v1115_v59 = vpop.f32.mrf.mxu1  ;;  %1845 = vmatprep.subr.bf16.mxu1 %v4670_v25  ;;  %1894 = vmatprep.subr.bf16.mxu0 %v4670_v25 }
 0x1c1   : > { %1869 = vmatprep.mubr.bf16.mxu1 %v1836_v53  ;;  %1918 = vmatprep.mubr.bf16.mxu0 %v1885_v54  ;;  %v4954_v58 = vmax.f32 %v4877_v8, 0.0  ;;  %v4957_v59 = vmax.f32 %v4879_v9, 0.0 }
 0x1c3   : > { %1846 = vmatpush1.bf16.msra.mxu1 %v4677_v26  ;;  %1895 = vmatpush1.bf16.msra.mxu0 %v4677_v26  ;;  %6166 = vst [vmem:[#allocation15_spill] sm:$0xff] %v4954_v58  ;;  %6167 = vst [vmem:[#allocation16_spill] sm:$0xff] %v4957_v59  ;;  %v1835_v8 = vpack.c.bf16 %v4954_v58, %v4954_v58  ;;  %v1884_v9 = vpack.c.bf16 %v4957_v59, %v4957_v59  ;;  %v5143_v59 = vld [vmem:[%s6100_s2 + $0x38] ss:$12 sps:$4 sm:$0xff]   ;;  %v5157_v58 = vld [vmem:[%s6100_s2 + $0x20] ss:$12 sps:$4 sm:$0xff]  }
 0x1c4   : > { %1847 = vmatprep.subr.bf16.mxu1 %v4683_v27  ;;  %1896 = vmatprep.subr.bf16.mxu0 %v4683_v27 }
 0x1c7   : > { %1848 = vmatpush1.bf16.msra.mxu1 %v4693_v28  ;;  %1897 = vmatpush1.bf16.msra.mxu0 %v4693_v28 }
 0x1c8   : > { %1849 = vmatprep.subr.bf16.mxu1 %v4699_v29  ;;  %1898 = vmatprep.subr.bf16.mxu0 %v4699_v29 }
 0x1ca   : > { %v4899_v60 = vpop.f32.mrf.mxu0  ;;  %v4901_v61 = vpop.f32.mrf.mxu1 }
 0x1cb   : > { %1850 = vmatpush1.bf16.msra.mxu1 %v4707_v57  ;;  %1899 = vmatpush1.bf16.msra.mxu0 %v4707_v57 }
 0x1cc   : > { %v4905_v63 = vpop.f32.mrf.mxu0  ;;  %v4907_v0 = vpop.f32.mrf.mxu1  ;;  %1851 = vmatprep.subr.bf16.mxu1 %v4713_v30  ;;  %1900 = vmatprep.subr.bf16.mxu0 %v4713_v30 }
 0x1ce   : > { %v1155_v1 = vpop.f32.mrf.mxu0  ;;  %v1196_v2 = vpop.f32.mrf.mxu1 }
 0x1cf   : > { %1852 = vmatpush1.bf16.msra.mxu1 %v4721_v31  ;;  %1901 = vmatpush1.bf16.msra.mxu0 %v4721_v31 }
 0x1d0   : > { %v1156_v3 = vpop.f32.mrf.mxu0  ;;  %v1197_v4 = vpop.f32.mrf.mxu1  ;;  %1853 = vmatprep.subr.bf16.mxu1 %v4727_v32  ;;  %1902 = vmatprep.subr.bf16.mxu0 %v4727_v32 }
 0x1d1   : > { %v1495_v3 = vmax.f32 %v4905_v63, 0.0  ;;  %v1497_v4 = vmax.f32 %v4907_v0, 0.0 }
 0x1d3   : > { %1854 = vmatpush2.bf16.msra.mxu1 %v4735_v33  ;;  %1903 = vmatpush2.bf16.msra.mxu0 %v4735_v33  ;;  %v1934_v63 = vpack.c.bf16 %v1495_v3, %v1495_v3  ;;  %v4975_v0 = vpack.c.bf16 %v1497_v4, %v1497_v4  ;;  %v6106_v3 = vmov 46  }
 0x1d4   : > { %1855 = vmatprep.subr.bf16.mxu1 %v4741_v34  ;;  %1904 = vmatprep.subr.bf16.mxu0 %v4741_v34 }
 0x1d5   : > { %3973 = vset.pattern.permute.xlu1 %v6106_v3  ;;  %v5060_v3 = vmax.f32 %v4901_v61, 0.0 }
 0x1d6   : > { %1977 = vperm.xlu1 %3973, %v4840_v51  }
 0x1d7   : > { %1856 = vmatpush2.bf16.msra.mxu1 %v4749_v36  ;;  %1905 = vmatpush2.bf16.msra.mxu0 %v4749_v36  ;;  %6177 = vst [vmem:[#allocation26_spill] sm:$0xff] %v5060_v3  ;;  %v1982_v61 = vpack.c.bf16 %v5060_v3, %v5060_v3  ;;  %v5150_v3 = vld [vmem:[%s6100_s2 + $0xe0] ss:$12 sps:$4 sm:$0xff]  }
 0x1d8   : > { %1857 = vmatprep.subr.bf16.mxu1 %v4755_v37  ;;  %1906 = vmatprep.subr.bf16.mxu0 %v4755_v37 }
 0x1da   : > { %v4923_v5 = vpop.f32.mrf.mxu0  ;;  %v4925_v6 = vpop.f32.mrf.mxu1 }
 0x1db   : > { %1858 = vmatpush2.bf16.msra.mxu1 %v4763_v38  ;;  %1907 = vmatpush2.bf16.msra.mxu0 %v4763_v38 }
 0x1dc   : > { %v4929_v13 = vpop.f32.mrf.mxu0  ;;  %v4931_v16 = vpop.f32.mrf.mxu1  ;;  %1859 = vmatprep.subr.bf16.mxu1 %v4769_v39  ;;  %1908 = vmatprep.subr.bf16.mxu0 %v4769_v39 }
 0x1dd   : > { %v1499_v11 = vmax.f32 %v4929_v13, 0.0  ;;  %v5080_v13 = vld [vmem:[%s6100_s2 + $0x158] ss:$12 sps:$4 sm:$0xff]  }
 0x1de   : > { %v1237_v17 = vpop.f32.mrf.mxu0  ;;  %v1278_v20 = vpop.f32.mrf.mxu1 }
 0x1df   : > { %1860 = vmatpush2.bf16.msra.mxu1 %v4777_v40  ;;  %1909 = vmatpush2.bf16.msra.mxu0 %v4777_v40  ;;  %v2169_v62 = vpack.c.bf16 %v1499_v11, %v1499_v11  ;;  %v5108_v11 = vld [vmem:[%s6100_s2 + $0x128] ss:$12 sps:$4 sm:$0xff]  }
 0x1e0   : > { %v1238_v35 = vpop.f32.mrf.mxu0  ;;  %v1279_v23 = vpop.f32.mrf.mxu1  ;;  %1861 = vmatprep.subr.bf16.mxu1 %v4783_v41  ;;  %1910 = vmatprep.subr.bf16.mxu0 %v4783_v41 }
 0x1e3   : > { %1862 = vmatpush2.bf16.msra.mxu1 %v4791_v42  ;;  %1911 = vmatpush2.bf16.msra.mxu0 %v4791_v42 }
 0x1e4   : > { %1863 = vmatprep.subr.bf16.mxu1 %v4797_v43  ;;  %1912 = vmatprep.subr.bf16.mxu0 %v4797_v43 }
 0x1e7   : > { %1864 = vmatpush2.bf16.msra.mxu1 %v4805_v44  ;;  %1913 = vmatpush2.bf16.msra.mxu0 %v4805_v44 }
 0x1e8   : > { %1865 = vmatprep.subr.bf16.mxu1 %v4811_v45  ;;  %1914 = vmatprep.subr.bf16.mxu0 %v4811_v45 }
 0x1ea   : > { %v4947_v53 = vpop.f32.mrf.mxu0  ;;  %v4949_v54 = vpop.f32.mrf.mxu1 }
 0x1eb   : > { %6164 = vst [vmem:[#allocation13_spill] sm:$0xff] %v4947_v53  ;;  %6165 = vst [vmem:[#allocation14_spill] sm:$0xff] %v4949_v54  ;;  %1866 = vmatpush2.bf16.msra.mxu1 %v4819_v46  ;;  %1915 = vmatpush2.bf16.msra.mxu0 %v4819_v46 }
 0x1ec   : > { %v4959_v1 = vpop.f32.mrf.mxu0  ;;  %v4961_v2 = vpop.f32.mrf.mxu1  ;;  %1867 = vmatprep.subr.bf16.mxu1 %v4825_v47  ;;  %1916 = vmatprep.subr.bf16.mxu0 %v4825_v47 }
 0x1ed   : > { %6168 = vst [vmem:[#allocation17_spill] sm:$0xff] %v4961_v2 }
 0x1ee   : > { %v1319_v17 = vpop.f32.mrf.mxu0  ;;  %v1360_v20 = vpop.f32.mrf.mxu1 }
 0x1ef   : > { %1868 = vmatpush2.bf16.msra.mxu1 %v4833_v48  ;;  %1917 = vmatpush2.bf16.msra.mxu0 %v4833_v48 }
 0x1f0   : > { %v1320_v35 = vpop.f32.mrf.mxu0  ;;  %v1361_v23 = vpop.f32.mrf.mxu1  ;;  %1935 = vmatprep.subr.bf16.mxu1 %v4618_v10  ;;  %2080 = vmatprep.subr.bf16.mxu0 %v4618_v10 }
 0x1f2   : > { %1870 = vmatmul.mubr.bf16.vlgmr.msra.gmra.mxu1 %v1835_v8  ;;  %1919 = vmatmul.mubr.bf16.vlgmr.msra.gmra.mxu0 %v1884_v9 }
 0x1f3   : > { %1936 = vmatpush1.bf16.msra.mxu1 %v4624_v14  ;;  %1967 = vmatprep.mubr.bf16.mxu1 %v1934_v63 }
 0x1f4   : > { %2081 = vmatpush1.bf16.msra.mxu0 %v4624_v14  ;;  %2112 = vmatprep.mubr.bf16.mxu0 %v4975_v0 }
 0x1f5   : > { %1937 = vmatprep.subr.bf16.mxu1 %v4629_v15  ;;  %2082 = vmatprep.subr.bf16.mxu0 %v4629_v15 }
 0x1f7   : > { %1938 = vmatpush1.bf16.msra.mxu1 %v4640_v18 }
 0x1f8   : > { %2083 = vmatpush1.bf16.msra.mxu0 %v4640_v18  ;;  %1939 = vmatprep.subr.bf16.mxu1 %v4646_v19 }
 0x1f9   : > { %2084 = vmatprep.subr.bf16.mxu0 %v4646_v19 }
 0x1fa   : > { %v4987_v4 = vpop.f32.mrf.mxu0  ;;  %v4989_v17 = vpop.f32.mrf.mxu1 }
 0x1fb   : > { %6169 = vst [vmem:[#allocation18_spill] sm:$0xff] %v4987_v4  ;;  %6170 = vst [vmem:[#allocation19_spill] sm:$0xff] %v4989_v17  ;;  %1940 = vmatpush1.bf16.msra.mxu1 %v4652_v21 }
 0x1fc   : > { %2085 = vmatpush1.bf16.msra.mxu0 %v4652_v21  ;;  %v4994_v20 = vpop.f32.mrf.mxu0  ;;  %v4996_v8 = vpop.f32.mrf.mxu1  ;;  %1941 = vmatprep.subr.bf16.mxu1 %v4658_v22 }
 0x1fd   : > { %6171 = vst [vmem:[#allocation20_spill] sm:$0xff] %v4994_v20  ;;  %6172 = vst [vmem:[#allocation21_spill] sm:$0xff] %v4996_v8  ;;  %2086 = vmatprep.subr.bf16.mxu0 %v4658_v22 }
 0x1fe   : > { %v1401_v9 = vpop.f32.mrf.mxu0  ;;  %v1442_v35 = vpop.f32.mrf.mxu1 }
 0x1ff   : > { %1942 = vmatpush1.bf16.msra.mxu1 %v4664_v24 }
 0x200   : > { %2087 = vmatpush1.bf16.msra.mxu0 %v4664_v24  ;;  %v1402_v23 = vpop.f32.mrf.mxu0  ;;  %v1443_v63 = vpop.f32.mrf.mxu1  ;;  %1943 = vmatprep.subr.bf16.mxu1 %v4670_v25 }
 0x201   : > { %2088 = vmatprep.subr.bf16.mxu0 %v4670_v25 }
 0x203   : > { %1944 = vmatpush1.bf16.msra.mxu1 %v4677_v26 }
 0x204   : > { %2089 = vmatpush1.bf16.msra.mxu0 %v4677_v26  ;;  %1945 = vmatprep.subr.bf16.mxu1 %v4683_v27 }
 0x205   : > { %2090 = vmatprep.subr.bf16.mxu0 %v4683_v27 }
 0x207   : > { %1946 = vmatpush1.bf16.msra.mxu1 %v4693_v28 }
 0x208   : > { %2091 = vmatpush1.bf16.msra.mxu0 %v4693_v28  ;;  %1947 = vmatprep.subr.bf16.mxu1 %v4699_v29 }
 0x209   : > { %2092 = vmatprep.subr.bf16.mxu0 %v4699_v29 }
 0x20a   : > { %v5012_v9 = vpop.f32.mrf.mxu0 }
 0x20b   : > { %6173 = vst [vmem:[#allocation22_spill] sm:$0xff] %v5012_v9  ;;  %1948 = vmatpush1.bf16.msra.mxu1 %v4707_v57  ;;  %v6121_v9 = vmov 47  }
 0x20c   : > { %2093 = vmatpush1.bf16.msra.mxu0 %v4707_v57  ;;  %v5016_v35 = vpop.f32.mrf.mxu0  ;;  %1949 = vmatprep.subr.bf16.mxu1 %v4713_v30 }
 0x20d   : > { %6174 = vst [vmem:[#allocation23_spill] sm:$0xff] %v5016_v35  ;;  %2094 = vmatprep.subr.bf16.mxu0 %v4713_v30  ;;  %3974 = vset.pattern.permute.xlu1 %v6121_v9  ;;  %v1831_v35 = vpop.permute.xlu1 %1830 }
 0x20e   : > { %v1483_v23 = vpop.f32.mrf.mxu0  ;;  %2342 = vperm.xlu1 %3974, %v4840_v51  }
 0x20f   : > { %1950 = vmatpush1.bf16.msra.mxu1 %v4721_v31  ;;  %v5050_v23 = vmax.f32 %v4899_v60, 0.0  ;;  %v5068_v60 = vld [vmem:[%s6100_s2 + $0xb0] ss:$12 sps:$4 sm:$0xff]  }
 0x210   : > { %2095 = vmatpush1.bf16.msra.mxu0 %v4721_v31  ;;  %v1484_v63 = vpop.f32.mrf.mxu0  ;;  %1951 = vmatprep.subr.bf16.mxu1 %v4727_v32  ;;  %6178 = vst [vmem:[#allocation27_spill] sm:$0xff] %v5068_v60 }
 0x211   : > { %2096 = vmatprep.subr.bf16.mxu0 %v4727_v32  ;;  %6175 = vst [vmem:[#allocation24_spill] sm:$0xff] %v5050_v23  ;;  %v5057_v63 = vld [vmem:[%s6100_s2 + $0x170] ss:$12 sps:$4 sm:$0xff]   ;;  %v1933_v7 = vpack.c.bf16 %v5050_v23, %v5050_v23  ;;  %v5136_v23 = vld [vmem:[%s6100_s2 + $0xf8] ss:$12 sps:$4 sm:$0xff]  }
 0x212   : > { %6176 = vst [vmem:[#allocation25_spill] sm:$0xff] %v5057_v63 }
 0x213   : > { %1952 = vmatpush2.bf16.msra.mxu1 %v4735_v33 }
 0x214   : > { %2097 = vmatpush2.bf16.msra.mxu0 %v4735_v33  ;;  %1953 = vmatprep.subr.bf16.mxu1 %v4741_v34 }
 0x215   : > { %2098 = vmatprep.subr.bf16.mxu0 %v4741_v34 }
 0x217   : > { %1954 = vmatpush2.bf16.msra.mxu1 %v4749_v36 }
 0x218   : > { %2099 = vmatpush2.bf16.msra.mxu0 %v4749_v36  ;;  %1955 = vmatprep.subr.bf16.mxu1 %v4755_v37 }
 0x219   : > { %2100 = vmatprep.subr.bf16.mxu0 %v4755_v37 }
 0x21b   : > { %1956 = vmatpush2.bf16.msra.mxu1 %v4763_v38 }
 0x21c   : > { %2101 = vmatpush2.bf16.msra.mxu0 %v4763_v38  ;;  %1957 = vmatprep.subr.bf16.mxu1 %v4769_v39 }
 0x21d   : > { %2102 = vmatprep.subr.bf16.mxu0 %v4769_v39 }
 0x21f   : > { %1958 = vmatpush2.bf16.msra.mxu1 %v4777_v40 }
 0x220   : > { %2103 = vmatpush2.bf16.msra.mxu0 %v4777_v40  ;;  %1959 = vmatprep.subr.bf16.mxu1 %v4783_v41 }
 0x221   : > { %2104 = vmatprep.subr.bf16.mxu0 %v4783_v41 }
 0x223   : > { %1960 = vmatpush2.bf16.msra.mxu1 %v4791_v42 }
 0x224   : > { %2105 = vmatpush2.bf16.msra.mxu0 %v4791_v42  ;;  %1961 = vmatprep.subr.bf16.mxu1 %v4797_v43 }
 0x225   : > { %2106 = vmatprep.subr.bf16.mxu0 %v4797_v43 }
 0x227   : > { %1962 = vmatpush2.bf16.msra.mxu1 %v4805_v44 }
 0x228   : > { %2107 = vmatpush2.bf16.msra.mxu0 %v4805_v44  ;;  %1963 = vmatprep.subr.bf16.mxu1 %v4811_v45 }
 0x229   : > { %2108 = vmatprep.subr.bf16.mxu0 %v4811_v45 }
 0x22b   : > { %1964 = vmatpush2.bf16.msra.mxu1 %v4819_v46 }
 0x22c   : > { %2109 = vmatpush2.bf16.msra.mxu0 %v4819_v46  ;;  %1965 = vmatprep.subr.bf16.mxu1 %v4825_v47 }
 0x22d   : > { %2110 = vmatprep.subr.bf16.mxu0 %v4825_v47 }
 0x22f   : > { %1966 = vmatpush2.bf16.msra.mxu1 %v4833_v48 }
 0x230   : > { %2111 = vmatpush2.bf16.msra.mxu0 %v4833_v48  ;;  %3658 = vmatprep.subr.bf16.mxu1 %v5057_v63 }
 0x231   : > { %2170 = vmatprep.subr.bf16.mxu0 %v4618_v10 }
 0x232   : > { %1968 = vmatmul.mubr.bf16.vlgmr.msra.gmra.mxu1 %v1933_v7  ;;  %v5101_v7 = vld [vmem:[%s6100_s2 + $0x80] ss:$12 sps:$4 sm:$0xff]  }
 0x233   : > { %2113 = vmatmul.mubr.bf16.vlgmr.msra.gmra.mxu0 %v1982_v61  ;;  %3659 = vmatpush3.bf16.msra.mxu1 %v5068_v60 }
 0x234   : > { %2153 = vmatprep.mubr.bf16.mxu1 %v4975_v0  ;;  %2171 = vmatpush1.bf16.msra.mxu0 %v4624_v14  ;;  %v5115_v0 = vld [vmem:[%s6100_s2 + $0x68] ss:$12 sps:$4 sm:$0xff]  }
 0x235   : > { %2202 = vmatprep.mubr.bf16.mxu0 %v2169_v62  ;;  %3660 = vmatprep.subr.bf16.mxu1 %v5080_v13 }
 0x236   : > { %2172 = vmatprep.subr.bf16.mxu0 %v4629_v15 }
 0x237   : > { %3661 = vmatpush3.bf16.msra.mxu1 %v5086_v52 }
 0x238   : > { %2173 = vmatpush1.bf16.msra.mxu0 %v4640_v18  ;;  %3662 = vmatprep.subr.bf16.mxu1 %v5093_v12 }
 0x239   : > { %2174 = vmatprep.subr.bf16.mxu0 %v4646_v19 }
 0x23b   : > { %3663 = vmatpush3.bf16.msra.mxu1 %v5101_v7 }
 0x23c   : > { %2175 = vmatpush1.bf16.msra.mxu0 %v4652_v21  ;;  %3664 = vmatprep.subr.bf16.mxu1 %v5108_v11 }
 0x23d   : > { %2176 = vmatprep.subr.bf16.mxu0 %v4658_v22 }
 0x23f   : > { %3665 = vmatpush3.bf16.msra.mxu1 %v5115_v0 }
 0x240   : > { %2177 = vmatpush1.bf16.msra.mxu0 %v4664_v24  ;;  %3666 = vmatprep.subr.bf16.mxu1 %v5122_v49 }
 0x241   : > { %2178 = vmatprep.subr.bf16.mxu0 %v4670_v25 }
 0x243   : > { %3667 = vmatpush3.bf16.msra.mxu1 %v5129_v50 }
 0x244   : > { %2179 = vmatpush1.bf16.msra.mxu0 %v4677_v26  ;;  %3668 = vmatprep.subr.bf16.mxu1 %v5136_v23 }
 0x245   : > { %2180 = vmatprep.subr.bf16.mxu0 %v4683_v27 }
 0x247   : > { %3669 = vmatpush3.bf16.msra.mxu1 %v5143_v59 }
 0x248   : > { %2181 = vmatpush1.bf16.msra.mxu0 %v4693_v28  ;;  %3670 = vmatprep.subr.bf16.mxu1 %v5150_v3 }
 0x249   : > { %2182 = vmatprep.subr.bf16.mxu0 %v4699_v29 }
 0x24b   : > { %3671 = vmatpush3.bf16.msra.mxu1 %v5157_v58 }
 0x24c   : > { %2183 = vmatpush1.bf16.msra.mxu0 %v4707_v57  ;;  %3672 = vmatprep.subr.bf16.mxu1 %v5164_v56 }
 0x24d   : > { %2184 = vmatprep.subr.bf16.mxu0 %v4713_v30 }
 0x24f   : > { %3673 = vmatpush3.bf16.msra.mxu1 %v5171_v55 }
 0x250   : > { %2185 = vmatpush1.bf16.msra.mxu0 %v4721_v31  ;;  %3680 = vmatprep.subr.bf16.mxu1 %v5057_v63 }
 0x251   : > { %2186 = vmatprep.subr.bf16.mxu0 %v4727_v32 }
 0x252   : > { %2154 = vmatmul.mubr.bf16.vlgmr.msra.gmra.mxu1 %v1982_v61  ;;  %v1501_v61 = vmax.f32 %v4931_v16, 0.0 }
 0x253   : > { %3681 = vmatpush3.bf16.msra.mxu1 %v5068_v60  ;;  %2243 = vmatprep.mubr.bf16.mxu1 %v2169_v62  ;;  %v5208_v62 = vmax.f32 %v4923_v5, 0.0  ;;  %v1782_v5 = vpop.permute.xlu0 %1781 }
 0x254   : > { %2187 = vmatpush2.bf16.msra.mxu0 %v4735_v33  ;;  %3682 = vmatprep.subr.bf16.mxu1 %v5080_v13  ;;  %v2259_v17 = vpack.c.bf16 %v1501_v61, %v1501_v61 }
 0x255   : > { %2188 = vmatprep.subr.bf16.mxu0 %v4741_v34  ;;  %6179 = vst [vmem:[#allocation28_spill] sm:$0xff] %v5208_v62  ;;  %v2168_v9 = vpack.c.bf16 %v5208_v62, %v5208_v62 }
 0x257   : > { %3683 = vmatpush3.bf16.msra.mxu1 %v5086_v52 }
 0x258   : > { %2189 = vmatpush2.bf16.msra.mxu0 %v4749_v36  ;;  %3684 = vmatprep.subr.bf16.mxu1 %v5093_v12 }
 0x259   : > { %2190 = vmatprep.subr.bf16.mxu0 %v4755_v37 }
 0x25b   : > { %3685 = vmatpush3.bf16.msra.mxu1 %v5101_v7 }
 0x25c   : > { %2191 = vmatpush2.bf16.msra.mxu0 %v4763_v38  ;;  %3686 = vmatprep.subr.bf16.mxu1 %v5108_v11 }
 0x25d   : > { %2192 = vmatprep.subr.bf16.mxu0 %v4769_v39 }
 0x25f   : > { %3687 = vmatpush3.bf16.msra.mxu1 %v5115_v0 }
 0x260   : > { %2193 = vmatpush2.bf16.msra.mxu0 %v4777_v40  ;;  %3688 = vmatprep.subr.bf16.mxu1 %v5122_v49 }
 0x261   : > { %2194 = vmatprep.subr.bf16.mxu0 %v4783_v41 }
 0x263   : > { %3689 = vmatpush3.bf16.msra.mxu1 %v5129_v50 }
 0x264   : > { %2195 = vmatpush2.bf16.msra.mxu0 %v4791_v42  ;;  %3690 = vmatprep.subr.bf16.mxu1 %v5136_v23 }
 0x265   : > { %2196 = vmatprep.subr.bf16.mxu0 %v4797_v43 }
 0x267   : > { %3691 = vmatpush3.bf16.msra.mxu1 %v5143_v59 }
 0x268   : > { %2197 = vmatpush2.bf16.msra.mxu0 %v4805_v44  ;;  %3692 = vmatprep.subr.bf16.mxu1 %v5150_v3 }
 0x269   : > { %2198 = vmatprep.subr.bf16.mxu0 %v4811_v45 }
 0x26b   : > { %3693 = vmatpush3.bf16.msra.mxu1 %v5157_v58 }
 0x26c   : > { %2199 = vmatpush2.bf16.msra.mxu0 %v4819_v46  ;;  %3694 = vmatprep.subr.bf16.mxu1 %v5164_v56 }
 0x26d   : > { %2200 = vmatprep.subr.bf16.mxu0 %v4825_v47 }
 0x26f   : > { %3695 = vmatpush3.bf16.msra.mxu1 %v5171_v55 }
 0x270   : > { %2201 = vmatpush2.bf16.msra.mxu0 %v4833_v48  ;;  %2260 = vmatprep.subr.bf16.mxu1 %v4618_v10 }
 0x271   : > { %3702 = vmatprep.subr.bf16.mxu0 %v5057_v63 }
 0x272   : > { %2244 = vmatmul.mubr.bf16.vlgmr.msra.gmra.mxu1 %v2168_v9  ;;  %v1772_v8 = vpop.f32.mrf.mxu1  ;;  %v1822_v4 = vpop.f32.mrf.mxu0 }
 0x273   : > { %2203 = vmatmul.mubr.bf16.vlgmr.msra.gmra.mxu0 %v2168_v9  ;;  %v5220_v20 = vmul.f32 %v1831_v35, %v1822_v4  ;;  %2261 = vmatpush1.bf16.msra.mxu1 %v4624_v14  ;;  %v5223_v16 = vmul.f32 %v1782_v5, %v1772_v8 }
 0x274   : > { %2292 = vmatprep.mubr.bf16.mxu1 %v2259_v17  ;;  %3703 = vmatpush3.bf16.msra.mxu0 %v5068_v60  ;;  %v1774_v62 = vpop.f32.mrf.mxu1  ;;  %v1824_v54 = vpop.f32.mrf.mxu0 }
 0x275   : > { %6180 = vst [vmem:[#allocation29_spill] sm:$0xff] %v5220_v20  ;;  %6181 = vst [vmem:[#allocation30_spill] sm:$0xff] %v5223_v16  ;;  %2333 = vmatprep.mubr.bf16.mxu0 %v2259_v17  ;;  %v5228_v2 = vmax.f32 %v5223_v16, %v5220_v20  ;;  %v5230_v61 = vmul.f32 %v1782_v5, %v1774_v62  ;;  %v5232_v53 = vmul.f32 %v1831_v35, %v1824_v54 }
 0x276   : > { %2262 = vmatprep.subr.bf16.mxu1 %v4629_v15  ;;  %3704 = vmatprep.subr.bf16.mxu0 %v5080_v13  ;;  %v1776_v4 = vpop.f32.mrf.mxu1  ;;  %v1826_v8 = vpop.f32.mrf.mxu0  ;;  %v5262_v54 = vmax.f32 %v4925_v6, 0.0  ;;  %v1503_v35 = vmax.f32 %v4959_v1, 0.0  ;;  %v5431_v6 = vld [vmem:[%s6100_s2 + $0x48] ss:$12 sps:$4 sm:$0xff]  }
 0x277   : > { %v2905_v9 = vmax.f32 %v5230_v61, %v5232_v53  ;;  %2263 = vmatpush1.bf16.msra.mxu1 %v4640_v18  ;;  %v5440_v1 = vld [vmem:[%s6100_s2 + $0x34] ss:$12 sps:$4 sm:$0xff]   ;;  %v5454_v61 = vld [vmem:[%s6100_s2 + $0x1c] ss:$12 sps:$4 sm:$0xff]   ;;  %v5463_v8 = vld [vmem:[%s6100_s2 + $0x18] ss:$12 sps:$4 sm:$0xff]  }
 0x278   : > { %3705 = vmatpush3.bf16.msra.mxu0 %v5086_v52  ;;  %v1777_v17 = vpop.f32.mrf.mxu1  ;;  %v1827_v16 = vpop.f32.mrf.mxu0  ;;  %2264 = vmatprep.subr.bf16.mxu1 %v4646_v19  ;;  %6182 = vst [vmem:[#allocation31_spill] sm:$0xff] %v5262_v54  ;;  %v2258_v62 = vpack.c.bf16 %v5262_v54, %v5262_v54  ;;  %v2349_v5 = vpack.c.bf16 %v1503_v35, %v1503_v35  ;;  %v5569_v54 = vld [vmem:[%s4552_s14] sm:$0xff]  ;;  %s6057_s14 = scalar_lea.hbm %s6104_s6, %s3655_s9 }
 0x279   : > { %3706 = vmatprep.subr.bf16.mxu0 %v5093_v12  ;;  %v5447_v16 = vld [vmem:[%s6100_s2 + $0x30] ss:$12 sps:$4 sm:$0xff]   ;;  %v6191_v17 = vld [vmem:[#allocation14_spill] sm:$0xff]  ;;  %6199 = vst [vmem:[#allocation39_spill] sm:$0xff] %v5569_v54 }
 0x27a   : > { %v1504_v35 = vmax.f32 %v6191_v17, 0.0 }
 0x27b   : > { %2265 = vmatpush1.bf16.msra.mxu1 %v4652_v21 }
 0x27c   : > { %3707 = vmatpush3.bf16.msra.mxu0 %v5101_v7  ;;  %2266 = vmatprep.subr.bf16.mxu1 %v4658_v22 }
 0x27d   : > { %3708 = vmatprep.subr.bf16.mxu0 %v5108_v11 }
 0x27f   : > { %2267 = vmatpush1.bf16.msra.mxu1 %v4664_v24 }
 0x280   : > { %3709 = vmatpush3.bf16.msra.mxu0 %v5115_v0  ;;  %2268 = vmatprep.subr.bf16.mxu1 %v4670_v25 }
 0x281   : > { %3710 = vmatprep.subr.bf16.mxu0 %v5122_v49 }
 0x283   : > { %2269 = vmatpush1.bf16.msra.mxu1 %v4677_v26 }
 0x284   : > { %3711 = vmatpush3.bf16.msra.mxu0 %v5129_v50  ;;  %2270 = vmatprep.subr.bf16.mxu1 %v4683_v27 }
 0x285   : > { %3712 = vmatprep.subr.bf16.mxu0 %v5136_v23 }
 0x287   : > { %2271 = vmatpush1.bf16.msra.mxu1 %v4693_v28 }
 0x288   : > { %3713 = vmatpush3.bf16.msra.mxu0 %v5143_v59  ;;  %2272 = vmatprep.subr.bf16.mxu1 %v4699_v29 }
 0x289   : > { %3714 = vmatprep.subr.bf16.mxu0 %v5150_v3 }
 0x28b   : > { %2273 = vmatpush1.bf16.msra.mxu1 %v4707_v57 }
 0x28c   : > { %3715 = vmatpush3.bf16.msra.mxu0 %v5157_v58  ;;  %2274 = vmatprep.subr.bf16.mxu1 %v4713_v30 }
 0x28d   : > { %3716 = vmatprep.subr.bf16.mxu0 %v5164_v56 }
 0x28f   : > { %2275 = vmatpush1.bf16.msra.mxu1 %v4721_v31 }
 0x290   : > { %3717 = vmatpush3.bf16.msra.mxu0 %v5171_v55  ;;  %2276 = vmatprep.subr.bf16.mxu1 %v4727_v32 }
 0x291   : > { %2350 = vmatprep.subr.bf16.mxu0 %v4618_v10  ;;  %v6125_v10 = vmov 48  }
 0x292   : > { %3975 = vset.pattern.permute.xlu1 %v6125_v10 }
 0x293   : > { %2334 = vmatmul.mubr.bf16.vlgmr.msra.gmra.mxu0 %v2258_v62  ;;  %2277 = vmatpush2.bf16.msra.mxu1 %v4735_v33 }
 0x294   : > { %2351 = vmatpush1.bf16.msra.mxu0 %v4624_v14  ;;  %2382 = vmatprep.mubr.bf16.mxu0 %v2349_v5  ;;  %v1880_v14 = vpop.permute.xlu1 %1879 }
 0x295   : > { %2278 = vmatprep.subr.bf16.mxu1 %v4741_v34  ;;  %2352 = vmatprep.subr.bf16.mxu0 %v4629_v15 }
 0x296   : > { %2432 = vperm.xlu1 %3975, %v4840_v51  }
 0x297   : > { %2279 = vmatpush2.bf16.msra.mxu1 %v4749_v36 }
 0x298   : > { %2353 = vmatpush1.bf16.msra.mxu0 %v4640_v18  ;;  %2280 = vmatprep.subr.bf16.mxu1 %v4755_v37  ;;  %v5434_v53 = vpop.permute.xlu1 %2162 }
 0x299   : > { %2354 = vmatprep.subr.bf16.mxu0 %v4646_v19 }
 0x29b   : > { %2281 = vmatpush2.bf16.msra.mxu1 %v4763_v38 }
 0x29c   : > { %2355 = vmatpush1.bf16.msra.mxu0 %v4652_v21  ;;  %2282 = vmatprep.subr.bf16.mxu1 %v4769_v39  ;;  %v5458_v4 = vpop.permute.xlu1 %2252 }
 0x29d   : > { %2356 = vmatprep.subr.bf16.mxu0 %v4658_v22 }
 0x29f   : > { %2283 = vmatpush2.bf16.msra.mxu1 %v4777_v40 }
 0x2a0   : > { %2357 = vmatpush1.bf16.msra.mxu0 %v4664_v24  ;;  %2284 = vmatprep.subr.bf16.mxu1 %v4783_v41 }
 0x2a1   : > { %2358 = vmatprep.subr.bf16.mxu0 %v4670_v25  ;;  %v6186_v25 = vld [vmem:[#allocation30_spill] sm:$0xff] }
 0x2a3   : > { %2285 = vmatpush2.bf16.msra.mxu1 %v4791_v42 }
 0x2a4   : > { %2359 = vmatpush1.bf16.msra.mxu0 %v4677_v26  ;;  %2286 = vmatprep.subr.bf16.mxu1 %v4797_v43 }
 0x2a5   : > { %2360 = vmatprep.subr.bf16.mxu0 %v4683_v27 }
 0x2a7   : > { %2287 = vmatpush2.bf16.msra.mxu1 %v4805_v44 }
 0x2a8   : > { %2361 = vmatpush1.bf16.msra.mxu0 %v4693_v28  ;;  %2288 = vmatprep.subr.bf16.mxu1 %v4811_v45 }
 0x2a9   : > { %2362 = vmatprep.subr.bf16.mxu0 %v4699_v29 }
 0x2ab   : > { %2289 = vmatpush2.bf16.msra.mxu1 %v4819_v46 }
 0x2ac   : > { %2363 = vmatpush1.bf16.msra.mxu0 %v4707_v57  ;;  %2290 = vmatprep.subr.bf16.mxu1 %v4825_v47 }
 0x2ad   : > { %2364 = vmatprep.subr.bf16.mxu0 %v4713_v30 }
 0x2af   : > { %2291 = vmatpush2.bf16.msra.mxu1 %v4833_v48 }
 0x2b0   : > { %2365 = vmatpush1.bf16.msra.mxu0 %v4721_v31  ;;  %3724 = vmatprep.subr.bf16.mxu1 %v5057_v63 }
 0x2b1   : > { %2366 = vmatprep.subr.bf16.mxu0 %v4727_v32 }
 0x2b2   : > { %v1871_v15 = vpop.f32.mrf.mxu1  ;;  %v5306_v18 = vpop.f32.mrf.mxu0  ;;  %2293 = vmatmul.mubr.bf16.vlgmr.msra.gmra.mxu1 %v2258_v62  ;;  %v6192_v62 = vld [vmem:[#allocation20_spill] sm:$0xff] }
 0x2b3   : > { %6183 = vst [vmem:[#allocation32_spill] sm:$0xff] %v5306_v18  ;;  %v5308_v19 = vmul.f32 %v1880_v14, %v1871_v15  ;;  %3725 = vmatpush3.bf16.msra.mxu1 %v5068_v60  ;;  %2423 = vmatprep.mubr.bf16.mxu1 %v2349_v5  ;;  %v5476_v5 = vmax.f32 %v6192_v62, 0.0  ;;  %v5484_v15 = vpop.permute.xlu1 %1928 }
 0x2b4   : > { %2367 = vmatpush2.bf16.msra.mxu0 %v4735_v33  ;;  %v1873_v21 = vpop.f32.mrf.mxu1  ;;  %v5312_v22 = vpop.f32.mrf.mxu0  ;;  %3726 = vmatprep.subr.bf16.mxu1 %v5080_v13  ;;  %v6126_v33 = vmov 43   ;;  %6194 = vst [vmem:[#allocation20_spill] sm:$0xff] %v5484_v15 }
 0x2b5   : > { %6184 = vst [vmem:[#allocation33_spill] sm:$0xff] %v5308_v19  ;;  %6185 = vst [vmem:[#allocation34_spill] sm:$0xff] %v5312_v22  ;;  %v2798_v24 = vmax.f32 %v5220_v20, %v5308_v19  ;;  %v2824_v26 = vmax.f32 %v6186_v25, %v5308_v19  ;;  %v2866_v27 = vmax.f32 %v5228_v2, %v5308_v19  ;;  %2368 = vmatprep.subr.bf16.mxu0 %v4741_v34  ;;  %v6187_v34 = vld [vmem:[#allocation13_spill] sm:$0xff]  ;;  %v5617_v20 = vld [vmem:[%s6100_s2 + $0xf0] ss:$12 sps:$4 sm:$0xff]   ;;  %v6137_v25 = vmov 49  }
 0x2b6   : > { %v1883_v28 = vmul.f32 %v1880_v14, %v1873_v21  ;;  %v1875_v29 = vpop.f32.mrf.mxu1  ;;  %v1924_v57 = vpop.f32.mrf.mxu0  ;;  %3976 = vset.pattern.permute.xlu0 %v6126_v33  ;;  %6193 = vst [vmem:[#allocation14_spill] sm:$0xff] %v5476_v5  ;;  %v5481_v14 = vld [vmem:[%s6100_s2] ss:$12 sps:$4 sm:$0xff]   ;;  %v5624_v19 = vld [vmem:[%s6100_s2 + $0xdc] ss:$12 sps:$4 sm:$0xff]  }
 0x2b7   : > { %3727 = vmatpush3.bf16.msra.mxu1 %v5086_v52  ;;  %2521 = vperm.xlu0 %3976, %v4840_v51   ;;  %v5424_v51 = vld [vmem:[%s6100_s2 + $0x4c] ss:$12 sps:$4 sm:$0xff]   ;;  %v5498_v29 = vpack.c.bf16 %v5476_v5, %v5476_v5  ;;  %v5610_v5 = vld [vmem:[%s6100_s2 + $0xf4] ss:$12 sps:$4 sm:$0xff]  }
 0x2b8   : > { %v5325_v30 = vmax.f32 %v2905_v9, %v1883_v28  ;;  %2369 = vmatpush2.bf16.msra.mxu0 %v4749_v36  ;;  %v1876_v31 = vpop.f32.mrf.mxu1  ;;  %v1925_v32 = vpop.f32.mrf.mxu0  ;;  %3728 = vmatprep.subr.bf16.mxu1 %v5093_v12  ;;  %v5351_v36 = vmax.f32 %v6187_v34, 0.0  ;;  %v5470_v9 = vld [vmem:[%s6100_s2 + $0x4] ss:$12 sps:$4 sm:$0xff]   ;;  %v5490_v21 = vld [vmem:[%s6100_s2 + $0x16c] ss:$12 sps:$4 sm:$0xff]   ;;  %v5493_v28 = vpack.c.bf16 %v1504_v35, %v1504_v35 }
 0x2b9   : > { %2370 = vmatprep.subr.bf16.mxu0 %v4755_v37  ;;  %v6189_v37 = vld [vmem:[#allocation17_spill] sm:$0xff]  ;;  %v5506_v32 = vld [vmem:[%s6100_s2 + $0x168] ss:$12 sps:$4 sm:$0xff]   ;;  %v5509_v34 = vpop.permute.xlu1 %1977 }
 0x2ba   : > { %6188 = vst [vmem:[#allocation13_spill] sm:$0xff] %v5351_v36  ;;  %6196 = vst [vmem:[#allocation36_spill] sm:$0xff] %v5509_v34  ;;  %v5522_v35 = vld [vmem:[%s6100_s2 + $0x154] ss:$12 sps:$4 sm:$0xff]   ;;  %v5634_v22 = vld [vmem:[%s6100_s2 + $0xd8] ss:$12 sps:$4 sm:$0xff]  }
 0x2bb   : > { %3729 = vmatpush3.bf16.msra.mxu1 %v5101_v7  ;;  %6200 = vst [vmem:[#allocation40_spill] sm:$0xff] %v5634_v22 }
 0x2bc   : > { %2371 = vmatpush2.bf16.msra.mxu0 %v4763_v38  ;;  %3730 = vmatprep.subr.bf16.mxu1 %v5108_v11  ;;  %v5357_v38 = vmax.f32 %v6189_v37, 0.0 }
 0x2bd   : > { %2372 = vmatprep.subr.bf16.mxu0 %v4769_v39  ;;  %v2348_v39 = vpack.c.bf16 %v5351_v36, %v5351_v36 }
 0x2be   : > { %6190 = vst [vmem:[#allocation17_spill] sm:$0xff] %v5357_v38 }
 0x2bf   : > { %3731 = vmatpush3.bf16.msra.mxu1 %v5115_v0 }
 0x2c0   : > { %2373 = vmatpush2.bf16.msra.mxu0 %v4777_v40  ;;  %3732 = vmatprep.subr.bf16.mxu1 %v5122_v49  ;;  %v5366_v40 = vld [vmem:[%s6100_s2 + $0xac] ss:$12 sps:$4 sm:$0xff]  }
 0x2c1   : > { %2374 = vmatprep.subr.bf16.mxu0 %v4783_v41  ;;  %v2439_v41 = vpack.c.bf16 %v5357_v38, %v5357_v38  ;;  %v5603_v38 = vld [vmem:[%s6100_s2 + $0x108] ss:$12 sps:$4 sm:$0xff]  }
 0x2c3   : > { %3733 = vmatpush3.bf16.msra.mxu1 %v5129_v50 }
 0x2c4   : > { %2375 = vmatpush2.bf16.msra.mxu0 %v4791_v42  ;;  %3734 = vmatprep.subr.bf16.mxu1 %v5136_v23  ;;  %v5375_v42 = vld [vmem:[%s6100_s2 + $0xa8] ss:$12 sps:$4 sm:$0xff]  }
 0x2c5   : > { %2376 = vmatprep.subr.bf16.mxu0 %v4797_v43  ;;  %v5382_v43 = vld [vmem:[%s6100_s2 + $0x94] ss:$12 sps:$4 sm:$0xff]  }
 0x2c7   : > { %3735 = vmatpush3.bf16.msra.mxu1 %v5143_v59 }
 0x2c8   : > { %2377 = vmatpush2.bf16.msra.mxu0 %v4805_v44  ;;  %3736 = vmatprep.subr.bf16.mxu1 %v5150_v3  ;;  %v5389_v44 = vld [vmem:[%s6100_s2 + $0x90] ss:$12 sps:$4 sm:$0xff]  }
 0x2c9   : > { %2378 = vmatprep.subr.bf16.mxu0 %v4811_v45  ;;  %v5396_v45 = vld [vmem:[%s6100_s2 + $0x7c] ss:$12 sps:$4 sm:$0xff]  }
 0x2cb   : > { %3737 = vmatpush3.bf16.msra.mxu1 %v5157_v58 }
 0x2cc   : > { %2379 = vmatpush2.bf16.msra.mxu0 %v4819_v46  ;;  %3738 = vmatprep.subr.bf16.mxu1 %v5164_v56  ;;  %v5403_v46 = vld [vmem:[%s6100_s2 + $0x78] ss:$12 sps:$4 sm:$0xff]  }
 0x2cd   : > { %2380 = vmatprep.subr.bf16.mxu0 %v4825_v47  ;;  %v5410_v47 = vld [vmem:[%s6100_s2 + $0x64] ss:$12 sps:$4 sm:$0xff]  }
 0x2cf   : > { %3739 = vmatpush3.bf16.msra.mxu1 %v5171_v55 }
 0x2d0   : > { %2381 = vmatpush2.bf16.msra.mxu0 %v4833_v48  ;;  %2440 = vmatprep.subr.bf16.mxu1 %v5366_v40  ;;  %v5417_v48 = vld [vmem:[%s6100_s2 + $0x60] ss:$12 sps:$4 sm:$0xff]  }
 0x2d1   : > { %3746 = vmatprep.subr.bf16.mxu0 %v5057_v63 }
 0x2d2   : > { %2424 = vmatmul.mubr.bf16.vlgmr.msra.gmra.mxu1 %v2348_v39 }
 0x2d3   : > { %2383 = vmatmul.mubr.bf16.vlgmr.msra.gmra.mxu0 %v2348_v39  ;;  %2441 = vmatpush1.bf16.msra.mxu1 %v5375_v42 }
 0x2d4   : > { %2472 = vmatprep.mubr.bf16.mxu1 %v2439_v41  ;;  %3747 = vmatpush3.bf16.msra.mxu0 %v5068_v60 }
 0x2d5   : > { %2512 = vmatprep.mubr.bf16.mxu0 %v2439_v41  ;;  %2442 = vmatprep.subr.bf16.mxu1 %v5382_v43 }
 0x2d6   : > { %3748 = vmatprep.subr.bf16.mxu0 %v5080_v13 }
 0x2d7   : > { %2443 = vmatpush1.bf16.msra.mxu1 %v5389_v44 }
 0x2d8   : > { %3749 = vmatpush3.bf16.msra.mxu0 %v5086_v52  ;;  %2444 = vmatprep.subr.bf16.mxu1 %v5396_v45 }
 0x2d9   : > { %3750 = vmatprep.subr.bf16.mxu0 %v5093_v12 }
 0x2db   : > { %2445 = vmatpush1.bf16.msra.mxu1 %v5403_v46 }
 0x2dc   : > { %3751 = vmatpush3.bf16.msra.mxu0 %v5101_v7  ;;  %2446 = vmatprep.subr.bf16.mxu1 %v5410_v47 }
 0x2dd   : > { %3752 = vmatprep.subr.bf16.mxu0 %v5108_v11 }
 0x2df   : > { %2447 = vmatpush1.bf16.msra.mxu1 %v5417_v48 }
 0x2e0   : > { %3753 = vmatpush3.bf16.msra.mxu0 %v5115_v0  ;;  %2448 = vmatprep.subr.bf16.mxu1 %v5424_v51 }
 0x2e1   : > { %3754 = vmatprep.subr.bf16.mxu0 %v5122_v49 }
 0x2e3   : > { %2449 = vmatpush1.bf16.msra.mxu1 %v5431_v6 }
 0x2e4   : > { %3755 = vmatpush3.bf16.msra.mxu0 %v5129_v50  ;;  %2450 = vmatprep.subr.bf16.mxu1 %v5440_v1 }
 0x2e5   : > { %3756 = vmatprep.subr.bf16.mxu0 %v5136_v23 }
 0x2e7   : > { %2451 = vmatpush1.bf16.msra.mxu1 %v5447_v16 }
 0x2e8   : > { %3757 = vmatpush3.bf16.msra.mxu0 %v5143_v59  ;;  %2452 = vmatprep.subr.bf16.mxu1 %v5454_v61 }
 0x2e9   : > { %3758 = vmatprep.subr.bf16.mxu0 %v5150_v3 }
 0x2eb   : > { %2453 = vmatpush1.bf16.msra.mxu1 %v5463_v8 }
 0x2ec   : > { %3759 = vmatpush3.bf16.msra.mxu0 %v5157_v58  ;;  %2454 = vmatprep.subr.bf16.mxu1 %v5470_v9 }
 0x2ed   : > { %3760 = vmatprep.subr.bf16.mxu0 %v5164_v56 }
 0x2ef   : > { %2455 = vmatpush1.bf16.msra.mxu1 %v5481_v14 }
 0x2f0   : > { %3761 = vmatpush3.bf16.msra.mxu0 %v5171_v55  ;;  %2456 = vmatprep.subr.bf16.mxu1 %v5490_v21 }
 0x2f1   : > { %2528 = vmatprep.subr.bf16.mxu0 %v5366_v40 }
 0x2f2   : > { %v5500_v57 = vpop.f32.mrf.mxu1 }
 0x2f3   : > { %6195 = vst [vmem:[#allocation35_spill] sm:$0xff] %v5500_v57  ;;  %v2114_v31 = vpop.f32.mrf.mxu0  ;;  %2513 = vmatmul.mubr.bf16.vlgmr.msra.gmra.mxu0 %v5493_v28  ;;  %2457 = vmatpush2.bf16.msra.mxu1 %v5506_v32 }
 0x2f4   : > { %v5512_v37 = vmul.f32 %v5434_v53, %v2114_v31  ;;  %2529 = vmatpush1.bf16.msra.mxu0 %v5375_v42  ;;  %2560 = vmatprep.mubr.bf16.mxu0 %v5498_v29  ;;  %v1971_v39 = vpop.f32.mrf.mxu1 }
 0x2f5   : > { %v5517_v41 = vmul.f32 %v5509_v34, %v1971_v39  ;;  %v2116_v17 = vpop.f32.mrf.mxu0  ;;  %2458 = vmatprep.subr.bf16.mxu1 %v5522_v35  ;;  %2530 = vmatprep.subr.bf16.mxu0 %v5382_v43  ;;  %v5650_v34 = vld [vmem:[%s6100_s2 + $0xc0] ss:$12 sps:$4 sm:$0xff]  }
 0x2f6   : > { %v5530_v62 = vmax.f32 %v2798_v24, %v5512_v37  ;;  %v5536_v31 = vmax.f32 %v2824_v26, %v5512_v37  ;;  %v5544_v10 = vmax.f32 %v2866_v27, %v5512_v37  ;;  %v1973_v33 = vpop.f32.mrf.mxu1  ;;  %v5547_v24 = vmul.f32 %v5434_v53, %v2116_v17  ;;  %v5552_v26 = vld [vmem:[%s6100_s2 + $0x150] ss:$12 sps:$4 sm:$0xff]   ;;  %6203 = vst [vmem:[#allocation42_spill] sm:$0xff] %v5650_v34 }
 0x2f7   : > { %6197 = vst [vmem:[#allocation37_spill] sm:$0xff] %v5517_v41  ;;  %v2118_v36 = vpop.f32.mrf.mxu0  ;;  %2459 = vmatpush2.bf16.msra.mxu1 %v5552_v26  ;;  %v5559_v27 = vld [vmem:[%s6100_s2 + $0x13c] ss:$12 sps:$4 sm:$0xff]   ;;  %v6129_v17 = vmov 44   ;;  %v6138_v41 = vmov 50  }
 0x2f8   : > { %6198 = vst [vmem:[#allocation38_spill] sm:$0xff] %v5547_v24  ;;  %2531 = vmatpush1.bf16.msra.mxu0 %v5389_v44  ;;  %v1974_v39 = vpop.f32.mrf.mxu1  ;;  %2460 = vmatprep.subr.bf16.mxu1 %v5559_v27  ;;  %v5564_v33 = vmax.f32 %v5325_v30, %v5547_v24  ;;  %v5596_v24 = vld [vmem:[%s6100_s2 + $0x10c] ss:$12 sps:$4 sm:$0xff]  }
 0x2f9   : > { %v2119_v36 = vpop.f32.mrf.mxu0  ;;  %2532 = vmatprep.subr.bf16.mxu0 %v5396_v45  ;;  %3977 = vset.pattern.permute.xlu1 %v6129_v17  ;;  %v5575_v39 = vld [vmem:[%s6100_s2 + $0x138] ss:$12 sps:$4 sm:$0xff]   ;;  %v5589_v17 = vld [vmem:[%s6100_s2 + $0x120] ss:$12 sps:$4 sm:$0xff]  }
 0x2fa   : > { %2609 = vperm.xlu1 %3977, %v5569_v54   ;;  %v5582_v36 = vld [vmem:[%s6100_s2 + $0x124] ss:$12 sps:$4 sm:$0xff]   ;;  %3979 = vset.pattern.permute.xlu0 %v6138_v41  ;;  %v6202_v41 = vmov 34  }
 0x2fb   : > { %2461 = vmatpush2.bf16.msra.mxu1 %v5575_v39  ;;  %2785 = vperm.xlu0 %3979, %v5569_v54  }
 0x2fc   : > { %2533 = vmatpush1.bf16.msra.mxu0 %v5403_v46  ;;  %2462 = vmatprep.subr.bf16.mxu1 %v5582_v36 }
 0x2fd   : > { %2534 = vmatprep.subr.bf16.mxu0 %v5410_v47 }
 0x2fe   : > { %3978 = vset.pattern.permute.xlu1 %v6137_v25  ;;  %v5642_v25 = vld [vmem:[%s6100_s2 + $0xc4] ss:$12 sps:$4 sm:$0xff]  }
 0x2ff   : > { %2463 = vmatpush2.bf16.msra.mxu1 %v5589_v17  ;;  %2697 = vperm.xlu1 %3978, %v5569_v54   ;;  %6201 = vst [vmem:[#allocation41_spill] sm:$0xff] %v5642_v25  ;;  %v6204_v54 = vmov 39  }
 0x300   : > { %2535 = vmatpush1.bf16.msra.mxu0 %v5417_v48  ;;  %2464 = vmatprep.subr.bf16.mxu1 %v5596_v24 }
 0x301   : > { %2536 = vmatprep.subr.bf16.mxu0 %v5424_v51  ;;  %3981 = vset.pattern.permute.xlu0 %v6204_v54 }
 0x303   : > { %2465 = vmatpush2.bf16.msra.mxu1 %v5603_v38  ;;  %3980 = vset.pattern.permute.xlu1 %v6202_v41 }
 0x304   : > { %2537 = vmatpush1.bf16.msra.mxu0 %v5431_v6  ;;  %2466 = vmatprep.subr.bf16.mxu1 %v5610_v5 }
 0x305   : > { %2538 = vmatprep.subr.bf16.mxu0 %v5440_v1 }
 0x307   : > { %2467 = vmatpush2.bf16.msra.mxu1 %v5617_v20 }
 0x308   : > { %2539 = vmatpush1.bf16.msra.mxu0 %v5447_v16  ;;  %2468 = vmatprep.subr.bf16.mxu1 %v5624_v19 }
 0x309   : > { %2540 = vmatprep.subr.bf16.mxu0 %v5454_v61 }
 0x30b   : > { %2469 = vmatpush2.bf16.msra.mxu1 %v5634_v22 }
 0x30c   : > { %2541 = vmatpush1.bf16.msra.mxu0 %v5463_v8  ;;  %2470 = vmatprep.subr.bf16.mxu1 %v5642_v25 }
 0x30d   : > { %2542 = vmatprep.subr.bf16.mxu0 %v5470_v9 }
 0x30f   : > { %2471 = vmatpush2.bf16.msra.mxu1 %v5650_v34 }
 0x310   : > { %2543 = vmatpush1.bf16.msra.mxu0 %v5481_v14  ;;  %3768 = vmatprep.subr.bf16.mxu1 %v5057_v63 }
 0x311   : > { %2544 = vmatprep.subr.bf16.mxu0 %v5490_v21 }
 0x312   : > { %v3674_v57 = vpop.f32.mrf.mxu1  ;;  %2473 = vmatmul.mubr.bf16.vlgmr.msra.gmra.mxu1 %v5493_v28 }
 0x313   : > { %3769 = vmatpush3.bf16.msra.mxu1 %v5068_v60  ;;  %2600 = vmatprep.mubr.bf16.mxu1 %v5498_v29  ;;  %v6206_v29 = vld [vmem:[#allocation21_spill] sm:$0xff] }
 0x314   : > { %2545 = vmatpush2.bf16.msra.mxu0 %v5506_v32  ;;  %v3675_v41 = vpop.f32.mrf.mxu1  ;;  %3770 = vmatprep.subr.bf16.mxu1 %v5080_v13 }
 0x315   : > { %v3676_v15 = vadd.f32 %v3675_v41, %v3674_v57  ;;  %2546 = vmatprep.subr.bf16.mxu0 %v5522_v35  ;;  %v5689_v57 = vmax.f32 %v6206_v29, 0.0 }
 0x316   : > { %v3677_v54 = vpop.f32.mrf.mxu1 }
 0x317   : > { %3771 = vmatpush3.bf16.msra.mxu1 %v5086_v52  ;;  %v2615_v54 = vpack.c.bf16 %v5689_v57, %v5689_v57 }
 0x318   : > { %2547 = vmatpush2.bf16.msra.mxu0 %v5552_v26  ;;  %v3678_v18 = vpop.f32.mrf.mxu1  ;;  %3772 = vmatprep.subr.bf16.mxu1 %v5093_v12 }
 0x319   : > { %2548 = vmatprep.subr.bf16.mxu0 %v5559_v27  ;;  %v6205_v18 = vld [vmem:[#allocation18_spill] sm:$0xff] }
 0x31a   : > { %v1506_v28 = vmax.f32 %v6205_v18, 0.0  ;;  %6207 = vst [vmem:[#allocation18_spill] sm:$0xff] %v5689_v57 }
 0x31b   : > { %3773 = vmatpush3.bf16.msra.mxu1 %v5101_v7 }
 0x31c   : > { %2549 = vmatpush2.bf16.msra.mxu0 %v5575_v39  ;;  %3774 = vmatprep.subr.bf16.mxu1 %v5108_v11  ;;  %v2526_v41 = vpack.c.bf16 %v1506_v28, %v1506_v28 }
 0x31d   : > { %2550 = vmatprep.subr.bf16.mxu0 %v5582_v36 }
 0x31f   : > { %3775 = vmatpush3.bf16.msra.mxu1 %v5115_v0 }
 0x320   : > { %2551 = vmatpush2.bf16.msra.mxu0 %v5589_v17  ;;  %3776 = vmatprep.subr.bf16.mxu1 %v5122_v49 }
 0x321   : > { %2552 = vmatprep.subr.bf16.mxu0 %v5596_v24 }
 0x323   : > { %3777 = vmatpush3.bf16.msra.mxu1 %v5129_v50 }
 0x324   : > { %2553 = vmatpush2.bf16.msra.mxu0 %v5603_v38  ;;  %3778 = vmatprep.subr.bf16.mxu1 %v5136_v23 }
 0x325   : > { %2554 = vmatprep.subr.bf16.mxu0 %v5610_v5 }
 0x327   : > { %3779 = vmatpush3.bf16.msra.mxu1 %v5143_v59 }
 0x328   : > { %2555 = vmatpush2.bf16.msra.mxu0 %v5617_v20  ;;  %3780 = vmatprep.subr.bf16.mxu1 %v5150_v3 }
 0x329   : > { %2556 = vmatprep.subr.bf16.mxu0 %v5624_v19 }
 0x32b   : > { %3781 = vmatpush3.bf16.msra.mxu1 %v5157_v58 }
 0x32c   : > { %2557 = vmatpush2.bf16.msra.mxu0 %v5634_v22  ;;  %3782 = vmatprep.subr.bf16.mxu1 %v5164_v56 }
 0x32d   : > { %2558 = vmatprep.subr.bf16.mxu0 %v5642_v25 }
 0x32f   : > { %3783 = vmatpush3.bf16.msra.mxu1 %v5171_v55 }
 0x330   : > { %2559 = vmatpush2.bf16.msra.mxu0 %v5650_v34  ;;  %2616 = vmatprep.subr.bf16.mxu1 %v5366_v40 }
 0x331   : > { %3790 = vmatprep.subr.bf16.mxu0 %v5057_v63 }
 0x332   : > { %v3696_v18 = vpop.f32.mrf.mxu1  ;;  %2601 = vmatmul.mubr.bf16.vlgmr.msra.gmra.mxu1 %v2526_v41 }
 0x333   : > { %v2204_v22 = vpop.f32.mrf.mxu0  ;;  %2561 = vmatmul.mubr.bf16.vlgmr.msra.gmra.mxu0 %v2526_v41  ;;  %2617 = vmatpush1.bf16.msra.mxu1 %v5375_v42 }
 0x334   : > { %v5699_v29 = vmul.f32 %v5458_v4, %v2204_v22  ;;  %2648 = vmatprep.mubr.bf16.mxu1 %v2615_v54  ;;  %3791 = vmatpush3.bf16.msra.mxu0 %v5068_v60  ;;  %v3697_v28 = vpop.f32.mrf.mxu1  ;;  %v6208_v22 = vmax.f32 %v5228_v2, %v5512_v37 }
 0x335   : > { %2688 = vmatprep.mubr.bf16.mxu0 %v2615_v54  ;;  %v2206_v34 = vpop.f32.mrf.mxu0  ;;  %v3698_v25 = vadd.f32 %v3697_v28, %v3696_v18  ;;  %2618 = vmatprep.subr.bf16.mxu1 %v5382_v43  ;;  %v2167_v18 = vmul.f32 %v3676_v15, %v5434_v53 }
 0x336   : > { %v5711_v63 = vmax.f32 %v6208_v22, %v5699_v29  ;;  %v5715_v60 = vmax.f32 %v5544_v10, %v5699_v29  ;;  %v3699_v54 = vpop.f32.mrf.mxu1  ;;  %3792 = vmatprep.subr.bf16.mxu0 %v5080_v13  ;;  %v5720_v28 = vmul.f32 %v5458_v4, %v2206_v34  ;;  %v6210_v34 = vld [vmem:[#allocation23_spill] sm:$0xff] }
 0x337   : > { %v2257_v41 = vmul.f32 %v3698_v25, %v5458_v4  ;;  %v2208_v57 = vpop.f32.mrf.mxu0  ;;  %2619 = vmatpush1.bf16.msra.mxu1 %v5389_v44  ;;  %v6209_v25 = vld [vmem:[#allocation19_spill] sm:$0xff] }
 0x338   : > { %3793 = vmatpush3.bf16.msra.mxu0 %v5086_v52  ;;  %v3700_v2 = vpop.f32.mrf.mxu1  ;;  %2620 = vmatprep.subr.bf16.mxu1 %v5396_v45  ;;  %v2907_v10 = vmax.f32 %v5325_v30, %v5720_v28  ;;  %v2952_v37 = vmax.f32 %v5564_v33, %v5720_v28  ;;  %v1508_v4 = vmax.f32 %v6209_v25, 0.0  ;;  %v5755_v57 = vmax.f32 %v6210_v34, 0.0  ;;  %v6224_v30 = vld [vmem:[#allocation34_spill] sm:$0xff] }
 0x339   : > { %v5730_v53 = vmax.f32 %v2167_v18, %v2257_v41  ;;  %v2209_v15 = vpop.f32.mrf.mxu0  ;;  %3794 = vmatprep.subr.bf16.mxu0 %v5093_v12 }
 0x33a   : > { %v2614_v41 = vpack.c.bf16 %v1508_v4, %v1508_v4  ;;  %v2703_v22 = vpack.c.bf16 %v5755_v57, %v5755_v57 }
 0x33b   : > { %2621 = vmatpush1.bf16.msra.mxu1 %v5403_v46 }
 0x33c   : > { %3795 = vmatpush3.bf16.msra.mxu0 %v5101_v7  ;;  %2622 = vmatprep.subr.bf16.mxu1 %v5410_v47 }
 0x33d   : > { %3796 = vmatprep.subr.bf16.mxu0 %v5108_v11 }
 0x33f   : > { %2623 = vmatpush1.bf16.msra.mxu1 %v5417_v48 }
 0x340   : > { %3797 = vmatpush3.bf16.msra.mxu0 %v5115_v0  ;;  %2624 = vmatprep.subr.bf16.mxu1 %v5424_v51 }
 0x341   : > { %3798 = vmatprep.subr.bf16.mxu0 %v5122_v49 }
 0x343   : > { %2625 = vmatpush1.bf16.msra.mxu1 %v5431_v6 }
 0x344   : > { %3799 = vmatpush3.bf16.msra.mxu0 %v5129_v50  ;;  %2626 = vmatprep.subr.bf16.mxu1 %v5440_v1 }
 0x345   : > { %3800 = vmatprep.subr.bf16.mxu0 %v5136_v23 }
 0x347   : > { %2627 = vmatpush1.bf16.msra.mxu1 %v5447_v16 }
 0x348   : > { %3801 = vmatpush3.bf16.msra.mxu0 %v5143_v59  ;;  %2628 = vmatprep.subr.bf16.mxu1 %v5454_v61 }
 0x349   : > { %3802 = vmatprep.subr.bf16.mxu0 %v5150_v3 }
 0x34b   : > { %2629 = vmatpush1.bf16.msra.mxu1 %v5463_v8 }
 0x34c   : > { %3803 = vmatpush3.bf16.msra.mxu0 %v5157_v58  ;;  %2630 = vmatprep.subr.bf16.mxu1 %v5470_v9 }
 0x34d   : > { %3804 = vmatprep.subr.bf16.mxu0 %v5164_v56 }
 0x34f   : > { %2631 = vmatpush1.bf16.msra.mxu1 %v5481_v14 }
 0x350   : > { %3805 = vmatpush3.bf16.msra.mxu0 %v5171_v55  ;;  %2632 = vmatprep.subr.bf16.mxu1 %v5490_v21 }
 0x351   : > { %2704 = vmatprep.subr.bf16.mxu0 %v5366_v40 }
 0x353   : > { %v3718_v54 = vpop.f32.mrf.mxu0  ;;  %2689 = vmatmul.mubr.bf16.vlgmr.msra.gmra.mxu0 %v2614_v41  ;;  %2633 = vmatpush2.bf16.msra.mxu1 %v5506_v32 }
 0x354   : > { %2705 = vmatpush1.bf16.msra.mxu0 %v5375_v42  ;;  %2736 = vmatprep.mubr.bf16.mxu0 %v2703_v22  ;;  %v6211_v42 = vld [vmem:[#allocation40_spill] sm:$0xff] }
 0x355   : > { %v3719_v18 = vpop.f32.mrf.mxu0  ;;  %2634 = vmatprep.subr.bf16.mxu1 %v5522_v35  ;;  %2706 = vmatprep.subr.bf16.mxu0 %v5382_v43  ;;  %v6212_v43 = vld [vmem:[#allocation41_spill] sm:$0xff] }
 0x356   : > { %v5767_v2 = vadd.f32 %v3719_v18, %v3718_v54 }
 0x357   : > { %v3721_v15 = vpop.f32.mrf.mxu0  ;;  %2635 = vmatpush2.bf16.msra.mxu1 %v5552_v26 }
 0x358   : > { %2707 = vmatpush1.bf16.msra.mxu0 %v5389_v44  ;;  %2636 = vmatprep.subr.bf16.mxu1 %v5559_v27  ;;  %v6213_v44 = vld [vmem:[#allocation42_spill] sm:$0xff] }
 0x359   : > { %v3722_v40 = vpop.f32.mrf.mxu0  ;;  %2708 = vmatprep.subr.bf16.mxu0 %v5396_v45  ;;  %v6214_v45 = vld [vmem:[#allocation25_spill] sm:$0xff] }
 0x35b   : > { %2637 = vmatpush2.bf16.msra.mxu1 %v5575_v39 }
 0x35c   : > { %2709 = vmatpush1.bf16.msra.mxu0 %v5403_v46  ;;  %2638 = vmatprep.subr.bf16.mxu1 %v5582_v36 }
 0x35d   : > { %2710 = vmatprep.subr.bf16.mxu0 %v5410_v47  ;;  %v6215_v47 = vld [vmem:[#allocation27_spill] sm:$0xff] }
 0x35f   : > { %2639 = vmatpush2.bf16.msra.mxu1 %v5589_v17 }
 0x360   : > { %2711 = vmatpush1.bf16.msra.mxu0 %v5417_v48  ;;  %2640 = vmatprep.subr.bf16.mxu1 %v5596_v24 }
 0x361   : > { %2712 = vmatprep.subr.bf16.mxu0 %v5424_v51 }
 0x363   : > { %2641 = vmatpush2.bf16.msra.mxu1 %v5603_v38 }
 0x364   : > { %2713 = vmatpush1.bf16.msra.mxu0 %v5431_v6  ;;  %2642 = vmatprep.subr.bf16.mxu1 %v5610_v5 }
 0x365   : > { %2714 = vmatprep.subr.bf16.mxu0 %v5440_v1 }
 0x367   : > { %2643 = vmatpush2.bf16.msra.mxu1 %v5617_v20 }
 0x368   : > { %2715 = vmatpush1.bf16.msra.mxu0 %v5447_v16  ;;  %2644 = vmatprep.subr.bf16.mxu1 %v5624_v19 }
 0x369   : > { %2716 = vmatprep.subr.bf16.mxu0 %v5454_v61 }
 0x36b   : > { %2645 = vmatpush2.bf16.msra.mxu1 %v6211_v42 }
 0x36c   : > { %2717 = vmatpush1.bf16.msra.mxu0 %v5463_v8  ;;  %2646 = vmatprep.subr.bf16.mxu1 %v6212_v43 }
 0x36d   : > { %2718 = vmatprep.subr.bf16.mxu0 %v5470_v9 }
 0x36f   : > { %2647 = vmatpush2.bf16.msra.mxu1 %v6213_v44 }
 0x370   : > { %2719 = vmatpush1.bf16.msra.mxu0 %v5481_v14  ;;  %3812 = vmatprep.subr.bf16.mxu1 %v6214_v45 }
 0x371   : > { %2720 = vmatprep.subr.bf16.mxu0 %v5490_v21 }
 0x372   : > { %v2294_v46 = vpop.f32.mrf.mxu1  ;;  %2649 = vmatmul.mubr.bf16.vlgmr.msra.gmra.mxu1 %v2614_v41 }
 0x373   : > { %3813 = vmatpush3.bf16.msra.mxu1 %v6215_v47  ;;  %2776 = vmatprep.mubr.bf16.mxu1 %v2703_v22 }
 0x374   : > { %2721 = vmatpush2.bf16.msra.mxu0 %v5506_v32  ;;  %v5799_v48 = vpop.f32.mrf.mxu1  ;;  %3814 = vmatprep.subr.bf16.mxu1 %v5080_v13 }
 0x375   : > { %2722 = vmatprep.subr.bf16.mxu0 %v5522_v35 }
 0x376   : > { %v2298_v51 = vpop.f32.mrf.mxu1 }
 0x377   : > { %3815 = vmatpush3.bf16.msra.mxu1 %v5086_v52  ;;  %v6217_v52 = vld [vmem:[#allocation32_spill] sm:$0xff] }
 0x378   : > { %2723 = vmatpush2.bf16.msra.mxu0 %v5552_v26  ;;  %v2299_v6 = vpop.f32.mrf.mxu1  ;;  %3816 = vmatprep.subr.bf16.mxu1 %v5093_v12  ;;  %v6216_v12 = vld [vmem:[#allocation22_spill] sm:$0xff] }
 0x379   : > { %2724 = vmatprep.subr.bf16.mxu0 %v5559_v27 }
 0x37b   : > { %3817 = vmatpush3.bf16.msra.mxu1 %v5101_v7  ;;  %v6220_v7 = vld [vmem:[#allocation35_spill] sm:$0xff] }
 0x37c   : > { %2725 = vmatpush2.bf16.msra.mxu0 %v5575_v39  ;;  %3818 = vmatprep.subr.bf16.mxu1 %v5108_v11  ;;  %v6221_v11 = vld [vmem:[#allocation36_spill] sm:$0xff] }
 0x37d   : > { %2726 = vmatprep.subr.bf16.mxu0 %v5582_v36 }
 0x37f   : > { %3819 = vmatpush3.bf16.msra.mxu1 %v5115_v0  ;;  %v5843_v0 = vmul.f32 %v6221_v11, %v6220_v7 }
 0x380   : > { %2727 = vmatpush2.bf16.msra.mxu0 %v5589_v17  ;;  %3820 = vmatprep.subr.bf16.mxu1 %v5122_v49  ;;  %v1510_v49 = vmax.f32 %v6216_v12, 0.0 }
 0x381   : > { %2728 = vmatprep.subr.bf16.mxu0 %v5596_v24  ;;  %v2869_v54 = vmax.f32 %v5715_v60, %v5843_v0 }
 0x383   : > { %3821 = vmatpush3.bf16.msra.mxu1 %v5129_v50  ;;  %v6218_v50 = vld [vmem:[#allocation20_spill] sm:$0xff] }
 0x384   : > { %2729 = vmatpush2.bf16.msra.mxu0 %v5603_v38  ;;  %3822 = vmatprep.subr.bf16.mxu1 %v5136_v23  ;;  %v5827_v13 = vmul.f32 %v6218_v50, %v6217_v52  ;;  %v5831_v23 = vpop.permute.xlu1 %2342  ;;  %v6222_v38 = vmov 0.0  }
 0x385   : > { %2730 = vmatprep.subr.bf16.mxu0 %v5610_v5  ;;  %v2347_v51 = vmul.f32 %v5767_v2, %v5831_v23 }
 0x387   : > { %3823 = vmatpush3.bf16.msra.mxu1 %v5143_v59  ;;  %v6219_v59 = vmax.f32 %v5530_v62, %v5699_v29  ;;  %v2886_v62 = vmax.f32 %v5715_v60, %v5827_v13 }
 0x388   : > { %2731 = vmatpush2.bf16.msra.mxu0 %v5617_v20  ;;  %3824 = vmatprep.subr.bf16.mxu1 %v5150_v3  ;;  %v2702_v20 = vpack.c.bf16 %v1510_v49, %v1510_v49 }
 0x389   : > { %2732 = vmatprep.subr.bf16.mxu0 %v5624_v19  ;;  %v2801_v3 = vmax.f32 %v6219_v59, %v5827_v13  ;;  %v2433_v19 = vpop.permute.xlu1 %2432 }
 0x38b   : > { %3825 = vmatpush3.bf16.msra.mxu1 %v5157_v58  ;;  %v2848_v58 = vmax.f32 %v5711_v63, %v5827_v13  ;;  %v2802_v16 = vmax.f32 %v2801_v3, %v5843_v0 }
 0x38c   : > { %2733 = vmatpush2.bf16.msra.mxu0 %v6211_v42  ;;  %3826 = vmatprep.subr.bf16.mxu1 %v5164_v56  ;;  %v2345_v56 = vmul.f32 %v5831_v23, %v2294_v46 }
 0x38d   : > { %2734 = vmatprep.subr.bf16.mxu0 %v6212_v43  ;;  %v2849_v63 = vmax.f32 %v2848_v58, %v5843_v0  ;;  %v2522_v43 = vpop.permute.xlu0 %2521 }
 0x38e   : > { %v2803_v14 = vmax.f32 %v2802_v16, %v2345_v56  ;;  %v2887_v25 = vmax.f32 %v2886_v62, %v2345_v56  ;;  %v2870_v18 = vmax.f32 %v2869_v54, %v2345_v56 }
 0x38f   : > { %3827 = vmatpush3.bf16.msra.mxu1 %v5171_v55  ;;  %v6223_v55 = vmax.f32 %v5536_v31, %v5699_v29  ;;  %v2850_v21 = vmax.f32 %v2849_v63, %v2345_v56 }
 0x390   : > { %2735 = vmatpush2.bf16.msra.mxu0 %v6213_v44 }
 0x391   : > { %3865 = vmatprep.subr.bf16.mxu0 %v6222_v38  ;;  %v2827_v61 = vmax.f32 %v6223_v55, %v5827_v13 }
 0x392   : > { %v3740_v1 = vpop.f32.mrf.mxu1  ;;  %2777 = vmatmul.mubr.bf16.vlgmr.msra.gmra.mxu1 %v2702_v20 }
 0x393   : > { %v2384_v8 = vpop.f32.mrf.mxu0  ;;  %2737 = vmatmul.mubr.bf16.vlgmr.msra.gmra.mxu0 %v2702_v20  ;;  %v2828_v39 = vmax.f32 %v2827_v61, %v5843_v0 }
 0x394   : > { %v2435_v9 = vmul.f32 %v2433_v19, %v2384_v8  ;;  %v3741_v5 = vpop.f32.mrf.mxu1  ;;  %3881 = vmatprep.mubr.msk.bf16.mxu0 %vm4420_vm5, %v6222_v38 }
 0x395   : > { %v2386_v32 = vpop.f32.mrf.mxu0  ;;  %v3742_v35 = vadd.f32 %v3741_v5, %v3740_v1  ;;  %v2829_v4 = vmax.f32 %v2828_v39, %v2345_v56 }
 0x396   : > { %v5856_v24 = vmul.f32 %v2433_v19, %v2386_v32  ;;  %v3743_v26 = vpop.f32.mrf.mxu1  ;;  %v2804_v27 = vmax.f32 %v2803_v14, %v2435_v9  ;;  %v2851_v17 = vmax.f32 %v2850_v21, %v2435_v9  ;;  %v2888_v41 = vmax.f32 %v2887_v25, %v2435_v9 }
 0x397   : > { %v5859_v31 = vmul.f32 %v3742_v35, %v2433_v19  ;;  %v2388_v36 = vpop.f32.mrf.mxu0  ;;  %v2830_v22 = vmax.f32 %v2829_v4, %v2435_v9  ;;  %v2871_v15 = vmax.f32 %v2870_v18, %v2435_v9  ;;  %v2610_v19 = vpop.permute.xlu1 %2609  ;;  %v6226_v18 = vld [vmem:[#allocation30_spill] sm:$0xff] }
 0x398   : > { %2813 = vrot.lane.b32.xlu1 %v2804_v27, %s4419_s19  ;;  %2854 = vrot.lane.b32.xlu0 %v2851_v17, %s4419_s19  ;;  %v3744_v29 = vpop.f32.mrf.mxu1  ;;  %v6225_v36 = vld [vmem:[#allocation37_spill] sm:$0xff] }
 0x399   : > { %v2389_v34 = vpop.f32.mrf.mxu0 }
 0x39b   : > { %v5903_v34 = vpop.permute.xlu1 %2697 }
 0x39c   : > { %2891 = vrot.lane.b32.xlu0 %v2888_v41, %s4419_s19  ;;  %2833 = vrot.lane.b32.xlu1 %v2830_v22, %s4419_s19  ;;  %v5905_v41 = vpop.permute.xlu0 %2785  ;;  %v5910_v22 = vld [vmem:[%s6101_s3] ss:$0 sm:$0xff] }
 0x3a0   : > { %2874 = vrot.lane.b32.xlu1 %v2871_v15, %s4419_s19  ;;  %v2811_v15 = vadd.f32 %v5910_v22, %v6226_v18  ;;  %v6230_v18 = vmov 40  }
 0x3b3   : > { %v3762_v40 = vpop.f32.mrf.mxu0 }
 0x3b5   : > { %v3763_v42 = vpop.f32.mrf.mxu0 }
 0x3b6   : > { %v3764_v44 = vadd.f32 %v3763_v42, %v3762_v40 }
 0x3b7   : > { %v3765_v45 = vpop.f32.mrf.mxu0 }
 0x3b8   : > { %v5868_v46 = vmul.f32 %v3764_v44, %v2522_v43  ;;  %v6228_v45 = vld [vmem:[#allocation29_spill] sm:$0xff] }
 0x3b9   : > { %v3766_v47 = vpop.f32.mrf.mxu0 }
 0x3ba   : > { %v3010_v60 = vmax.f32 %v5730_v53, %v5868_v46 }
 0x3bc   : > { %v3011_v6 = vmax.f32 %v3010_v60, %v2347_v51 }
 0x3be   : > { %v5875_v12 = vmax.f32 %v3011_v6, %v5859_v31 }
 0x3d2   : > { %v2474_v49 = vpop.f32.mrf.mxu1 }
 0x3d4   : > { %v2475_v52 = vpop.f32.mrf.mxu1 }
 0x3d5   : > { %v2524_v59 = vmul.f32 %v2522_v43, %v2475_v52  ;;  %v6227_v43 = vld [vmem:[#allocation33_spill] sm:$0xff] }
 0x3d6   : > { %v2477_v3 = vpop.f32.mrf.mxu1  ;;  %v2852_v44 = vadd.f32 %v5910_v22, %v6227_v43 }
 0x3d7   : > { %v2908_v58 = vmax.f32 %v2907_v10, %v2524_v59  ;;  %v2930_v20 = vmax.f32 %v5564_v33, %v2524_v59  ;;  %v2953_v2 = vmax.f32 %v2952_v37, %v2524_v59  ;;  %v1932_v10 = vmul.f32 %v6218_v50, %v6224_v30 }
 0x3d8   : > { %v2478_v7 = vpop.f32.mrf.mxu1 }
 0x3f2   : > { %v3784_v11 = vpop.f32.mrf.mxu1 }
 0x3f3   : > { %v2562_v56 = vpop.f32.mrf.mxu0 }
 0x3f4   : > { %v3785_v1 = vpop.f32.mrf.mxu1 }
 0x3f5   : > { %v2563_v16 = vpop.f32.mrf.mxu0  ;;  %v3786_v63 = vadd.f32 %v3785_v1, %v3784_v11 }
 0x3f6   : > { %v2612_v55 = vmul.f32 %v2610_v19, %v2563_v16  ;;  %v3787_v61 = vpop.f32.mrf.mxu1 }
 0x3f7   : > { %v5884_v8 = vmul.f32 %v3786_v63, %v2610_v19  ;;  %v2565_v9 = vpop.f32.mrf.mxu0 }
 0x3f8   : > { %v2909_v5 = vmax.f32 %v2908_v58, %v2612_v55  ;;  %v2931_v14 = vmax.f32 %v2930_v20, %v2612_v55  ;;  %v2954_v21 = vmax.f32 %v2953_v2, %v2612_v55  ;;  %v3788_v33 = vpop.f32.mrf.mxu1 }
 0x3f9   : > { %v2992_v37 = vmax.f32 %v5730_v53, %v5884_v8  ;;  %v3029_v32 = vmax.f32 %v3010_v60, %v5884_v8  ;;  %v2566_v35 = vpop.f32.mrf.mxu0 }
 0x3fa   : > { %v5891_v62 = vmax.f32 %v2909_v5, %v1932_v10  ;;  %v2932_v26 = vmax.f32 %v2931_v14, %v1932_v10  ;;  %v2955_v27 = vmax.f32 %v2954_v21, %v1932_v10 }
 0x3fb   : > { %v2993_v17 = vmax.f32 %v2992_v37, %v2347_v51  ;;  %v3030_v39 = vmax.f32 %v3029_v32, %v2347_v51 }
 0x3fc   : > { %v2911_v29 = vmax.f32 %v5891_v62, %v6225_v36  ;;  %v5896_v50 = vmax.f32 %v2932_v26, %v6225_v36  ;;  %v5899_v25 = vmax.f32 %v2955_v27, %v6225_v36  ;;  %v4215_v62 = vld [vmem:[#allocation5 + $0x38] sm:$0xff]   ;;  %v6234_v36 = vmov 50  }
 0x3fd   : > { %v2994_v53 = vmax.f32 %v2993_v17, %v5859_v31  ;;  %v3031_v4 = vmax.f32 %v3030_v39, %v5859_v31  ;;  %v2831_v31 = vadd.f32 %v5910_v22, %v6228_v45  ;;  %v6233_v45 = vmov 44  }
 0x40a   : > { %v2814_v54 = vpop.permute.xlu1 %2813  ;;  %v2855_v40 = vpop.permute.xlu0 %2854 }
 0x40b   : > { %v2816_v42 = vadd.f32 %v2814_v54, %v2811_v15  ;;  %v2857_v51 = vadd.f32 %v2855_v40, %v2852_v44  ;;  %v6231_v15 = vmov 43   ;;  %v5951_v40 = vmul.f32 %v5831_v23, %v5799_v48 }
 0x40c   : > { %v6232_v44 = vmov 49  }
 0x40d   : > { %v2817_v6 = vmax.f32 %v2816_v42, 0.0  ;;  %v2858_v52 = vmax.f32 %v2857_v51, 0.0  ;;  %v2872_v42 = vadd.f32 %v5910_v22, %v5827_v13  ;;  %v2889_v13 = vadd.f32 %v5910_v22, %v5843_v0  ;;  %v4216_v0 = vld [vmem:[#allocation5 + $0x70] sm:$0xff]  }
 0x40e   : > { %v2834_v47 = vpop.permute.xlu1 %2833  ;;  %v2892_v23 = vpop.permute.xlu0 %2891 }
 0x40f   : > { %v2836_v60 = vadd.f32 %v2834_v47, %v2831_v31  ;;  %v2912_v31 = vmax.f32 %v2911_v29, %v5951_v40  ;;  %v4214_v47 = vld [vmem:[#allocation5 + $0x78] sm:$0xff]   ;;  %v6235_v29 = vmov 41  }
 0x410   : > { %3834 = vmatprep.subr.bf16.mxu1 %v4214_v47 }
 0x411   : > { %v2837_v49 = vmax.f32 %v2836_v60, 0.0  ;;  %3835 = vmatpush3.bf16.msra.mxu1 %v4215_v62 }
 0x412   : > { %3836 = vmatprep.subr.bf16.mxu1 %v4216_v0 }
 0x413   : > { %v2838_v59 = vadd.f32 %v2837_v49, %v2817_v6  ;;  %v3806_v3 = vpop.f32.mrf.mxu0  ;;  %v2913_v6 = vmax.f32 %v2912_v31, %v5856_v24  ;;  %v2894_v49 = vadd.f32 %v2892_v23, %v2889_v13  ;;  %v4236_v31 = vld [vmem:[#allocation5 + $0x88] sm:$0xff]   ;;  %v3015_v23 = vadd.f32 %v5910_v22, %v5884_v8 }
 0x415   : > { %v5918_v58 = vadd.f32 %v2858_v52, %v2838_v59  ;;  %v3807_v20 = vpop.f32.mrf.mxu0  ;;  %v2957_v59 = vmax.f32 %v5899_v25, %v5856_v24 }
 0x416   : > { %v3808_v16 = vadd.f32 %v3807_v20, %v3806_v3  ;;  %v4217_v3 = vld [vmem:[#allocation5 + $0x30] sm:$0xff]   ;;  %v2895_v20 = vmax.f32 %v2894_v49, 0.0  ;;  %v4237_v49 = vld [vmem:[#allocation5 + $0x80] sm:$0xff]  }
 0x417   : > { %v3809_v2 = vpop.f32.mrf.mxu0  ;;  %3837 = vmatpush3.bf16.msra.mxu1 %v4217_v3 }
 0x418   : > { %v5921_v55 = vmul.f32 %v3808_v16, %v5903_v34  ;;  %v6236_v2 = vmov 42   ;;  %v4220_v16 = vld [vmem:[#allocation5 + $0x60] sm:$0xff]  }
 0x419   : > { %v3810_v7 = vpop.f32.mrf.mxu0 }
 0x41a   : > { %v3013_v33 = vmax.f32 %v5875_v12, %v5921_v55  ;;  %v2995_v37 = vmax.f32 %v2994_v53, %v5921_v55  ;;  %v3047_v17 = vmax.f32 %v3031_v4, %v5921_v55  ;;  %v6229_v12 = vld [vmem:[#allocation39_spill] sm:$0xff] }
 0x41b   : > { %v5938_v53 = vmul.f32 0.8, %v6229_v12  ;;  %v5943_v54 = vmul.f32 0.75, %v6229_v12 }
 0x432   : > { %v2650_v11 = vpop.f32.mrf.mxu1 }
 0x433   : > { %v4218_v11 = vld [vmem:[#allocation5 + $0x68] sm:$0xff]  }
 0x434   : > { %v2651_v56 = vpop.f32.mrf.mxu1  ;;  %3838 = vmatprep.subr.bf16.mxu1 %v4218_v11 }
 0x435   : > { %v5964_v48 = vmul.f32 %v5903_v34, %v2651_v56 }
 0x436   : > { %v2653_v19 = vpop.f32.mrf.mxu1 }
 0x437   : > { %v2914_v34 = vmax.f32 %v2913_v6, %v5964_v48  ;;  %v2958_v7 = vmax.f32 %v2957_v59, %v5964_v48  ;;  %v4219_v19 = vld [vmem:[#allocation5 + $0x28] sm:$0xff]   ;;  %v3033_v6 = vadd.f32 %v5910_v22, %v5921_v55 }
 0x438   : > { %v2654_v1 = vpop.f32.mrf.mxu1  ;;  %3839 = vmatpush3.bf16.msra.mxu1 %v4219_v19  ;;  %v6241_v19 = vld [vmem:[#allocation14_spill] sm:$0xff] }
 0x439   : > { %v6237_v1 = vmov 45   ;;  %3840 = vmatprep.subr.bf16.mxu1 %v4220_v16 }
 0x452   : > { %v3828_v63 = vpop.f32.mrf.mxu1 }
 0x453   : > { %v2738_v61 = vpop.f32.mrf.mxu0 }
 0x454   : > { %v3829_v9 = vpop.f32.mrf.mxu1  ;;  %v4221_v61 = vld [vmem:[#allocation5 + $0x20] sm:$0xff]  }
 0x455   : > { %v2739_v30 = vpop.f32.mrf.mxu0  ;;  %v3830_v10 = vadd.f32 %v3829_v9, %v3828_v63  ;;  %v4222_v9 = vld [vmem:[#allocation5 + $0x58] sm:$0xff]   ;;  %3841 = vmatpush3.bf16.msra.mxu1 %v4221_v61  ;;  %v6242_v61 = vld [vmem:[#allocation17_spill] sm:$0xff] }
 0x456   : > { %v3831_v5 = vpop.f32.mrf.mxu1  ;;  %v5969_v60 = vmul.f32 %v5905_v41, %v2739_v30  ;;  %v6238_v30 = vmov 47   ;;  %3842 = vmatprep.subr.bf16.mxu1 %v4222_v9 }
 0x457   : > { %v5924_v14 = vmul.f32 %v3830_v10, %v5905_v41  ;;  %v2741_v21 = vpop.f32.mrf.mxu0  ;;  %v4223_v10 = vld [vmem:[#allocation5 + $0x18] sm:$0xff]   ;;  %v4224_v5 = vld [vmem:[#allocation5 + $0x50] sm:$0xff]  }
 0x458   : > { %v3832_v32 = vpop.f32.mrf.mxu1  ;;  %v2915_v41 = vmax.f32 %v2914_v34, %v5969_v60  ;;  %v4225_v21 = vld [vmem:[#allocation5 + $0x10] sm:$0xff]  }
 0x459   : > { %v2742_v35 = vpop.f32.mrf.mxu0  ;;  %v3014_v26 = vmax.f32 %v3013_v33, %v5924_v14  ;;  %v2996_v27 = vmax.f32 %v2995_v37, %v5924_v14  ;;  %v3032_v39 = vmax.f32 %v3031_v4, %v5924_v14  ;;  %v2875_v4 = vpop.permute.xlu1 %2874  ;;  %3843 = vmatpush3.bf16.msra.mxu1 %v4223_v10  ;;  %v6239_v33 = vmov 46   ;;  %v4226_v32 = vld [vmem:[#allocation5 + $0x48] sm:$0xff]  }
 0x45a   : > { %v2877_v43 = vadd.f32 %v2875_v4, %v2872_v42  ;;  %v2934_v37 = vmax.f32 %v5896_v50, %v5951_v40  ;;  %3844 = vmatprep.subr.bf16.mxu1 %v4224_v5  ;;  %v4227_v35 = vld [vmem:[#allocation5 + $0x8] sm:$0xff]   ;;  %v4231_v42 = vld [vmem:[#allocation5 + $0xb0] sm:$0xff]  }
 0x45b   : > { %3017 = vrot.lane.b32.xlu0 %v3014_v26, %s4419_s19  ;;  %2999 = vrot.lane.b32.xlu1 %v2996_v27, %s4419_s19  ;;  %v6240_v27 = vmov 48  }
 0x45c   : > { %v2878_v51 = vmax.f32 %v2877_v43, 0.0  ;;  %v2935_v26 = vmax.f32 %v2934_v37, %v5856_v24  ;;  %v4232_v43 = vld [vmem:[#allocation5 + $0xa8] sm:$0xff]  }
 0x45d   : > { %3845 = vmatpush3.bf16.msra.mxu1 %v4225_v21  ;;  %v6244_v21 = vld [vmem:[#allocation18_spill] sm:$0xff] }
 0x45e   : > { %v2879_v52 = vadd.f32 %v2878_v51, %v5918_v58  ;;  %v2959_v58 = vmax.f32 %v2958_v7, %v5969_v60  ;;  %3846 = vmatprep.subr.bf16.mxu1 %v4226_v32 }
 0x45f   : > { %3050 = vrot.lane.b32.xlu0 %v3047_v17, %s4419_s19  ;;  %3035 = vrot.lane.b32.xlu1 %v3032_v39, %s4419_s19  ;;  %v2936_v17 = vmax.f32 %v2935_v26, %v5964_v48  ;;  %v4228_v39 = vld [vmem:[#allocation5 + $0x40] sm:$0xff]  }
 0x460   : > { %v2896_v56 = vadd.f32 %v2895_v20, %v2879_v52 }
 0x461   : > { %3847 = vmatpush3.bf16.msra.mxu1 %v4227_v35  ;;  %v2937_v50 = vmax.f32 %v2936_v17, %v5969_v60 }
 0x462   : > { %v2897_v63 = vmul.f32 0.2, %v2896_v56  ;;  %3848 = vmatprep.subr.bf16.mxu1 %v4228_v39 }
 0x463   : > { %2819 = vperm.xlu0 %3981, %v5938_v53   ;;  %2794 = vperm.xlu1 %3980, %v5938_v53  }
 0x467   : > { %3984 = vset.pattern.permute.xlu0 %v6230_v18  ;;  %3982 = vset.pattern.permute.xlu1 %v6231_v15  ;;  %v4229_v18 = vld [vmem:[#allocation5] sm:$0xff]   ;;  %v2974_v15 = vmax.f32 %v5899_v25, %v5951_v40 }
 0x468   : > { %2840 = vperm.xlu0 %3984, %v5938_v53   ;;  %2987 = vperm.xlu1 %3982, %v5943_v54   ;;  %v4233_v25 = vld [vmem:[#allocation5 + $0xa0] sm:$0xff]  }
 0x469   : > { %3849 = vmatpush3.bf16.msra.mxu1 %v4229_v18 }
 0x46c   : > { %3987 = vset.pattern.permute.xlu0 %v6232_v44  ;;  %3983 = vset.pattern.permute.xlu1 %v6233_v45  ;;  %v4234_v44 = vld [vmem:[#allocation5 + $0x98] sm:$0xff]   ;;  %v4235_v45 = vld [vmem:[#allocation5 + $0x90] sm:$0xff]  }
 0x46d   : > { %3024 = vperm.xlu0 %3987, %v5943_v54   ;;  %3005 = vperm.xlu1 %3983, %v5943_v54  }
 0x471   : > { %3990 = vset.pattern.permute.xlu0 %v6234_v36  ;;  %3985 = vset.pattern.permute.xlu1 %v6235_v29  ;;  %v3048_v29 = vadd.f32 %v5910_v22, %v5924_v14 }
 0x472   : > { %3042 = vperm.xlu0 %3990, %v5943_v54   ;;  %2901 = vperm.xlu1 %3985, %v5943_v54  }
 0x476   : > { %3986 = vset.pattern.permute.xlu1 %v6236_v2  ;;  %2918 = vrot.lane.b32.xlu0 %v2915_v41, %s4419_s19  ;;  %v4421_v41 = vmov 51  }
 0x477   : > { %2924 = vperm.xlu1 %3986, %v5943_v54   ;;  %3993 = vset.pattern.permute.xlu0 %v4421_v41  ;;  %v2960_v41 = vadd.f32 %v5910_v22, %v5951_v40  ;;  %v2977_v40 = vadd.f32 %v5910_v22, %v5856_v24  ;;  %v3629_v24 = vld [vmem:[%s6103_s5] ss:$0 sm:$0xff] }
 0x47a   : > { %2962 = vrot.lane.b32.xlu0 %v2959_v58, %s4419_s19 }
 0x47b   : > { %3988 = vset.pattern.permute.xlu1 %v6237_v1 }
 0x47c   : > { %2861 = vperm.xlu1 %3988, %v5938_v53  }
 0x47e   : > { %3058 = vrot.lane.b32.xlu0 %v2897_v63, %s4419_s19 }
 0x480   : > { %3989 = vset.pattern.permute.xlu1 %v6238_v30 }
 0x481   : > { %2947 = vperm.xlu1 %3989, %v5943_v54  }
 0x482   : > { %3351 = vperm.xlu0 %3993, %v6229_v12   ;;  %v6243_v12 = vld [vmem:[#allocation38_spill] sm:$0xff] }
 0x483   : > { %v2916_v10 = vadd.f32 %v5910_v22, %v6243_v12 }
 0x485   : > { %3991 = vset.pattern.permute.xlu1 %v6239_v33 }
 0x486   : > { %2881 = vperm.xlu1 %3991, %v5938_v53   ;;  %v2975_v53 = vmax.f32 %v2974_v15, %v5964_v48  ;;  %v2997_v48 = vadd.f32 %v5910_v22, %v5868_v46 }
 0x488   : > { %v2976_v4 = vmax.f32 %v2975_v53, %v5969_v60 }
 0x48a   : > { %3992 = vset.pattern.permute.xlu1 %v6240_v27 }
 0x48b   : > { %2969 = vperm.xlu1 %3992, %v5943_v54   ;;  %v4230_v54 = vld [vmem:[#allocation5 + $0xb8] sm:$0xff]  }
 0x48c   : > { %3866 = vmatpush3.bf16.msra.mxu0 %v4230_v54 }
 0x48d   : > { %3867 = vmatprep.subr.bf16.mxu0 %v6222_v38 }
 0x48f   : > { %2940 = vrot.lane.b32.xlu1 %v2937_v50, %s4419_s19 }
 0x490   : > { %3868 = vmatpush3.bf16.msra.mxu0 %v4231_v42  ;;  %v6246_v42 = vld [vmem:[#allocation12_spill] sm:$0xff] }
 0x491   : > { %3869 = vmatprep.subr.bf16.mxu0 %v6222_v38 }
 0x493   : > { %2979 = vrot.lane.b32.xlu1 %v2976_v4, %s4419_s19  ;;  %v6245_v4 = vld [vmem:[#allocation11_spill] sm:$0xff] }
 0x494   : > { %3870 = vmatpush3.bf16.msra.mxu0 %v4232_v43 }
 0x495   : > { %3871 = vmatprep.subr.bf16.mxu0 %v6222_v38 }
 0x498   : > { %3872 = vmatpush3.bf16.msra.mxu0 %v4233_v25  ;;  %v6247_v25 = vld [vmem:[#allocation15_spill] sm:$0xff] }
 0x499   : > { %3873 = vmatprep.subr.bf16.mxu0 %v6222_v38 }
 0x49c   : > { %3874 = vmatpush3.bf16.msra.mxu0 %v4234_v44 }
 0x49d   : > { %3875 = vmatprep.subr.bf16.mxu0 %v6222_v38 }
 0x4a0   : > { %3876 = vmatpush3.bf16.msra.mxu0 %v4235_v45  ;;  %v6248_v45 = vld [vmem:[#allocation28_spill] sm:$0xff] }
 0x4a1   : > { %3877 = vmatprep.subr.bf16.mxu0 %v6222_v38 }
 0x4a4   : > { %3878 = vmatpush3.bf16.msra.mxu0 %v4236_v31 }
 0x4a5   : > { %3879 = vmatprep.subr.bf16.mxu0 %v6222_v38 }
 0x4a8   : > { %3880 = vmatpush3.bf16.msra.mxu0 %v4237_v49 }
 0x4cd   : > { %v3000_v47 = vpop.permute.xlu1 %2999  ;;  %v3018_v13 = vpop.permute.xlu0 %3017 }
 0x4ce   : > { %v3002_v51 = vadd.f32 %v3000_v47, %v2997_v48  ;;  %v3020_v60 = vadd.f32 %v3018_v13, %v3015_v23  ;;  %v6250_v13 = vld [vmem:[#allocation16_spill] sm:$0xff] }
 0x4d0   : > { %v3003_v62 = vmax.f32 %v3002_v51, 0.0  ;;  %v3021_v36 = vmax.f32 %v3020_v60, 0.0  ;;  %v6251_v60 = vld [vmem:[#allocation31_spill] sm:$0xff] }
 0x4d1   : > { %v3036_v34 = vpop.permute.xlu1 %3035  ;;  %v3051_v0 = vpop.permute.xlu0 %3050 }
 0x4d2   : > { %v3022_v46 = vadd.f32 %v3021_v36, %v3003_v62  ;;  %v3038_v8 = vadd.f32 %v3036_v34, %v3033_v6  ;;  %v3053_v52 = vadd.f32 %v3051_v0, %v3048_v29  ;;  %v6252_v29 = vld [vmem:[#allocation24_spill] sm:$0xff] }
 0x4d4   : > { %v3039_v59 = vmax.f32 %v3038_v8, 0.0  ;;  %v3054_v3 = vmax.f32 %v3053_v52, 0.0  ;;  %v6253_v8 = vld [vmem:[#allocation13_spill] sm:$0xff] }
 0x4d6   : > { %v3040_v55 = vadd.f32 %v3039_v59, %v3022_v46 }
 0x4d8   : > { %v3055_v20 = vadd.f32 %v3054_v3, %v3040_v55  ;;  %v2938_v3 = vadd.f32 %v5910_v22, %v5720_v28 }
 0x4da   : > { %v3056_v2 = vmul.f32 0.25, %v3055_v20 }
 0x4dc   : > { %3062 = vrot.lane.b32.xlu1 %v3056_v2, %s4419_s19  ;;  %s4332_s19 = sshll.u32 %s4422_s18, 4  ;;  %s4333_s19 = int_to_ptr.vmem [resolvable:$false] %s4332_s19 }
 0x4dd   : > { %s4334_s20 = scalar_lea.vmem %s4333_s19, 256  ;;  %p4335_p11 = scmp.lt.s32.totalorder %s6059_s13, %s4333_s19 }
 0x4de   : > { %v2795_v14 = vpop.permute.xlu1 %2794  ;;  %v2820_v7 = vpop.permute.xlu0 %2819  ;;  %p4336_p0 = scmp.lt.s32.totalorder %s4334_s20, %s4328_s25 }
 0x4df   : > { %v2797_v54 = vmul.f32 %v2795_v14, %v6245_v4  ;;  %v2822_v43 = vmul.f32 %v2820_v7, %v6246_v42 }
 0x4e0   : > { %p4337_p1 = por %p4336_p0, %p4335_p11 }
 0x4e1   : > { %v2823_v23 = vadd.f32 %v2822_v43, %v2797_v54 }
 0x4e2   : > { %p4338_p3 = pnand %p4337_p1, %p4331_p8 }
 0x4e3   : > { %v2988_v11 = vpop.permute.xlu1 %2987  ;;  %v2841_v58 = vpop.permute.xlu0 %2840 }
 0x4e4   : > { %v2990_v9 = vmul.f32 %v2988_v11, %v6242_v61  ;;  %v2843_v44 = vmul.f32 %v2841_v58, %v6247_v25 }
 0x4e6   : > { %v2844_v62 = vadd.f32 %v2843_v44, %v2823_v23 }
 0x4e8   : > { %v3006_v38 = vpop.permute.xlu1 %3005  ;;  %v3025_v56 = vpop.permute.xlu0 %3024 }
 0x4e9   : > { %v3008_v1 = vmul.f32 %v3006_v38, %v6241_v19  ;;  %v3027_v33 = vmul.f32 %v3025_v56, %v6244_v21 }
 0x4eb   : > { %v3009_v30 = vadd.f32 %v3008_v1, %v2990_v9 }
 0x4ed   : > { %v2902_v16 = vpop.permute.xlu1 %2901  ;;  %v3043_v63 = vpop.permute.xlu0 %3042  ;;  %v3028_v35 = vadd.f32 %v3027_v33, %v3009_v30 }
 0x4ee   : > { %v3045_v26 = vmul.f32 %v3043_v63, %v5755_v57  ;;  %v6249_v57 = vld [vmem:[#allocation26_spill] sm:$0xff] }
 0x4ef   : > { %v2904_v47 = vmul.f32 %v2902_v16, %v6249_v57 }
 0x4f0   : > { %v3046_v39 = vadd.f32 %v3045_v26, %v3028_v35 }
 0x4f1   : > { %v2919_v5 = vpop.permute.xlu0 %2918 }
 0x4f2   : > { %v2921_v37 = vadd.f32 %v2919_v5, %v2916_v10  ;;  %v2925_v32 = vpop.permute.xlu1 %2924 }
 0x4f3   : > { %v2927_v31 = vmul.f32 %v2925_v32, %v6248_v45 }
 0x4f4   : > { %v2922_v58 = vmax.f32 %v2921_v37, 0.0 }
 0x4f5   : > { %v2963_v27 = vpop.permute.xlu0 %2962  ;;  %v2928_v36 = vadd.f32 %v2927_v31, %v2904_v47 }
 0x4f6   : > { %v2965_v2 = vadd.f32 %v2963_v27, %v2960_v41 }
 0x4f7   : > { %v2862_v17 = vpop.permute.xlu1 %2861 }
 0x4f8   : > { %v2864_v51 = vmul.f32 %v2862_v17, %v6250_v13  ;;  %v2966_v56 = vmax.f32 %v2965_v2, 0.0 }
 0x4f9   : > { %v3059_v18 = vpop.permute.xlu0 %3058 }
 0x4fa   : > { %v3066_v50 = vsel %vm288_vm4, %v3046_v39, %v3059_v18  ;;  %v2865_v0 = vadd.f32 %v2864_v51, %v2844_v62 }
 0x4fb   : > { %v3069_v15 = vpack.c.bf16 %v3066_v50, %v3066_v50 }
 0x4fc   : > { %v2948_v53 = vpop.permute.xlu1 %2947 }
 0x4fd   : > { %3302 = vmatprep.mubr.bf16.mxu1 %v3069_v15  ;;  %v2950_v6 = vmul.f32 %v2948_v53, %v6251_v60  ;;  %v3352_v26 = vpop.permute.xlu0 %3351 }
 0x4ff   : > { %v2951_v46 = vadd.f32 %v2950_v6, %v2928_v36 }
 0x501   : > { %v2882_v48 = vpop.permute.xlu1 %2881 }
 0x502   : > { %v2884_v49 = vmul.f32 %v2882_v48, %v6252_v29 }
 0x504   : > { %v2885_v59 = vadd.f32 %v2884_v49, %v2865_v0 }
 0x506   : > { %v2970_v34 = vpop.permute.xlu1 %2969 }
 0x507   : > { %v2972_v52 = vmul.f32 %v2970_v34, %v6253_v8 }
 0x509   : > { %v2973_v55 = vadd.f32 %v2972_v52, %v2951_v46 }
 0x50a   : > { %v2941_v20 = vpop.permute.xlu1 %2940 }
 0x50b   : > { %v3065_v14 = vsel %vm288_vm4, %v2885_v59, %v2973_v55  ;;  %v2943_v7 = vadd.f32 %v2941_v20, %v2938_v3 }
 0x50c   : > { %v3068_v11 = vpack.c.bf16 %v3065_v14, %v3065_v14 }
 0x50d   : > { %v2944_v38 = vmax.f32 %v2943_v7, 0.0 }
 0x50e   : > { %3303 = vmatmul.mubr.bf16.vlgmr.msra.gmra.mxu1 %v3068_v11  ;;  %v2980_v16 = vpop.permute.xlu1 %2979 }
 0x50f   : > { %v2945_v19 = vadd.f32 %v2944_v38, %v2922_v58  ;;  %v2982_v63 = vadd.f32 %v2980_v16, %v2977_v40 }
 0x511   : > { %v2967_v1 = vadd.f32 %v2966_v56, %v2945_v19  ;;  %v2983_v61 = vmax.f32 %v2982_v63, 0.0 }
 0x513   : > { %v2984_v28 = vadd.f32 %v2983_v61, %v2967_v1 }
 0x515   : > { %v2985_v9 = vmul.f32 0.25, %v2984_v28 }
 0x54e   : > { %v3063_v30 = vpop.permute.xlu1 %3062 }
 0x54f   : > { %v3067_v12 = vsel %vm288_vm4, %v2985_v9, %v3063_v30 }
 0x550   : > { %v3070_v10 = vpack.c.bf16 %v3067_v12, %v3067_v12 }
 0x552   : > { %3882 = vmatmul.mubr.bf16.vlgmr.msra.gmra.mxu0 %v3070_v10 }
 0x5ce   : > { %v3850_v5 = vpop.f32.mrf.mxu1 }
 0x5d0   : > { %v3851_v21 = vpop.f32.mrf.mxu1 }
 0x5d1   : > { %v3852_v32 = vadd.f32 %v3851_v21, %v3850_v5 }
 0x5d2   : > { %v3853_v33 = vpop.f32.mrf.mxu1 }
 0x5d3   : > { %v3305_v22 = vadd.f32 %v3852_v32, %v3629_v24 }
 0x5d4   : > { %v3854_v37 = vpop.f32.mrf.mxu1 }
 0x612   : > { %v3344_v35 = vpop.f32.mrf.mxu0 }
 0x613   : > { %v3345_v27 = vadd.f32 %v3344_v35, %v3305_v22 }
 0x614   : > { %v3883_v17 = vpop.f32.mrf.mxu0 }
 0x615   : > { %v3354_v39 = vmul.f32 %v3352_v26, %v3345_v27 }
 0x616   : > { %v3347_v18 = vpop.f32.mrf.mxu0 }
 0x617   : > { %3355 = vst [vmem:[%s272_s12] sm:$0xff] %v3354_v39 }
 0x618   : > { %v3884_v50 = vpop.f32.mrf.mxu0 }
 0x619   : > { %4341 = shalt.err (!%p4338_p3)
}
 0x61a   : > { %s4342_s26 = scalar_lea.hbm %s6057_s14, 128  ;;  %s4346_s10 = scalar_lea.hbm %s6104_s6, 256 }
 0x61b   : > { %p4343_p2 = scmp.ne.s32.totalorder %s6057_s14, %s4342_s26  ;;  %p4347_p6 = scmp.lt.s32.totalorder %s6057_s14, %s6104_s6 }
 0x61c   : > { %p4348_p9 = scmp.lt.s32.totalorder %s4346_s10, %s4342_s26 }
 0x61d   : > { %p4344_p4 = pnand %p4343_p2, %p4496_p5 }
 0x61e   : > { %p4349_p7 = por %p4348_p9, %p4347_p6 }
 0x61f   : > { %p4345_p13 = pneg %p4344_p4 }
 0x621   : > { %p4350_p10 = pnand %p4349_p7, %p4345_p13 }
 0x623   : > { %4353 = shalt.err (!%p4350_p10)
}
 0x624   : > { %3893 = dma.vmem_to_hbm [thread:$0]  (%p4496_p5), %s6059_s13, 128, %s6057_s14, %s3357_s17  }
 0x625 PF: > { %p3910_p12 = scmp.ge.s32.totalorder %s4396_s24, 2  ;;  %s3382_s12 = sand.u32 1, %s4384_s21  }
 0x626   : > { %p6254_p8 = scmp.ne.s32.totalorder %s6153_s8, 0  ;;  %s3383_s15 = scalar_lea.sflag [#allocation4], %s3382_s12 }
 0x628   : > { %p3903_p11 = pnand %p3910_p12, %p6254_p8 }
 0x62a   : > { %p3904_p0 = pneg %p3903_p11 }
 0x62c   : > { %4379 = dma.done.wait (%p3904_p0), %s3383_s15, 128  }
 0x62d   : > { %4381 = vsyncadd (%p3904_p0), %s3383_s15, 4294967168  ;;  %p18_p1 = scmp.ge.s32.totalorder %s4483_s27, 4   ;;  %s6255_s21 = smov %s4388_s22 }
 0x62e   : > { %s6256_s22 = smov %s4392_s23  ;;  %s6257_s23 = smov %s4494_s30 }
 0x62f   : > { %s6258_s24 = smov %s4483_s27  ;;  %20 = sbr.rel (!%p18_p1) target bundleno = 5 (0x5), region = 88 }
 0x634   :  { %3388 = vsyncpa [#allocation3], 1 }
 0x635   :  { %3390 = vsyncpa [#allocation3 + $0x1], 1 }
 0x636   :  { %3391 = vsyncpa [#allocation6], 1 }
 0x637   :  { %3392 = vsyncpa [#allocation4], 1 }
 0x638   :  { %3394 = vsyncpa [#allocation4 + $0x1], 1 }

</bundles_post_ra>
